<compile_context>
chip_gen: v6e
topology: v6e:2x2x1
jax: 0.10.0
libtpu: 0.0.40
codegen_flags: <defaults>
</compile_context>

<pallas_src>
import jax
import jax.numpy as jnp
from jax.experimental import pallas as pl
from jax.experimental.pallas import tpu as pltpu


def _round_up(v, m):
    return ((v + m - 1) // m) * m


# Tap-major static group table: (tap_row, tap_col, first_phase, n_phases).
# Phase p = 2*a + b is the output sub-pixel (a, b); tap (r, c) is the input shifted by
# (r, c) inside the 1-padded image.  Each group (a maximal run of contiguous phases fed by
# one tap) becomes a single MXU dot into a lane-aligned column slice of the accumulator.
_GROUPS = (
    (0, 0, 0, 1),
    (0, 1, 0, 2),
    (0, 2, 1, 1),
    (1, 0, 0, 1), (1, 0, 2, 1),
    (1, 1, 0, 4),
    (1, 2, 1, 1), (1, 2, 3, 1),
    (2, 0, 2, 1),
    (2, 1, 2, 2),
    (2, 2, 3, 1),
)


def _collapsed_matrix(weight, a, b, dh, dw):
    """(Cin, Cout) weight for output phase (a, b), 2x2 tap offset (dh, dw).

    Collapses the 3x3 kernel rows/cols that hit the same (not yet upsampled) source pixel:
      a==0 -> rows {kh0}, {kh1+kh2};  a==1 -> rows {kh0+kh1}, {kh2}  (same for columns / b).
    """
    if a == 0:
        r = weight[:, :, 0, :] if dh == 0 else weight[:, :, 1, :] + weight[:, :, 2, :]
    else:
        r = weight[:, :, 0, :] + weight[:, :, 1, :] if dh == 0 else weight[:, :, 2, :]
    if b == 0:
        m = r[:, :, 0] if dw == 0 else r[:, :, 1] + r[:, :, 2]
    else:
        m = r[:, :, 0] + r[:, :, 1] if dw == 0 else r[:, :, 2]
    return jnp.transpose(m)                                    # (Cin, Cout)


def _pack_weights(weight, C, Cp, dtype):
    """Pack the 16 collapsed (Cin, Cout) matrices tap-major into one (Cp, 16*Cp) array."""
    cols = []
    for (r, c, p0, k) in _GROUPS:
        for q in range(k):
            p = p0 + q
            a, b = p // 2, p % 2
            m = _collapsed_matrix(weight, a, b, r - a, c - b)
            cols.append(jnp.pad(m, ((0, Cp - C), (0, Cp - C))))
    return jnp.concatenate(cols, axis=1).astype(dtype)         # (Cp, 16*Cp)


# ----------------------------------------------------------------------------
# with_conv=True : fused nearest-x2 upsample + 3x3 conv (polyphase 2x2 conv)
# ----------------------------------------------------------------------------
def _upsample_conv(x_nhwc, weight, bias, compute_dtype):
    N, H, W, C = x_nhwc.shape
    assert weight.shape == (C, C, 3, 3) and bias.shape == (C,)
    out_dtype = x_nhwc.dtype
    cbytes = jnp.dtype(compute_dtype).itemsize
    obytes = jnp.dtype(out_dtype).itemsize

    Cp = _round_up(C, 128)             # lane-dense contraction / output channels
    Wp = _round_up(W, 8)               # keeps in-kernel (TH, Wp, Cp)->(TM, Cp) reshapes cheap

    # Rows per grid step: TM = TH * Wp.  Bigger tiles amortize per-step overhead; the budget
    # below keeps the working set well under v7x's 64 MiB VMEM even at Cp=512.
    tm_target = 1024 if Cp <= 256 else 512
    TH = max(1, min(H, -(-tm_target // Wp)))
    if N == 1 and TH >= H and H >= 2:
        TH = -(-H // 2)                # >=2 grid steps so both v7x TensorCores get work
    Hp = _round_up(H, TH)
    nH = Hp // TH
    TM = TH * Wp

    # Single padded + cast input copy in HBM (read once by the kernel via halo DMA).
    xpad = jnp.pad(x_nhwc, ((0, 0), (1, Hp + 1 - H), (1, Wp + 1 - W), (0, Cp - C)))
    xpad = xpad.astype(compute_dtype)                          # (N, Hp+2, Wp+2, Cp)

    w_packed = _pack_weights(weight, C, Cp, compute_dtype)     # (Cp, 16*Cp), VMEM-resident
    bias4 = jnp.tile(jnp.pad(bias.reshape(1, C), ((0, 0), (0, Cp - C))),
                     (1, 4)).astype(jnp.float32)               # (1, 4*Cp), phase-major

    col_off = []
    off = 0
    for (_, _, _, k) in _GROUPS:
        col_off.append(off)
        off += k * Cp

    def kernel(x_hbm, w_ref, b_ref, o_ref, xbuf, acc_ref, sem):
        n = pl.program_id(0)
        h = pl.program_id(1)
        # Halo DMA: TH+2 padded rows of image n (contiguous in HBM) -> VMEM scratch.
        copy_in = pltpu.make_async_copy(
            x_hbm.at[n, pl.ds(h * TH, TH + 2)], xbuf, sem)
        copy_in.start()
        copy_in.wait()
        # Accumulator starts at the phase-tiled bias (saves a full-tile add at the end).
        acc_ref[...] = jnp.broadcast_to(b_ref[...], (TM, 4 * Cp))
        gi = 0
        for r in range(3):
            for c in range(3):
                lhs = xbuf[r:r + TH, c:c + Wp, :].reshape(TM, Cp)
                while gi < len(_GROUPS) and _GROUPS[gi][0] == r and _GROUPS[gi][1] == c:
                    p0, k = _GROUPS[gi][2], _GROUPS[gi][3]
                    co = col_off[gi]
                    acc_ref[:, p0 * Cp:(p0 + k) * Cp] += jnp.dot(
                        lhs, w_ref[:, co:co + k * Cp],
                        preferred_element_type=jnp.float32)
                    gi += 1
        o_ref[...] = acc_ref[...].astype(o_ref.dtype)

    est_vmem = (2 * Cp * 16 * Cp * cbytes                      # weights (double-buffered)
                + 2 * TM * 4 * Cp * obytes                     # output blocks
                + TM * 4 * Cp * 4                              # f32 accumulator
                + (TH + 2) * _round_up(Wp + 2, 8) * Cp * cbytes  # halo buffer
                + 9 * TM * Cp * cbytes                         # in-kernel tap temporaries
                + (1 << 20))
    vmem_limit = min(48 * 1024 * 1024, max(32 * 1024 * 1024, est_vmem * 5 // 4))

    cost = pl.CostEstimate(
        flops=2 * 16 * (N * Hp * Wp) * Cp * Cp,
        transcendentals=0,
        bytes_accessed=(xpad.size * cbytes + w_packed.size * cbytes
                        + N * Hp * Wp * 4 * Cp * obytes),
    )

    out2d = pl.pallas_call(
        kernel,
        out_shape=jax.ShapeDtypeStruct((N * Hp * Wp, 4 * Cp), out_dtype),
        grid=(N, nH),
        in_specs=[
            pl.BlockSpec(memory_space=pl.ANY),                    # padded input, stays in HBM
            pl.BlockSpec((Cp, 16 * Cp), lambda n, h: (0, 0)),     # packed weights (resident)
            pl.BlockSpec((1, 4 * Cp), lambda n, h: (0, 0)),       # phase-tiled bias (resident)
        ],
        out_specs=pl.BlockSpec((TM, 4 * Cp), lambda n, h: (n * nH + h, 0)),
        scratch_shapes=[
            pltpu.VMEM((TH + 2, Wp + 2, Cp), compute_dtype),      # halo input buffer
            pltpu.VMEM((TM, 4 * Cp), jnp.float32),                # accumulator
            pltpu.SemaphoreType.DMA,
        ],
        compiler_params=pltpu.CompilerParams(
            dimension_semantics=("parallel", "parallel"),
            vmem_limit_bytes=vmem_limit),
        cost_estimate=cost,
    )(xpad, w_packed, bias4)

    # Rows are ordered (n, hp, wp); columns are (phase p = 2a+b, channel).
    return out2d.reshape(N, Hp, Wp, 2, 2, Cp)[:, :H, :W, :, :, :C]   # (N, H, W, a, b, C)


# ----------------------------------------------------------------------------
# with_conv=False : plain nearest-x2 upsample (lane-dense blocks, in-VMEM interleave)
# ----------------------------------------------------------------------------
def _upsample_nearest(x_nhwc):
    N, H, W, C = x_nhwc.shape
    R = N * H
    WC = W * C
    itemsize = jnp.dtype(x_nhwc.dtype).itemsize

    # Per input row: WC elements in + 4*WC out, double-buffered -> ~10*WC*itemsize bytes.
    row_bytes = 10 * WC * itemsize
    TH = max(8, min(512, ((24 * 1024 * 1024) // max(1, row_bytes)) // 8 * 8))
    Rp0 = _round_up(R, 8)
    if TH >= Rp0:                      # would be a single step; split for v7x's two cores
        TH = Rp0 if Rp0 < 16 else _round_up(Rp0 // 2, 8)
    Rp = _round_up(R, TH)

    x2 = jnp.pad(x_nhwc.reshape(R, WC), ((0, Rp - R), (0, 0)))

    def kernel(x_ref, o_ref):
        x3 = x_ref[...].reshape(TH, W, C)
        # duplicate along w (phase b), then along h (phase a); flat order = (a, w, b, c)
        inner = jnp.broadcast_to(x3[:, :, None, :], (TH, W, 2, C)).reshape(TH, 2 * WC)
        o_ref[...] = jnp.broadcast_to(inner[:, None, :], (TH, 2, 2 * WC)).reshape(TH, 4 * WC)

    out2d = pl.pallas_call(
        kernel,
        out_shape=jax.ShapeDtypeStruct((Rp, 4 * WC), x_nhwc.dtype),
        grid=(Rp // TH,),
        in_specs=[pl.BlockSpec((TH, WC), lambda r: (r, 0))],
        out_specs=pl.BlockSpec((TH, 4 * WC), lambda r: (r, 0)),
        compiler_params=pltpu.CompilerParams(
            dimension_semantics=("parallel",),
            vmem_limit_bytes=48 * 1024 * 1024),
    )(x2)
    return out2d[:R].reshape(N, H, 2, W, 2, C)                  # (N, H, a, W, b, C)


# ----------------------------------------------------------------------------
# public API
# ----------------------------------------------------------------------------
def upsample(x_nchw, weight=None, bias=None, with_conv=True,
             compute_dtype=jnp.bfloat16):
    """Forward pass of Upsample.  x_nchw: (N, C, H, W) -> (N, C, 2H, 2W)."""
    N, C, H, W = x_nchw.shape
    x = jnp.transpose(x_nchw, (0, 2, 3, 1))                    # -> NHWC
    if with_conv:
        out6 = _upsample_conv(x, weight, bias, compute_dtype)  # (N, H, W, a, b, C)
        return jnp.transpose(out6, (0, 5, 1, 3, 2, 4)).reshape(N, C, 2 * H, 2 * W)
    out6 = _upsample_nearest(x)                                 # (N, H, a, W, b, C)
    return jnp.transpose(out6, (0, 5, 1, 2, 3, 4)).reshape(N, C, 2 * H, 2 * W)


def upsample_nhwc(x_nhwc, weight=None, bias=None, with_conv=True,
                  compute_dtype=jnp.bfloat16):
    """NHWC variant (no boundary transposes).  x: (N, H, W, C) -> (N, 2H, 2W, C)."""
    N, H, W, C = x_nhwc.shape
    if with_conv:
        out6 = _upsample_conv(x_nhwc, weight, bias, compute_dtype)   # (N, H, W, a, b, C)
        return jnp.transpose(out6, (0, 1, 3, 2, 4, 5)).reshape(N, 2 * H, 2 * W, C)
    out6 = _upsample_nearest(x_nhwc)                                 # (N, H, a, W, b, C)
    return out6.reshape(N, 2 * H, 2 * W, C)


if __name__ == "__main__":
    key = jax.random.PRNGKey(0)
    kx, kw, kb = jax.random.split(key, 3)

    N, C, H, W = 2, 4, 16, 16
    x = jax.random.normal(kx, (N, C, H, W), dtype=jnp.float32)
    # nn.Conv2d(C, C, kernel_size=3, stride=1, padding=1): weight (C, C, 3, 3), bias (C,)
    weight = 0.1 * jax.random.normal(kw, (C, C, 3, 3), dtype=jnp.float32)
    bias = 0.1 * jax.random.normal(kb, (C,), dtype=jnp.float32)

    # Pure-JAX reference: nearest x2 upsample, then 3x3/s1/p1 conv.
    up_ref = jnp.repeat(jnp.repeat(x, 2, axis=2), 2, axis=3)
    ref_conv = jax.lax.conv_general_dilated(
        up_ref, weight, window_strides=(1, 1), padding=((1, 1), (1, 1)),
        dimension_numbers=("NCHW", "OIHW", "NCHW"),
    ) + bias[None, :, None, None]

    conv_f32 = jax.jit(lambda a, w, b: upsample(a, w, b, with_conv=True,
                                                compute_dtype=jnp.float32))
    conv_bf16 = jax.jit(lambda a, w, b: upsample(a, w, b, with_conv=True))
    plain_up = jax.jit(lambda a: upsample(a, with_conv=False))
    conv_nhwc = jax.jit(lambda a, w, b: upsample_nhwc(a, w, b, with_conv=True,
                                                      compute_dtype=jnp.float32))

    # with_conv=True, f32 operands: validates the polyphase decomposition tightly.
    y_f32 = jax.block_until_ready(conv_f32(x, weight, bias))
    assert y_f32.shape == (N, C, 2 * H, 2 * W)
    assert jnp.allclose(y_f32, ref_conv, rtol=1e-4, atol=1e-4)

    # with_conv=True, default bf16 operands on the MXU (f32 accumulation).
    y_bf16 = jax.block_until_ready(conv_bf16(x, weight, bias))
    assert y_bf16.shape == (N, C, 2 * H, 2 * W)
    assert jnp.allclose(y_bf16, ref_conv, rtol=5e-2, atol=5e-2)

    # with_conv=False: pure nearest upsample (exact).
    y_up = jax.block_until_ready(plain_up(x))
    assert y_up.shape == (N, C, 2 * H, 2 * W)
    assert jnp.allclose(y_up, up_ref, rtol=1e-6, atol=1e-6)

    # NHWC entry point (no boundary transposes).
    y_nhwc = jax.block_until_ready(conv_nhwc(jnp.transpose(x, (0, 2, 3, 1)), weight, bias))
    assert y_nhwc.shape == (N, 2 * H, 2 * W, C)
    assert jnp.allclose(y_nhwc, jnp.transpose(ref_conv, (0, 2, 3, 1)), rtol=1e-4, atol=1e-4)

    print("KERNEL_OK")
</pallas_src>

<mosaic_0001>
module attributes {stable_mosaic.version = 11 : i64} {
  func.func @kernel(%arg0: i32, %arg1: i32, %arg2: memref<2x18x18x128xf32, #tpu.memory_space<any>>, %arg3: memref<128x2048xf32, #tpu.memory_space<vmem>>, %arg4: memref<1x512xf32, #tpu.memory_space<vmem>>, %arg5: memref<256x512xf32, #tpu.memory_space<vmem>>, %arg6: memref<18x18x128xf32, #tpu.memory_space<vmem>>, %arg7: memref<256x512xf32, #tpu.memory_space<vmem>>, %arg8: memref<!tpu.dma_semaphore, #tpu.memory_space<semaphore_mem>>) attributes {dimension_semantics = [#tpu.dimension_semantics<parallel>, #tpu.dimension_semantics<parallel>], iteration_bounds = array<i64: 2, 1>, scalar_prefetch = 0 : i64, scratch_operands = 3 : i64, tpu.core_type = #tpu.core_type<tc>, window_params = [{}, {pipeline_mode = #tpu.pipeline_mode<synchronous>, transform_indices = @transform_1, window_bounds = array<i64: 128, 2048>}, {pipeline_mode = #tpu.pipeline_mode<synchronous>, transform_indices = @transform_2, window_bounds = array<i64: 1, 512>}, {transform_indices = @transform_3, window_bounds = array<i64: 256, 512>}]} {
    %c16_i32 = arith.constant 16 : i32
    %0 = arith.muli %arg1, %c16_i32 : i32
    %c0_i32 = arith.constant 0 : i32
    %c0_i32_0 = arith.constant 0 : i32
    %1 = tpu.memref_slice %arg2[%arg0, %0, %c0_i32, %c0_i32_0] : memref<2x18x18x128xf32, #tpu.memory_space<any>> -> memref<1x18x18x128xf32, #tpu.memory_space<any>>
    %2 = tpu.memref_squeeze %1 : memref<1x18x18x128xf32, #tpu.memory_space<any>> -> memref<18x18x128xf32, #tpu.memory_space<any>>
    tpu.enqueue_dma source(%2 : memref<18x18x128xf32, #tpu.memory_space<any>>) target(%arg6 : memref<18x18x128xf32, #tpu.memory_space<vmem>>) target_semaphore(%arg8 : memref<!tpu.dma_semaphore, #tpu.memory_space<semaphore_mem>>)
    %c0_i32_1 = arith.constant 0 : i32
    %c0_i32_2 = arith.constant 0 : i32
    %3 = tpu.memref_slice %arg2[%arg0, %0, %c0_i32_1, %c0_i32_2] : memref<2x18x18x128xf32, #tpu.memory_space<any>> -> memref<1x18x18x128xf32, #tpu.memory_space<any>>
    %4 = tpu.memref_squeeze %3 : memref<1x18x18x128xf32, #tpu.memory_space<any>> -> memref<18x18x128xf32, #tpu.memory_space<any>>
    tpu.wait_dma2 semaphore(%arg8 : memref<!tpu.dma_semaphore, #tpu.memory_space<semaphore_mem>>) src(%4 : memref<18x18x128xf32, #tpu.memory_space<any>>) dst(%arg6 : memref<18x18x128xf32, #tpu.memory_space<vmem>>)
    %c0 = arith.constant 0 : index
    %c0_3 = arith.constant 0 : index
    %5 = vector.load %arg4[%c0, %c0_3] : memref<1x512xf32, #tpu.memory_space<vmem>>, vector<1x512xf32>
    %6 = vector.shape_cast %5 : vector<1x512xf32> to vector<1x512xf32>
    %7 = vector.broadcast %6 : vector<1x512xf32> to vector<256x512xf32>
    %c0_4 = arith.constant 0 : index
    %c0_5 = arith.constant 0 : index
    %8 = vector.load %arg7[%c0_4, %c0_5] : memref<256x512xf32, #tpu.memory_space<vmem>>, vector<256x512xf32>
    tpu.vector_store %arg7[%c0_4, %c0_5], %7 {strides = array<i32>} : memref<256x512xf32, #tpu.memory_space<vmem>>, vector<256x512xf32>,
    %c0_6 = arith.constant 0 : index
    %c0_7 = arith.constant 0 : index
    %c0_8 = arith.constant 0 : index
    %9 = vector.load %arg6[%c0_6, %c0_7, %c0_8] : memref<18x18x128xf32, #tpu.memory_space<vmem>>, vector<16x16x128xf32>
    %10 = vector.shape_cast %9 : vector<16x16x128xf32> to vector<256x128xf32>
    %c0_9 = arith.constant 0 : index
    %c0_10 = arith.constant 0 : index
    %11 = vector.load %arg7[%c0_9, %c0_10] : memref<256x512xf32, #tpu.memory_space<vmem>>, vector<256x128xf32>
    %c0_11 = arith.constant 0 : index
    %c0_12 = arith.constant 0 : index
    %12 = vector.load %arg3[%c0_11, %c0_12] : memref<128x2048xf32, #tpu.memory_space<vmem>>, vector<128x128xf32>
    %cst = arith.constant dense<0.000000e+00> : vector<256x128xf32>
    %13 = tpu.matmul %10, %12, %cst {dimension_numbers = #tpu.dot_dimension_numbers<[1], [0], [0], [1], [0, 0, 1, 1], [], []>} : vector<256x128xf32>, vector<128x128xf32>, vector<256x128xf32> -> vector<256x128xf32>
    %14 = arith.addf %11, %13 : vector<256x128xf32>
    %c0_13 = arith.constant 0 : index
    %c0_14 = arith.constant 0 : index
    %15 = vector.load %arg7[%c0_13, %c0_14] : memref<256x512xf32, #tpu.memory_space<vmem>>, vector<256x128xf32>
    tpu.vector_store %arg7[%c0_13, %c0_14], %14 {strides = array<i32>} : memref<256x512xf32, #tpu.memory_space<vmem>>, vector<256x128xf32>,
    %c0_15 = arith.constant 0 : index
    %c1 = arith.constant 1 : index
    %c0_16 = arith.constant 0 : index
    %16 = vector.load %arg6[%c0_15, %c1, %c0_16] : memref<18x18x128xf32, #tpu.memory_space<vmem>>, vector<16x16x128xf32>
    %17 = vector.shape_cast %16 : vector<16x16x128xf32> to vector<256x128xf32>
    %c0_17 = arith.constant 0 : index
    %c0_18 = arith.constant 0 : index
    %18 = vector.load %arg7[%c0_17, %c0_18] : memref<256x512xf32, #tpu.memory_space<vmem>>, vector<256x256xf32>
    %c0_19 = arith.constant 0 : index
    %c128 = arith.constant 128 : index
    %19 = vector.load %arg3[%c0_19, %c128] : memref<128x2048xf32, #tpu.memory_space<vmem>>, vector<128x256xf32>
    %cst_20 = arith.constant dense<0.000000e+00> : vector<256x256xf32>
    %20 = tpu.matmul %17, %19, %cst_20 {dimension_numbers = #tpu.dot_dimension_numbers<[1], [0], [0], [1], [0, 0, 1, 1], [], []>} : vector<256x128xf32>, vector<128x256xf32>, vector<256x256xf32> -> vector<256x256xf32>
    %21 = arith.addf %18, %20 : vector<256x256xf32>
    %c0_21 = arith.constant 0 : index
    %c0_22 = arith.constant 0 : index
    %22 = vector.load %arg7[%c0_21, %c0_22] : memref<256x512xf32, #tpu.memory_space<vmem>>, vector<256x256xf32>
    tpu.vector_store %arg7[%c0_21, %c0_22], %21 {strides = array<i32>} : memref<256x512xf32, #tpu.memory_space<vmem>>, vector<256x256xf32>,
    %c0_23 = arith.constant 0 : index
    %c2 = arith.constant 2 : index
    %c0_24 = arith.constant 0 : index
    %23 = vector.load %arg6[%c0_23, %c2, %c0_24] : memref<18x18x128xf32, #tpu.memory_space<vmem>>, vector<16x16x128xf32>
    %24 = vector.shape_cast %23 : vector<16x16x128xf32> to vector<256x128xf32>
    %c0_25 = arith.constant 0 : index
    %c128_26 = arith.constant 128 : index
    %25 = vector.load %arg7[%c0_25, %c128_26] : memref<256x512xf32, #tpu.memory_space<vmem>>, vector<256x128xf32>
    %c0_27 = arith.constant 0 : index
    %c384 = arith.constant 384 : index
    %26 = vector.load %arg3[%c0_27, %c384] : memref<128x2048xf32, #tpu.memory_space<vmem>>, vector<128x128xf32>
    %cst_28 = arith.constant dense<0.000000e+00> : vector<256x128xf32>
    %27 = tpu.matmul %24, %26, %cst_28 {dimension_numbers = #tpu.dot_dimension_numbers<[1], [0], [0], [1], [0, 0, 1, 1], [], []>} : vector<256x128xf32>, vector<128x128xf32>, vector<256x128xf32> -> vector<256x128xf32>
    %28 = arith.addf %25, %27 : vector<256x128xf32>
    %c0_29 = arith.constant 0 : index
    %c128_30 = arith.constant 128 : index
    %29 = vector.load %arg7[%c0_29, %c128_30] : memref<256x512xf32, #tpu.memory_space<vmem>>, vector<256x128xf32>
    tpu.vector_store %arg7[%c0_29, %c128_30], %28 {strides = array<i32>} : memref<256x512xf32, #tpu.memory_space<vmem>>, vector<256x128xf32>,
    %c1_31 = arith.constant 1 : index
    %c0_32 = arith.constant 0 : index
    %c0_33 = arith.constant 0 : index
    %30 = vector.load %arg6[%c1_31, %c0_32, %c0_33] : memref<18x18x128xf32, #tpu.memory_space<vmem>>, vector<16x16x128xf32>
    %31 = vector.shape_cast %30 : vector<16x16x128xf32> to vector<256x128xf32>
    %c0_34 = arith.constant 0 : index
    %c0_35 = arith.constant 0 : index
    %32 = vector.load %arg7[%c0_34, %c0_35] : memref<256x512xf32, #tpu.memory_space<vmem>>, vector<256x128xf32>
    %c0_36 = arith.constant 0 : index
    %c512 = arith.constant 512 : index
    %33 = vector.load %arg3[%c0_36, %c512] : memref<128x2048xf32, #tpu.memory_space<vmem>>, vector<128x128xf32>
    %cst_37 = arith.constant dense<0.000000e+00> : vector<256x128xf32>
    %34 = tpu.matmul %31, %33, %cst_37 {dimension_numbers = #tpu.dot_dimension_numbers<[1], [0], [0], [1], [0, 0, 1, 1], [], []>} : vector<256x128xf32>, vector<128x128xf32>, vector<256x128xf32> -> vector<256x128xf32>
    %35 = arith.addf %32, %34 : vector<256x128xf32>
    %c0_38 = arith.constant 0 : index
    %c0_39 = arith.constant 0 : index
    %36 = vector.load %arg7[%c0_38, %c0_39] : memref<256x512xf32, #tpu.memory_space<vmem>>, vector<256x128xf32>
    tpu.vector_store %arg7[%c0_38, %c0_39], %35 {strides = array<i32>} : memref<256x512xf32, #tpu.memory_space<vmem>>, vector<256x128xf32>,
    %c0_40 = arith.constant 0 : index
    %c256 = arith.constant 256 : index
    %37 = vector.load %arg7[%c0_40, %c256] : memref<256x512xf32, #tpu.memory_space<vmem>>, vector<256x128xf32>
    %c0_41 = arith.constant 0 : index
    %c640 = arith.constant 640 : index
    %38 = vector.load %arg3[%c0_41, %c640] : memref<128x2048xf32, #tpu.memory_space<vmem>>, vector<128x128xf32>
    %cst_42 = arith.constant dense<0.000000e+00> : vector<256x128xf32>
    %39 = tpu.matmul %31, %38, %cst_42 {dimension_numbers = #tpu.dot_dimension_numbers<[1], [0], [0], [1], [0, 0, 1, 1], [], []>} : vector<256x128xf32>, vector<128x128xf32>, vector<256x128xf32> -> vector<256x128xf32>
    %40 = arith.addf %37, %39 : vector<256x128xf32>
    %c0_43 = arith.constant 0 : index
    %c256_44 = arith.constant 256 : index
    %41 = vector.load %arg7[%c0_43, %c256_44] : memref<256x512xf32, #tpu.memory_space<vmem>>, vector<256x128xf32>
    tpu.vector_store %arg7[%c0_43, %c256_44], %40 {strides = array<i32>} : memref<256x512xf32, #tpu.memory_space<vmem>>, vector<256x128xf32>,
    %c1_45 = arith.constant 1 : index
    %c1_46 = arith.constant 1 : index
    %c0_47 = arith.constant 0 : index
    %42 = vector.load %arg6[%c1_45, %c1_46, %c0_47] : memref<18x18x128xf32, #tpu.memory_space<vmem>>, vector<16x16x128xf32>
    %43 = vector.shape_cast %42 : vector<16x16x128xf32> to vector<256x128xf32>
    %c0_48 = arith.constant 0 : index
    %c0_49 = arith.constant 0 : index
    %44 = vector.load %arg7[%c0_48, %c0_49] : memref<256x512xf32, #tpu.memory_space<vmem>>, vector<256x512xf32>
    %c0_50 = arith.constant 0 : index
    %c768 = arith.constant 768 : index
    %45 = vector.load %arg3[%c0_50, %c768] : memref<128x2048xf32, #tpu.memory_space<vmem>>, vector<128x512xf32>
    %cst_51 = arith.constant dense<0.000000e+00> : vector<256x512xf32>
    %46 = tpu.matmul %43, %45, %cst_51 {dimension_numbers = #tpu.dot_dimension_numbers<[1], [0], [0], [1], [0, 0, 1, 1], [], []>} : vector<256x128xf32>, vector<128x512xf32>, vector<256x512xf32> -> vector<256x512xf32>
    %47 = arith.addf %44, %46 : vector<256x512xf32>
    %c0_52 = arith.constant 0 : index
    %c0_53 = arith.constant 0 : index
    %48 = vector.load %arg7[%c0_52, %c0_53] : memref<256x512xf32, #tpu.memory_space<vmem>>, vector<256x512xf32>
    tpu.vector_store %arg7[%c0_52, %c0_53], %47 {strides = array<i32>} : memref<256x512xf32, #tpu.memory_space<vmem>>, vector<256x512xf32>,
    %c1_54 = arith.constant 1 : index
    %c2_55 = arith.constant 2 : index
    %c0_56 = arith.constant 0 : index
    %49 = vector.load %arg6[%c1_54, %c2_55, %c0_56] : memref<18x18x128xf32, #tpu.memory_space<vmem>>, vector<16x16x128xf32>
    %50 = vector.shape_cast %49 : vector<16x16x128xf32> to vector<256x128xf32>
    %c0_57 = arith.constant 0 : index
    %c128_58 = arith.constant 128 : index
    %51 = vector.load %arg7[%c0_57, %c128_58] : memref<256x512xf32, #tpu.memory_space<vmem>>, vector<256x128xf32>
    %c0_59 = arith.constant 0 : index
    %c1280 = arith.constant 1280 : index
    %52 = vector.load %arg3[%c0_59, %c1280] : memref<128x2048xf32, #tpu.memory_space<vmem>>, vector<128x128xf32>
    %cst_60 = arith.constant dense<0.000000e+00> : vector<256x128xf32>
    %53 = tpu.matmul %50, %52, %cst_60 {dimension_numbers = #tpu.dot_dimension_numbers<[1], [0], [0], [1], [0, 0, 1, 1], [], []>} : vector<256x128xf32>, vector<128x128xf32>, vector<256x128xf32> -> vector<256x128xf32>
    %54 = arith.addf %51, %53 : vector<256x128xf32>
    %c0_61 = arith.constant 0 : index
    %c128_62 = arith.constant 128 : index
    %55 = vector.load %arg7[%c0_61, %c128_62] : memref<256x512xf32, #tpu.memory_space<vmem>>, vector<256x128xf32>
    tpu.vector_store %arg7[%c0_61, %c128_62], %54 {strides = array<i32>} : memref<256x512xf32, #tpu.memory_space<vmem>>, vector<256x128xf32>,
    %c0_63 = arith.constant 0 : index
    %c384_64 = arith.constant 384 : index
    %56 = vector.load %arg7[%c0_63, %c384_64] : memref<256x512xf32, #tpu.memory_space<vmem>>, vector<256x128xf32>
    %c0_65 = arith.constant 0 : index
    %c1408 = arith.constant 1408 : index
    %57 = vector.load %arg3[%c0_65, %c1408] : memref<128x2048xf32, #tpu.memory_space<vmem>>, vector<128x128xf32>
    %cst_66 = arith.constant dense<0.000000e+00> : vector<256x128xf32>
    %58 = tpu.matmul %50, %57, %cst_66 {dimension_numbers = #tpu.dot_dimension_numbers<[1], [0], [0], [1], [0, 0, 1, 1], [], []>} : vector<256x128xf32>, vector<128x128xf32>, vector<256x128xf32> -> vector<256x128xf32>
    %59 = arith.addf %56, %58 : vector<256x128xf32>
    %c0_67 = arith.constant 0 : index
    %c384_68 = arith.constant 384 : index
    %60 = vector.load %arg7[%c0_67, %c384_68] : memref<256x512xf32, #tpu.memory_space<vmem>>, vector<256x128xf32>
    tpu.vector_store %arg7[%c0_67, %c384_68], %59 {strides = array<i32>} : memref<256x512xf32, #tpu.memory_space<vmem>>, vector<256x128xf32>,
    %c2_69 = arith.constant 2 : index
    %c0_70 = arith.constant 0 : index
    %c0_71 = arith.constant 0 : index
    %61 = vector.load %arg6[%c2_69, %c0_70, %c0_71] : memref<18x18x128xf32, #tpu.memory_space<vmem>>, vector<16x16x128xf32>
    %62 = vector.shape_cast %61 : vector<16x16x128xf32> to vector<256x128xf32>
    %c0_72 = arith.constant 0 : index
    %c256_73 = arith.constant 256 : index
    %63 = vector.load %arg7[%c0_72, %c256_73] : memref<256x512xf32, #tpu.memory_space<vmem>>, vector<256x128xf32>
    %c0_74 = arith.constant 0 : index
    %c1536 = arith.constant 1536 : index
    %64 = vector.load %arg3[%c0_74, %c1536] : memref<128x2048xf32, #tpu.memory_space<vmem>>, vector<128x128xf32>
    %cst_75 = arith.constant dense<0.000000e+00> : vector<256x128xf32>
    %65 = tpu.matmul %62, %64, %cst_75 {dimension_numbers = #tpu.dot_dimension_numbers<[1], [0], [0], [1], [0, 0, 1, 1], [], []>} : vector<256x128xf32>, vector<128x128xf32>, vector<256x128xf32> -> vector<256x128xf32>
    %66 = arith.addf %63, %65 : vector<256x128xf32>
    %c0_76 = arith.constant 0 : index
    %c256_77 = arith.constant 256 : index
    %67 = vector.load %arg7[%c0_76, %c256_77] : memref<256x512xf32, #tpu.memory_space<vmem>>, vector<256x128xf32>
    tpu.vector_store %arg7[%c0_76, %c256_77], %66 {strides = array<i32>} : memref<256x512xf32, #tpu.memory_space<vmem>>, vector<256x128xf32>,
    %c2_78 = arith.constant 2 : index
    %c1_79 = arith.constant 1 : index
    %c0_80 = arith.constant 0 : index
    %68 = vector.load %arg6[%c2_78, %c1_79, %c0_80] : memref<18x18x128xf32, #tpu.memory_space<vmem>>, vector<16x16x128xf32>
    %69 = vector.shape_cast %68 : vector<16x16x128xf32> to vector<256x128xf32>
    %c0_81 = arith.constant 0 : index
    %c256_82 = arith.constant 256 : index
    %70 = vector.load %arg7[%c0_81, %c256_82] : memref<256x512xf32, #tpu.memory_space<vmem>>, vector<256x256xf32>
    %c0_83 = arith.constant 0 : index
    %c1664 = arith.constant 1664 : index
    %71 = vector.load %arg3[%c0_83, %c1664] : memref<128x2048xf32, #tpu.memory_space<vmem>>, vector<128x256xf32>
    %cst_84 = arith.constant dense<0.000000e+00> : vector<256x256xf32>
    %72 = tpu.matmul %69, %71, %cst_84 {dimension_numbers = #tpu.dot_dimension_numbers<[1], [0], [0], [1], [0, 0, 1, 1], [], []>} : vector<256x128xf32>, vector<128x256xf32>, vector<256x256xf32> -> vector<256x256xf32>
    %73 = arith.addf %70, %72 : vector<256x256xf32>
    %c0_85 = arith.constant 0 : index
    %c256_86 = arith.constant 256 : index
    %74 = vector.load %arg7[%c0_85, %c256_86] : memref<256x512xf32, #tpu.memory_space<vmem>>, vector<256x256xf32>
    tpu.vector_store %arg7[%c0_85, %c256_86], %73 {strides = array<i32>} : memref<256x512xf32, #tpu.memory_space<vmem>>, vector<256x256xf32>,
    %c2_87 = arith.constant 2 : index
    %c2_88 = arith.constant 2 : index
    %c0_89 = arith.constant 0 : index
    %75 = vector.load %arg6[%c2_87, %c2_88, %c0_89] : memref<18x18x128xf32, #tpu.memory_space<vmem>>, vector<16x16x128xf32>
    %76 = vector.shape_cast %75 : vector<16x16x128xf32> to vector<256x128xf32>
    %c0_90 = arith.constant 0 : index
    %c384_91 = arith.constant 384 : index
    %77 = vector.load %arg7[%c0_90, %c384_91] : memref<256x512xf32, #tpu.memory_space<vmem>>, vector<256x128xf32>
    %c0_92 = arith.constant 0 : index
    %c1920 = arith.constant 1920 : index
    %78 = vector.load %arg3[%c0_92, %c1920] : memref<128x2048xf32, #tpu.memory_space<vmem>>, vector<128x128xf32>
    %cst_93 = arith.constant dense<0.000000e+00> : vector<256x128xf32>
    %79 = tpu.matmul %76, %78, %cst_93 {dimension_numbers = #tpu.dot_dimension_numbers<[1], [0], [0], [1], [0, 0, 1, 1], [], []>} : vector<256x128xf32>, vector<128x128xf32>, vector<256x128xf32> -> vector<256x128xf32>
    %80 = arith.addf %77, %79 : vector<256x128xf32>
    %c0_94 = arith.constant 0 : index
    %c384_95 = arith.constant 384 : index
    %81 = vector.load %arg7[%c0_94, %c384_95] : memref<256x512xf32, #tpu.memory_space<vmem>>, vector<256x128xf32>
    tpu.vector_store %arg7[%c0_94, %c384_95], %80 {strides = array<i32>} : memref<256x512xf32, #tpu.memory_space<vmem>>, vector<256x128xf32>,
    %c0_96 = arith.constant 0 : index
    %c0_97 = arith.constant 0 : index
    %82 = vector.load %arg7[%c0_96, %c0_97] : memref<256x512xf32, #tpu.memory_space<vmem>>, vector<256x512xf32>
    %c0_98 = arith.constant 0 : index
    %c0_99 = arith.constant 0 : index
    %83 = vector.load %arg5[%c0_98, %c0_99] : memref<256x512xf32, #tpu.memory_space<vmem>>, vector<256x512xf32>
    tpu.vector_store %arg5[%c0_98, %c0_99], %82 {strides = array<i32>} : memref<256x512xf32, #tpu.memory_space<vmem>>, vector<256x512xf32>,
    return
  }
  func.func @transform_1(%arg0: i32, %arg1: i32) -> (i32, i32) {
    %c0_i32 = arith.constant 0 : i32
    %c0_i32_0 = arith.constant 0 : i32
    %c0_i32_1 = arith.constant 0 : i32
    return %c0_i32, %c0_i32_0 : i32, i32
  }
  func.func @transform_2(%arg0: i32, %arg1: i32) -> (i32, i32) {
    %c0_i32 = arith.constant 0 : i32
    %c0_i32_0 = arith.constant 0 : i32
    %c0_i32_1 = arith.constant 0 : i32
    return %c0_i32, %c0_i32_0 : i32, i32
  }
  func.func @transform_3(%arg0: i32, %arg1: i32) -> (i32, i32) {
    %c1_i32 = arith.constant 1 : i32
    %0 = arith.muli %arg0, %c1_i32 : i32
    %1 = arith.addi %0, %arg1 : i32
    %c0_i32 = arith.constant 0 : i32
    %c0_i32_0 = arith.constant 0 : i32
    return %1, %c0_i32 : i32, i32
  }
}

</mosaic_0001>

<bundles_post_ra>
// kernel: _lambda_.1
= control target key start
LH: loop header
LB: loop body
LE: loop exit
PB: predicated region body
PF: predicated region fallthrough
CT: control target
= control target key end

     0   :  { %s6873_s12 = smov 0   ;;  %s6875_s13 = smov 0   ;;  %s9311_s0 = inlined_call_operand.vmem [shape: f32[2,18,18,128], index: 0, kind: input, shape index: {}]   ;;  %s9312_s1 = inlined_call_operand.vmem [shape: f32[128,2048], index: 1, kind: input, shape index: {}]   ;;  %s9313_s2 = inlined_call_operand.vmem [shape: f32[1,512], index: 2, kind: input, shape index: {}]   ;;  %s9314_s3 = inlined_call_operand.vmem [shape: f32[512,512], index: 3, kind: output, shape index: {}]  }
   0x1   :  { %s6877_s14 = smov 0  }
   0x2 LB: > { %s25_s15 = sadd.s32 1, %s6846_s13  ;;  %p5749_p0 = scmp.ge.s32.totalorder %s6850_s14, 1  ;;  %s6850_s14 = sphi %s6877_s14, %s13_s14   ;;  %s6846_s13 = sphi %s6875_s13, %s9536_s13   ;;  %s6842_s12 = sphi %s6873_s12, %s9535_s12  }
   0x3   : > { %p27_p1 = scmp.ge.s32.totalorder %s25_s15, 2  ;;  %p117_p2 = scmp.lt.s32.totalorder %s6850_s14, 3 }
   0x5   : > { %s9538_s15 = smov (%p27_p1, %s25_s15), 0  ;;  %p118_p3 = pnand %p5749_p0, %p117_p2 }
   0x7   : > { %121 = sbr.rel (%p118_p3) target bundleno = 791 (0x317), region = 28 }
   0xc   : > { %s5750_s16 = sshll.u32 %s6842_s12, 5  ;;  %s147_s17 = smul.u32 432, %s6842_s12 }
   0xd   : > { %p138_p4 = scmp.lt.s32.totalorder %s5750_s16, 63 }
   0xe   : > { %s6894_s20 = scalar_lea.vmem %s9311_s0, %s147_s17 }
   0xf   : > { %s9540_s16 = smov (!%p138_p4, %s5750_s16), 63  ;;  %v222_v0 = vld [vmem:[%s6894_s20] sm:$0xff]  ;;  %v224_v1 = vld [vmem:[%s6894_s20 + $0x8] sm:$0xff]  ;;  %v226_v2 = vld [vmem:[%s6894_s20 + $0x18] sm:$0xff] }
  0x10   : > { %223 = vst [vmem:[#allocation2] sm:$0xff] %v222_v0  ;;  %225 = vst [vmem:[#allocation2 + $0x8] sm:$0xff] %v224_v1  ;;  %v228_v3 = vld [vmem:[%s6894_s20 + $0x20] sm:$0xff]  ;;  %v230_v4 = vld [vmem:[%s6894_s20 + $0x30] sm:$0xff]  ;;  %s5774_s21 = sshll.u32 %s9540_s16, 5 }
  0x11   : > { %227 = vst [vmem:[#allocation2 + $0x18] sm:$0xff] %v226_v2  ;;  %v232_v5 = vld [vmem:[%s6894_s20 + $0x38] sm:$0xff]  ;;  %229 = vst [vmem:[#allocation2 + $0x20] sm:$0xff] %v228_v3  ;;  %v234_v6 = vld [vmem:[%s6894_s20 + $0x48] sm:$0xff]  ;;  %s6908_s24 = scalar_lea.vmem %s9314_s3, %s5774_s21 }
  0x12   : > { %231 = vst [vmem:[#allocation2 + $0x30] sm:$0xff] %v230_v4  ;;  %233 = vst [vmem:[#allocation2 + $0x38] sm:$0xff] %v232_v5  ;;  %v236_v7 = vld [vmem:[%s6894_s20 + $0x50] sm:$0xff]  ;;  %v238_v8 = vld [vmem:[%s6894_s20 + $0x60] sm:$0xff] }
  0x13   : > { %235 = vst [vmem:[#allocation2 + $0x48] sm:$0xff] %v234_v6  ;;  %237 = vst [vmem:[#allocation2 + $0x50] sm:$0xff] %v236_v7  ;;  %v240_v9 = vld [vmem:[%s6894_s20 + $0x68] sm:$0xff]  ;;  %v242_v10 = vld [vmem:[%s6894_s20 + $0x78] sm:$0xff] }
  0x14   : > { %239 = vst [vmem:[#allocation2 + $0x60] sm:$0xff] %v238_v8  ;;  %v244_v11 = vld [vmem:[%s6894_s20 + $0x80] sm:$0xff]  ;;  %241 = vst [vmem:[#allocation2 + $0x68] sm:$0xff] %v240_v9  ;;  %v246_v12 = vld [vmem:[%s6894_s20 + $0x90] sm:$0xff] }
  0x15   : > { %243 = vst [vmem:[#allocation2 + $0x78] sm:$0xff] %v242_v10  ;;  %245 = vst [vmem:[#allocation2 + $0x80] sm:$0xff] %v244_v11  ;;  %v248_v13 = vld [vmem:[%s6894_s20 + $0x98] sm:$0xff]  ;;  %v250_v14 = vld [vmem:[%s6894_s20 + $0xa8] sm:$0xff] }
  0x16   : > { %247 = vst [vmem:[#allocation2 + $0x90] sm:$0xff] %v246_v12  ;;  %249 = vst [vmem:[#allocation2 + $0x98] sm:$0xff] %v248_v13  ;;  %v252_v15 = vld [vmem:[%s6894_s20 + $0xb0] sm:$0xff]  ;;  %v254_v16 = vld [vmem:[%s6894_s20 + $0xc0] sm:$0xff] }
  0x17   : > { %251 = vst [vmem:[#allocation2 + $0xa8] sm:$0xff] %v250_v14  ;;  %v256_v17 = vld [vmem:[%s6894_s20 + $0xc8] sm:$0xff]  ;;  %253 = vst [vmem:[#allocation2 + $0xb0] sm:$0xff] %v252_v15  ;;  %v258_v18 = vld [vmem:[%s6894_s20 + $0xd8] sm:$0xff] }
  0x18   : > { %255 = vst [vmem:[#allocation2 + $0xc0] sm:$0xff] %v254_v16  ;;  %257 = vst [vmem:[#allocation2 + $0xc8] sm:$0xff] %v256_v17  ;;  %v260_v19 = vld [vmem:[%s6894_s20 + $0xe0] sm:$0xff]  ;;  %v262_v20 = vld [vmem:[%s6894_s20 + $0xf0] sm:$0xff] }
  0x19   : > { %259 = vst [vmem:[#allocation2 + $0xd8] sm:$0xff] %v258_v18  ;;  %261 = vst [vmem:[#allocation2 + $0xe0] sm:$0xff] %v260_v19  ;;  %v264_v21 = vld [vmem:[%s6894_s20 + $0xf8] sm:$0xff]  ;;  %v266_v22 = vld [vmem:[%s6894_s20 + $0x108] sm:$0xff] }
  0x1a   : > { %263 = vst [vmem:[#allocation2 + $0xf0] sm:$0xff] %v262_v20  ;;  %v268_v23 = vld [vmem:[%s6894_s20 + $0x110] sm:$0xff]  ;;  %265 = vst [vmem:[#allocation2 + $0xf8] sm:$0xff] %v264_v21  ;;  %v270_v24 = vld [vmem:[%s6894_s20 + $0x120] sm:$0xff] }
  0x1b   : > { %267 = vst [vmem:[#allocation2 + $0x108] sm:$0xff] %v266_v22  ;;  %269 = vst [vmem:[#allocation2 + $0x110] sm:$0xff] %v268_v23  ;;  %v272_v25 = vld [vmem:[%s6894_s20 + $0x128] sm:$0xff]  ;;  %v274_v26 = vld [vmem:[%s6894_s20 + $0x138] sm:$0xff] }
  0x1c   : > { %271 = vst [vmem:[#allocation2 + $0x120] sm:$0xff] %v270_v24  ;;  %273 = vst [vmem:[#allocation2 + $0x128] sm:$0xff] %v272_v25  ;;  %v276_v27 = vld [vmem:[%s6894_s20 + $0x140] sm:$0xff]  ;;  %v278_v28 = vld [vmem:[%s6894_s20 + $0x150] sm:$0xff] }
  0x1d   : > { %275 = vst [vmem:[#allocation2 + $0x138] sm:$0xff] %v274_v26  ;;  %v280_v29 = vld [vmem:[%s6894_s20 + $0x158] sm:$0xff]  ;;  %277 = vst [vmem:[#allocation2 + $0x140] sm:$0xff] %v276_v27  ;;  %v282_v30 = vld [vmem:[%s6894_s20 + $0x168] sm:$0xff] }
  0x1e   : > { %279 = vst [vmem:[#allocation2 + $0x150] sm:$0xff] %v278_v28  ;;  %281 = vst [vmem:[#allocation2 + $0x158] sm:$0xff] %v280_v29  ;;  %v284_v31 = vld [vmem:[%s6894_s20 + $0x170] sm:$0xff]  ;;  %v286_v32 = vld [vmem:[%s6894_s20 + $0x180] sm:$0xff] }
  0x1f   : > { %283 = vst [vmem:[#allocation2 + $0x168] sm:$0xff] %v282_v30  ;;  %285 = vst [vmem:[#allocation2 + $0x170] sm:$0xff] %v284_v31  ;;  %v288_v33 = vld [vmem:[%s6894_s20 + $0x188] sm:$0xff]  ;;  %v290_v34 = vld [vmem:[%s6894_s20 + $0x198] sm:$0xff] }
  0x20   : > { %287 = vst [vmem:[#allocation2 + $0x180] sm:$0xff] %v286_v32  ;;  %v292_v35 = vld [vmem:[%s6894_s20 + $0x1a0] sm:$0xff]  ;;  %289 = vst [vmem:[#allocation2 + $0x188] sm:$0xff] %v288_v33  ;;  %v5753_v36 = vld [vmem:[%s6894_s20 + $0x10] sm:$0x3] }
  0x21   : > { %291 = vst [vmem:[#allocation2 + $0x198] sm:$0xff] %v290_v34  ;;  %293 = vst [vmem:[#allocation2 + $0x1a0] sm:$0xff] %v292_v35  ;;  %v5754_v37 = vld [vmem:[%s6894_s20 + $0x28] sm:$0x3]  ;;  %v5755_v38 = vld [vmem:[%s6894_s20 + $0x40] sm:$0x3] }
  0x22   : > { %305 = vst [vmem:[#allocation2 + $0x10] sm:$0x3] %v5753_v36  ;;  %307 = vst [vmem:[#allocation2 + $0x28] sm:$0x3] %v5754_v37  ;;  %v5756_v39 = vld [vmem:[%s6894_s20 + $0x58] sm:$0x3] }
  0x23   : > { %309 = vst [vmem:[#allocation2 + $0x40] sm:$0x3] %v5755_v38  ;;  %v5757_v40 = vld [vmem:[%s6894_s20 + $0x70] sm:$0x3]  ;;  %v5758_v41 = vld [vmem:[%s6894_s20 + $0x88] sm:$0x3] }
  0x24   : > { %311 = vst [vmem:[#allocation2 + $0x58] sm:$0x3] %v5756_v39  ;;  %313 = vst [vmem:[#allocation2 + $0x70] sm:$0x3] %v5757_v40  ;;  %v5759_v42 = vld [vmem:[%s6894_s20 + $0xa0] sm:$0x3] }
  0x25   : > { %315 = vst [vmem:[#allocation2 + $0x88] sm:$0x3] %v5758_v41  ;;  %v5760_v43 = vld [vmem:[%s6894_s20 + $0xb8] sm:$0x3]  ;;  %v5761_v44 = vld [vmem:[%s6894_s20 + $0xd0] sm:$0x3] }
  0x26   : > { %317 = vst [vmem:[#allocation2 + $0xa0] sm:$0x3] %v5759_v42  ;;  %319 = vst [vmem:[#allocation2 + $0xb8] sm:$0x3] %v5760_v43  ;;  %v5762_v45 = vld [vmem:[%s6894_s20 + $0xe8] sm:$0x3] }
  0x27   : > { %321 = vst [vmem:[#allocation2 + $0xd0] sm:$0x3] %v5761_v44  ;;  %v5763_v46 = vld [vmem:[%s6894_s20 + $0x100] sm:$0x3]  ;;  %v5764_v47 = vld [vmem:[%s6894_s20 + $0x118] sm:$0x3] }
  0x28   : > { %323 = vst [vmem:[#allocation2 + $0xe8] sm:$0x3] %v5762_v45  ;;  %325 = vst [vmem:[#allocation2 + $0x100] sm:$0x3] %v5763_v46  ;;  %v5765_v48 = vld [vmem:[%s6894_s20 + $0x130] sm:$0x3] }
  0x29   : > { %327 = vst [vmem:[#allocation2 + $0x118] sm:$0x3] %v5764_v47  ;;  %v5766_v49 = vld [vmem:[%s6894_s20 + $0x148] sm:$0x3]  ;;  %v5767_v50 = vld [vmem:[%s6894_s20 + $0x160] sm:$0x3] }
  0x2a   : > { %329 = vst [vmem:[#allocation2 + $0x130] sm:$0x3] %v5765_v48  ;;  %331 = vst [vmem:[#allocation2 + $0x148] sm:$0x3] %v5766_v49  ;;  %v5768_v51 = vld [vmem:[%s6894_s20 + $0x178] sm:$0x3] }
  0x2b   : > { %333 = vst [vmem:[#allocation2 + $0x160] sm:$0x3] %v5767_v50  ;;  %v5769_v52 = vld [vmem:[%s6894_s20 + $0x190] sm:$0x3]  ;;  %v5770_v53 = vld [vmem:[%s6894_s20 + $0x1a8] sm:$0x3] }
  0x2c   : > { %335 = vst [vmem:[#allocation2 + $0x178] sm:$0x3] %v5768_v51  ;;  %337 = vst [vmem:[#allocation2 + $0x190] sm:$0x3] %v5769_v52 }
  0x2d   : > { %339 = vst [vmem:[#allocation2 + $0x1a8] sm:$0x3] %v5770_v53 }
  0x2e   : > { %343 = vsyncadd [#allocation4], 5184 }
  0x2f   : > { %6838 = dma.done.wait [#allocation4], 5184 }
  0x30   : > { %6839 = vsyncadd [#allocation4], 4294962112  ;;  %v9315_v54 = vmov 0.0   ;;  %v577_v55 = vld [vmem:[%s9312_s1 + $0x780] sm:$0xff]  ;;  %v994_v56 = vld [vmem:[%s9312_s1 + $0x790] sm:$0xff] }
  0x31   : > { %1059 = vmatprep.mubr.f32.mxu1 %v9315_v54  ;;  %v993_v57 = vld [vmem:[%s9312_s1 + $0x788] sm:$0xff]  ;;  %6159 = vmatprep.subr.mxu0 %v577_v55  ;;  %v576_v58 = vld [vmem:[%s9312_s1 + $0x700] sm:$0xff]  ;;  %v992_v59 = vld [vmem:[%s9312_s1 + $0x710] sm:$0xff] }
  0x32   : > { %995 = vmatprep.subr.mxu1 %v994_v56  ;;  %v991_v60 = vld [vmem:[%s9312_s1 + $0x708] sm:$0xff]  ;;  %6160 = vmatpush3.msra.mxu0 %v577_v55  ;;  %v575_v61 = vld [vmem:[%s9312_s1 + $0x680] sm:$0xff]  ;;  %v990_v62 = vld [vmem:[%s9312_s1 + $0x690] sm:$0xff] }
  0x33   : > { %996 = vmatpush1.msra.mxu1 %v993_v57  ;;  %6161 = vmatprep.subr.mxu0 %v576_v58  ;;  %v989_v63 = vld [vmem:[%s9312_s1 + $0x688] sm:$0xff]  ;;  %v574_v0 = vld [vmem:[%s9312_s1 + $0x600] sm:$0xff]  ;;  %v988_v1 = vld [vmem:[%s9312_s1 + $0x610] sm:$0xff] }
  0x34   : > { %997 = vmatprep.subr.mxu1 %v992_v59  ;;  %6162 = vmatpush3.msra.mxu0 %v576_v58  ;;  %v987_v2 = vld [vmem:[%s9312_s1 + $0x608] sm:$0xff]  ;;  %v573_v3 = vld [vmem:[%s9312_s1 + $0x580] sm:$0xff]  ;;  %v986_v4 = vld [vmem:[%s9312_s1 + $0x590] sm:$0xff] }
  0x35   : > { %998 = vmatpush1.msra.mxu1 %v991_v60  ;;  %6163 = vmatprep.subr.mxu0 %v575_v61  ;;  %v985_v5 = vld [vmem:[%s9312_s1 + $0x588] sm:$0xff]  ;;  %v572_v6 = vld [vmem:[%s9312_s1 + $0x500] sm:$0xff]  ;;  %v984_v7 = vld [vmem:[%s9312_s1 + $0x510] sm:$0xff] }
  0x36   : > { %999 = vmatprep.subr.mxu1 %v990_v62  ;;  %6164 = vmatpush3.msra.mxu0 %v575_v61  ;;  %v983_v8 = vld [vmem:[%s9312_s1 + $0x508] sm:$0xff]  ;;  %v571_v9 = vld [vmem:[%s9312_s1 + $0x480] sm:$0xff]  ;;  %v982_v10 = vld [vmem:[%s9312_s1 + $0x490] sm:$0xff] }
  0x37   : > { %1000 = vmatpush1.msra.mxu1 %v989_v63  ;;  %6165 = vmatprep.subr.mxu0 %v574_v0  ;;  %v981_v11 = vld [vmem:[%s9312_s1 + $0x488] sm:$0xff]  ;;  %v570_v12 = vld [vmem:[%s9312_s1 + $0x400] sm:$0xff]  ;;  %v980_v13 = vld [vmem:[%s9312_s1 + $0x410] sm:$0xff] }
  0x38   : > { %1001 = vmatprep.subr.mxu1 %v988_v1  ;;  %6166 = vmatpush3.msra.mxu0 %v574_v0  ;;  %v979_v14 = vld [vmem:[%s9312_s1 + $0x408] sm:$0xff]  ;;  %v569_v15 = vld [vmem:[%s9312_s1 + $0x380] sm:$0xff]  ;;  %v978_v16 = vld [vmem:[%s9312_s1 + $0x390] sm:$0xff] }
  0x39   : > { %1002 = vmatpush1.msra.mxu1 %v987_v2  ;;  %6167 = vmatprep.subr.mxu0 %v573_v3  ;;  %v977_v17 = vld [vmem:[%s9312_s1 + $0x388] sm:$0xff]  ;;  %v568_v18 = vld [vmem:[%s9312_s1 + $0x300] sm:$0xff]  ;;  %v976_v19 = vld [vmem:[%s9312_s1 + $0x310] sm:$0xff] }
  0x3a   : > { %1003 = vmatprep.subr.mxu1 %v986_v4  ;;  %6168 = vmatpush3.msra.mxu0 %v573_v3  ;;  %v975_v20 = vld [vmem:[%s9312_s1 + $0x308] sm:$0xff]  ;;  %v567_v21 = vld [vmem:[%s9312_s1 + $0x280] sm:$0xff]  ;;  %v974_v22 = vld [vmem:[%s9312_s1 + $0x290] sm:$0xff] }
  0x3b   : > { %1004 = vmatpush1.msra.mxu1 %v985_v5  ;;  %6169 = vmatprep.subr.mxu0 %v572_v6  ;;  %v973_v23 = vld [vmem:[%s9312_s1 + $0x288] sm:$0xff]  ;;  %v566_v24 = vld [vmem:[%s9312_s1 + $0x200] sm:$0xff]  ;;  %v972_v25 = vld [vmem:[%s9312_s1 + $0x210] sm:$0xff] }
  0x3c   : > { %1005 = vmatprep.subr.mxu1 %v984_v7  ;;  %6170 = vmatpush3.msra.mxu0 %v572_v6  ;;  %v971_v26 = vld [vmem:[%s9312_s1 + $0x208] sm:$0xff]  ;;  %v565_v27 = vld [vmem:[%s9312_s1 + $0x180] sm:$0xff]  ;;  %v970_v28 = vld [vmem:[%s9312_s1 + $0x190] sm:$0xff] }
  0x3d   : > { %1006 = vmatpush1.msra.mxu1 %v983_v8  ;;  %6171 = vmatprep.subr.mxu0 %v571_v9  ;;  %v969_v29 = vld [vmem:[%s9312_s1 + $0x188] sm:$0xff]  ;;  %v564_v30 = vld [vmem:[%s9312_s1 + $0x100] sm:$0xff]  ;;  %v968_v31 = vld [vmem:[%s9312_s1 + $0x110] sm:$0xff] }
  0x3e   : > { %1007 = vmatprep.subr.mxu1 %v982_v10  ;;  %6172 = vmatpush3.msra.mxu0 %v571_v9  ;;  %v967_v32 = vld [vmem:[%s9312_s1 + $0x108] sm:$0xff]  ;;  %v563_v33 = vld [vmem:[%s9312_s1 + $0x80] sm:$0xff]  ;;  %v966_v34 = vld [vmem:[%s9312_s1 + $0x90] sm:$0xff] }
  0x3f   : > { %1008 = vmatpush1.msra.mxu1 %v981_v11  ;;  %6173 = vmatprep.subr.mxu0 %v570_v12  ;;  %v965_v35 = vld [vmem:[%s9312_s1 + $0x88] sm:$0xff]  ;;  %v562_v36 = vld [vmem:[%s9312_s1] sm:$0xff]  ;;  %v964_v37 = vld [vmem:[%s9312_s1 + $0x10] sm:$0xff] }
  0x40   : > { %1009 = vmatprep.subr.mxu1 %v980_v13  ;;  %6174 = vmatpush3.msra.mxu0 %v570_v12  ;;  %v498_v38 = vld [vmem:[#allocation2] sm:$0xff]  ;;  %v963_v39 = vld [vmem:[%s9312_s1 + $0x8] sm:$0xff]  ;;  %v1459_v43 = vld [vmem:[%s9312_s1 + $0x798] sm:$0xff] }
  0x41   : > { %1010 = vmatpush1.msra.mxu1 %v979_v14  ;;  %6175 = vmatprep.subr.mxu0 %v569_v15  ;;  %v499_v40 = vld [vmem:[#allocation2 + $0x8] sm:$0xff]  ;;  %v7106_v44 = vld [vmem:[#allocation2 + $0x18] sm:$0xff]  ;;  %v7111_v46 = vld [vmem:[#allocation2 + $0x20] sm:$0xff] }
  0x42   : > { %1011 = vmatprep.subr.mxu1 %v978_v16  ;;  %6176 = vmatpush3.msra.mxu0 %v569_v15  ;;  %v867_v41 = vld [vmem:[#allocation2 + $0x1] sm:$0xff]  ;;  %v868_v47 = vld [vmem:[#allocation2 + $0x9] sm:$0xff]  ;;  %v1458_v48 = vld [vmem:[%s9312_s1 + $0x718] sm:$0xff] }
  0x43   : > { %1012 = vmatpush1.msra.mxu1 %v977_v17  ;;  %6177 = vmatprep.subr.mxu0 %v568_v18  ;;  %v2166_v42 = vld [vmem:[%s9312_s1 + $0x7a8] sm:$0xff]  ;;  %v7118_v49 = vld [vmem:[#allocation2 + $0x30] sm:$0xff]  ;;  %v1457_v50 = vld [vmem:[%s9312_s1 + $0x698] sm:$0xff] }
  0x44   : > { %1013 = vmatprep.subr.mxu1 %v976_v19  ;;  %6178 = vmatpush3.msra.mxu0 %v568_v18  ;;  %v2165_v45 = vld [vmem:[%s9312_s1 + $0x728] sm:$0xff]  ;;  %v7125_v51 = vld [vmem:[#allocation2 + $0x38] sm:$0xff]  ;;  %v7139_v57 = vld [vmem:[#allocation2 + $0x50] sm:$0xff] }
  0x45   : > { %1014 = vmatpush1.msra.mxu1 %v975_v20  ;;  %6179 = vmatprep.subr.mxu0 %v567_v21  ;;  %v869_v52 = vld [vmem:[#allocation2 + $0x19] sm:$0xff]  ;;  %v7128_v53 = vld [vmem:[#allocation2 + $0x48] sm:$0xff]  ;;  %v871_v63 = vld [vmem:[#allocation2 + $0x31] sm:$0xff] }
  0x46   : > { %1015 = vmatprep.subr.mxu1 %v974_v22  ;;  %6180 = vmatpush3.msra.mxu0 %v567_v21  ;;  %v2164_v55 = vld [vmem:[%s9312_s1 + $0x6a8] sm:$0xff]  ;;  %v1456_v56 = vld [vmem:[%s9312_s1 + $0x618] sm:$0xff]  ;;  %v7141_v59 = vld [vmem:[#allocation2 + $0x60] sm:$0xff] }
  0x47   : > { %1016 = vmatpush1.msra.mxu1 %v973_v23  ;;  %6181 = vmatprep.subr.mxu0 %v566_v24  ;;  %v870_v58 = vld [vmem:[#allocation2 + $0x21] sm:$0xff]  ;;  %v1455_v61 = vld [vmem:[%s9312_s1 + $0x598] sm:$0xff]  ;;  %v7167_v5 = vld [vmem:[#allocation2 + $0x90] sm:$0xff] }
  0x48   : > { %1017 = vmatprep.subr.mxu1 %v972_v25  ;;  %6182 = vmatpush3.msra.mxu0 %v566_v24  ;;  %v2163_v60 = vld [vmem:[%s9312_s1 + $0x628] sm:$0xff]  ;;  %v7154_v0 = vld [vmem:[#allocation2 + $0x78] sm:$0xff]  ;;  %v7165_v3 = vld [vmem:[#allocation2 + $0x80] sm:$0xff] }
  0x49   : > { %1018 = vmatpush1.msra.mxu1 %v971_v26  ;;  %6183 = vmatprep.subr.mxu0 %v565_v27  ;;  %v7152_v62 = vld [vmem:[#allocation2 + $0x68] sm:$0xff]  ;;  %v1454_v2 = vld [vmem:[%s9312_s1 + $0x518] sm:$0xff]  ;;  %v7191_v13 = vld [vmem:[#allocation2 + $0xb0] sm:$0xff] }
  0x4a   : > { %1019 = vmatprep.subr.mxu1 %v970_v28  ;;  %6184 = vmatpush3.msra.mxu0 %v565_v27  ;;  %v2162_v1 = vld [vmem:[%s9312_s1 + $0x5a8] sm:$0xff]  ;;  %v872_v4 = vld [vmem:[#allocation2 + $0x39] sm:$0xff]  ;;  %v874_v14 = vld [vmem:[#allocation2 + $0x51] sm:$0xff] }
  0x4b   : > { %1020 = vmatpush1.msra.mxu1 %v969_v29  ;;  %6185 = vmatprep.subr.mxu0 %v564_v30  ;;  %v2161_v6 = vld [vmem:[%s9312_s1 + $0x528] sm:$0xff]  ;;  %v1453_v7 = vld [vmem:[%s9312_s1 + $0x498] sm:$0xff]  ;;  %v7193_v15 = vld [vmem:[#allocation2 + $0xc0] sm:$0xff] }
  0x4c   : > { %1021 = vmatprep.subr.mxu1 %v968_v31  ;;  %6186 = vmatpush3.msra.mxu0 %v564_v30  ;;  %v7178_v8 = vld [vmem:[#allocation2 + $0x98] sm:$0xff]  ;;  %v873_v9 = vld [vmem:[#allocation2 + $0x49] sm:$0xff]  ;;  %v875_v19 = vld [vmem:[#allocation2 + $0x61] sm:$0xff] }
  0x4d   : > { %1022 = vmatpush1.msra.mxu1 %v967_v32  ;;  %6187 = vmatprep.subr.mxu0 %v563_v33  ;;  %v7180_v10 = vld [vmem:[#allocation2 + $0xa8] sm:$0xff]  ;;  %v1452_v12 = vld [vmem:[%s9312_s1 + $0x418] sm:$0xff]  ;;  %v7217_v23 = vld [vmem:[#allocation2 + $0xe0] sm:$0xff] }
  0x4e   : > { %1023 = vmatprep.subr.mxu1 %v966_v34  ;;  %6188 = vmatpush3.msra.mxu0 %v563_v33  ;;  %v2160_v11 = vld [vmem:[%s9312_s1 + $0x4a8] sm:$0xff]  ;;  %v1451_v17 = vld [vmem:[%s9312_s1 + $0x398] sm:$0xff]  ;;  %v7219_v25 = vld [vmem:[#allocation2 + $0xf0] sm:$0xff] }
  0x4f   : > { %1024 = vmatpush1.msra.mxu1 %v965_v35  ;;  %6189 = vmatprep.subr.mxu0 %v562_v36  ;;  %v2159_v16 = vld [vmem:[%s9312_s1 + $0x428] sm:$0xff]  ;;  %v7206_v20 = vld [vmem:[#allocation2 + $0xd8] sm:$0xff]  ;;  %v7243_v33 = vld [vmem:[#allocation2 + $0x110] sm:$0xff] }
  0x50   : > { %1025 = vmatprep.subr.mxu1 %v964_v37  ;;  %6190 = vmatpush3.msra.mxu0 %v562_v36  ;;  %v7204_v18 = vld [vmem:[#allocation2 + $0xc8] sm:$0xff]  ;;  %v1450_v22 = vld [vmem:[%s9312_s1 + $0x318] sm:$0xff]  ;;  %v7245_v35 = vld [vmem:[#allocation2 + $0x120] sm:$0xff] }
  0x51   : > { %6191 = vmatprep.mubr.f32.mxu0 %v498_v38  ;;  %1026 = vmatpush1.msra.mxu1 %v963_v39  ;;  %v2158_v21 = vld [vmem:[%s9312_s1 + $0x3a8] sm:$0xff]  ;;  %v1449_v27 = vld [vmem:[%s9312_s1 + $0x298] sm:$0xff] }
  0x52   : > { %6192 = vmatmul.mubr.f32.vlgmr.msra.gmra.mxu0 %v499_v40  ;;  %1060 = vmatmul.mubr.f32.vlgmr.msra.gmra.mxu1 %v867_v41  ;;  %v876_v24 = vld [vmem:[#allocation2 + $0x69] sm:$0xff]  ;;  %v7230_v28 = vld [vmem:[#allocation2 + $0xf8] sm:$0xff]  ;;  %v878_v34 = vld [vmem:[#allocation2 + $0x81] sm:$0xff] }
  0x53   : > { %6399 = vmatprep.subr.mxu1 %v2166_v42  ;;  %6239 = vmatprep.subr.mxu0 %v1459_v43  ;;  %v2157_v26 = vld [vmem:[%s9312_s1 + $0x328] sm:$0xff]  ;;  %v877_v29 = vld [vmem:[#allocation2 + $0x79] sm:$0xff]  ;;  %v879_v39 = vld [vmem:[#allocation2 + $0x91] sm:$0xff] }
  0x54   : > { %6400 = vmatpush3.msra.mxu1 %v2166_v42  ;;  %6194 = vmatprep.mubr.f32.mxu0 %v7106_v44  ;;  %v7232_v30 = vld [vmem:[#allocation2 + $0x108] sm:$0xff]  ;;  %v1448_v32 = vld [vmem:[%s9312_s1 + $0x218] sm:$0xff] }
  0x55   : > { %1065 = vmatprep.mubr.f32.mxu1 %v9315_v54  ;;  %6240 = vmatpush3.msra.mxu0 %v1459_v43  ;;  %v2156_v31 = vld [vmem:[%s9312_s1 + $0x2a8] sm:$0xff]  ;;  %v1447_v37 = vld [vmem:[%s9312_s1 + $0x198] sm:$0xff]  ;;  %v7269_v43 = vld [vmem:[#allocation2 + $0x140] sm:$0xff] }
  0x56   : > { %6401 = vmatprep.subr.mxu1 %v2165_v45  ;;  %6195 = vmatmul.mubr.f32.gmra.mxu0 %v7111_v46  ;;  %v2155_v36 = vld [vmem:[%s9312_s1 + $0x228] sm:$0xff]  ;;  %v7258_v40 = vld [vmem:[#allocation2 + $0x138] sm:$0xff] }
  0x57   : > { %1066 = vmatmul.mubr.f32.gmra.mxu1 %v868_v47  ;;  %6241 = vmatprep.subr.mxu0 %v1458_v48  ;;  %v7256_v38 = vld [vmem:[#allocation2 + $0x128] sm:$0xff]  ;;  %v1446_v42 = vld [vmem:[%s9312_s1 + $0x118] sm:$0xff]  ;;  %v7271_v47 = vld [vmem:[#allocation2 + $0x150] sm:$0xff] }
  0x58   : > { %6197 = vmatprep.mubr.f32.mxu0 %v7118_v49  ;;  %1071 = vmatprep.mubr.f32.mxu1 %v9315_v54  ;;  %v2154_v41 = vld [vmem:[%s9312_s1 + $0x1a8] sm:$0xff] }
  0x59   : > { %6242 = vmatpush3.msra.mxu0 %v1458_v48  ;;  %6402 = vmatpush3.msra.mxu1 %v2165_v45  ;;  %v880_v45 = vld [vmem:[#allocation2 + $0x99] sm:$0xff]  ;;  %v2153_v48 = vld [vmem:[%s9312_s1 + $0x128] sm:$0xff] }
  0x5a   : > { %6243 = vmatprep.subr.mxu0 %v1457_v50  ;;  %6198 = vmatmul.mubr.f32.gmra.mxu0 %v7125_v51 }
  0x5b   : > { %1072 = vmatmul.mubr.f32.gmra.mxu1 %v869_v52  ;;  %6200 = vmatprep.mubr.f32.mxu0 %v7128_v53  ;;  %v7282_v52 = vld [vmem:[#allocation2 + $0x158] sm:$0xff] }
  0x5c   : > { %1077 = vmatprep.mubr.f32.mxu1 %v9315_v54  ;;  %6244 = vmatpush3.msra.mxu0 %v1457_v50  ;;  %v1445_v50 = vld [vmem:[%s9312_s1 + $0x98] sm:$0xff] }
  0x5d   : > { %6403 = vmatprep.subr.mxu1 %v2164_v55  ;;  %6245 = vmatprep.subr.mxu0 %v1456_v56 }
  0x5e   : > { %6404 = vmatpush3.msra.mxu1 %v2164_v55  ;;  %6201 = vmatmul.mubr.f32.gmra.mxu0 %v7139_v57  ;;  %v881_v55 = vld [vmem:[#allocation2 + $0xa9] sm:$0xff] }
  0x5f   : > { %1078 = vmatmul.mubr.f32.gmra.mxu1 %v870_v58  ;;  %6203 = vmatprep.mubr.f32.mxu0 %v7141_v59  ;;  %v2152_v58 = vld [vmem:[%s9312_s1 + $0xa8] sm:$0xff] }
  0x60   : > { %1083 = vmatprep.mubr.f32.mxu1 %v9315_v54  ;;  %6246 = vmatpush3.msra.mxu0 %v1456_v56  ;;  %v7284_v56 = vld [vmem:[#allocation2 + $0x168] sm:$0xff] }
  0x61   : > { %6405 = vmatprep.subr.mxu1 %v2163_v60  ;;  %6247 = vmatprep.subr.mxu0 %v1455_v61 }
  0x62   : > { %6406 = vmatpush3.msra.mxu1 %v2163_v60  ;;  %6204 = vmatmul.mubr.f32.gmra.mxu0 %v7152_v62  ;;  %v1444_v60 = vld [vmem:[%s9312_s1 + $0x18] sm:$0xff] }
  0x63   : > { %1084 = vmatmul.mubr.f32.gmra.mxu1 %v871_v63  ;;  %6206 = vmatprep.mubr.f32.mxu0 %v7154_v0  ;;  %v882_v63 = vld [vmem:[#allocation2 + $0xb1] sm:$0xff] }
  0x64   : > { %1089 = vmatprep.mubr.f32.mxu1 %v9315_v54  ;;  %6248 = vmatpush3.msra.mxu0 %v1455_v61  ;;  %v7295_v61 = vld [vmem:[#allocation2 + $0x170] sm:$0xff] }
  0x65   : > { %6407 = vmatprep.subr.mxu1 %v2162_v1  ;;  %6249 = vmatprep.subr.mxu0 %v1454_v2 }
  0x66   : > { %6408 = vmatpush3.msra.mxu1 %v2162_v1  ;;  %6207 = vmatmul.mubr.f32.gmra.mxu0 %v7165_v3  ;;  %v1380_v1 = vld [vmem:[#allocation2 + $0x2] sm:$0xff] }
  0x67   : > { %1090 = vmatmul.mubr.f32.gmra.mxu1 %v872_v4  ;;  %6209 = vmatprep.mubr.f32.mxu0 %v7167_v5  ;;  %v2151_v4 = vld [vmem:[%s9312_s1 + $0x28] sm:$0xff] }
  0x68   : > { %1095 = vmatprep.mubr.f32.mxu1 %v9315_v54  ;;  %6250 = vmatpush3.msra.mxu0 %v1454_v2  ;;  %v1829_v2 = vld [vmem:[%s9312_s1 + $0x7a0] sm:$0xff] }
  0x69   : > { %6409 = vmatprep.subr.mxu1 %v2161_v6  ;;  %6251 = vmatprep.subr.mxu0 %v1453_v7 }
  0x6a   : > { %6410 = vmatpush3.msra.mxu1 %v2161_v6  ;;  %6210 = vmatmul.mubr.f32.gmra.mxu0 %v7178_v8  ;;  %v883_v6 = vld [vmem:[#allocation2 + $0xc1] sm:$0xff] }
  0x6b   : > { %1096 = vmatmul.mubr.f32.gmra.mxu1 %v873_v9  ;;  %6212 = vmatprep.mubr.f32.mxu0 %v7180_v10  ;;  %v1382_v9 = vld [vmem:[#allocation2 + $0x1a] sm:$0xff] }
  0x6c   : > { %1101 = vmatprep.mubr.f32.mxu1 %v9315_v54  ;;  %6252 = vmatpush3.msra.mxu0 %v1453_v7  ;;  %v1381_v7 = vld [vmem:[#allocation2 + $0xa] sm:$0xff] }
  0x6d   : > { %6411 = vmatprep.subr.mxu1 %v2160_v11  ;;  %6253 = vmatprep.subr.mxu0 %v1452_v12 }
  0x6e   : > { %6412 = vmatpush3.msra.mxu1 %v2160_v11  ;;  %6213 = vmatmul.mubr.f32.gmra.mxu0 %v7191_v13  ;;  %v1828_v11 = vld [vmem:[%s9312_s1 + $0x720] sm:$0xff] }
  0x6f   : > { %1102 = vmatmul.mubr.f32.gmra.mxu1 %v874_v14  ;;  %6215 = vmatprep.mubr.f32.mxu0 %v7193_v15  ;;  %v884_v14 = vld [vmem:[#allocation2 + $0xc9] sm:$0xff] }
  0x70   : > { %1107 = vmatprep.mubr.f32.mxu1 %v9315_v54  ;;  %6254 = vmatpush3.msra.mxu0 %v1452_v12  ;;  %v2679_v12 = vld [vmem:[%s9312_s1 + $0x7c8] sm:$0xff] }
  0x71   : > { %6413 = vmatprep.subr.mxu1 %v2159_v16  ;;  %6255 = vmatprep.subr.mxu0 %v1451_v17 }
  0x72   : > { %6414 = vmatpush3.msra.mxu1 %v2159_v16  ;;  %6216 = vmatmul.mubr.f32.gmra.mxu0 %v7204_v18  ;;  %v1383_v16 = vld [vmem:[#allocation2 + $0x22] sm:$0xff] }
  0x73   : > { %1108 = vmatmul.mubr.f32.gmra.mxu1 %v875_v19  ;;  %6218 = vmatprep.mubr.f32.mxu0 %v7206_v20  ;;  %v1827_v19 = vld [vmem:[%s9312_s1 + $0x6a0] sm:$0xff] }
  0x74   : > { %1113 = vmatprep.mubr.f32.mxu1 %v9315_v54  ;;  %6256 = vmatpush3.msra.mxu0 %v1451_v17  ;;  %v1384_v17 = vld [vmem:[#allocation2 + $0x32] sm:$0xff] }
  0x75   : > { %6415 = vmatprep.subr.mxu1 %v2158_v21  ;;  %6257 = vmatprep.subr.mxu0 %v1450_v22 }
  0x76   : > { %6416 = vmatpush3.msra.mxu1 %v2158_v21  ;;  %6219 = vmatmul.mubr.f32.gmra.mxu0 %v7217_v23  ;;  %v885_v21 = vld [vmem:[#allocation2 + $0xd9] sm:$0xff] }
  0x77   : > { %1114 = vmatmul.mubr.f32.gmra.mxu1 %v876_v24  ;;  %6221 = vmatprep.mubr.f32.mxu0 %v7219_v25  ;;  %v1386_v24 = vld [vmem:[#allocation2 + $0x4a] sm:$0xff] }
  0x78   : > { %1119 = vmatprep.mubr.f32.mxu1 %v9315_v54  ;;  %6258 = vmatpush3.msra.mxu0 %v1450_v22  ;;  %v1385_v22 = vld [vmem:[#allocation2 + $0x3a] sm:$0xff] }
  0x79   : > { %6417 = vmatprep.subr.mxu1 %v2157_v26  ;;  %6259 = vmatprep.subr.mxu0 %v1449_v27 }
  0x7a   : > { %6418 = vmatpush3.msra.mxu1 %v2157_v26  ;;  %6222 = vmatmul.mubr.f32.gmra.mxu0 %v7230_v28  ;;  %v1826_v26 = vld [vmem:[%s9312_s1 + $0x620] sm:$0xff] }
  0x7b   : > { %1120 = vmatmul.mubr.f32.gmra.mxu1 %v877_v29  ;;  %6224 = vmatprep.mubr.f32.mxu0 %v7232_v30  ;;  %v1387_v29 = vld [vmem:[#allocation2 + $0x52] sm:$0xff] }
  0x7c   : > { %1125 = vmatprep.mubr.f32.mxu1 %v9315_v54  ;;  %6260 = vmatpush3.msra.mxu0 %v1449_v27  ;;  %v886_v27 = vld [vmem:[#allocation2 + $0xe1] sm:$0xff] }
  0x7d   : > { %6419 = vmatprep.subr.mxu1 %v2156_v31  ;;  %6261 = vmatprep.subr.mxu0 %v1448_v32 }
  0x7e   : > { %6420 = vmatpush3.msra.mxu1 %v2156_v31  ;;  %6225 = vmatmul.mubr.f32.gmra.mxu0 %v7243_v33  ;;  %v1388_v31 = vld [vmem:[#allocation2 + $0x62] sm:$0xff] }
  0x7f   : > { %1126 = vmatmul.mubr.f32.gmra.mxu1 %v878_v34  ;;  %6227 = vmatprep.mubr.f32.mxu0 %v7245_v35  ;;  %v887_v34 = vld [vmem:[#allocation2 + $0xf1] sm:$0xff] }
  0x80   : > { %1131 = vmatprep.mubr.f32.mxu1 %v9315_v54  ;;  %6262 = vmatpush3.msra.mxu0 %v1448_v32  ;;  %v1825_v32 = vld [vmem:[%s9312_s1 + $0x5a0] sm:$0xff] }
  0x81   : > { %6421 = vmatprep.subr.mxu1 %v2155_v36  ;;  %6263 = vmatprep.subr.mxu0 %v1447_v37 }
  0x82   : > { %6422 = vmatpush3.msra.mxu1 %v2155_v36  ;;  %6228 = vmatmul.mubr.f32.gmra.mxu0 %v7256_v38  ;;  %v1389_v36 = vld [vmem:[#allocation2 + $0x6a] sm:$0xff] }
  0x83   : > { %1132 = vmatmul.mubr.f32.gmra.mxu1 %v879_v39  ;;  %6230 = vmatprep.mubr.f32.mxu0 %v7258_v40  ;;  %v1824_v39 = vld [vmem:[%s9312_s1 + $0x520] sm:$0xff] }
  0x84   : > { %1137 = vmatprep.mubr.f32.mxu1 %v9315_v54  ;;  %6264 = vmatpush3.msra.mxu0 %v1447_v37  ;;  %v1390_v37 = vld [vmem:[#allocation2 + $0x7a] sm:$0xff] }
  0x85   : > { %6423 = vmatprep.subr.mxu1 %v2154_v41  ;;  %6265 = vmatprep.subr.mxu0 %v1446_v42 }
  0x86   : > { %6424 = vmatpush3.msra.mxu1 %v2154_v41  ;;  %6231 = vmatmul.mubr.f32.gmra.mxu0 %v7269_v43  ;;  %v888_v41 = vld [vmem:[#allocation2 + $0xf9] sm:$0xff] }
  0x87   : > { %1138 = vmatmul.mubr.f32.gmra.mxu1 %v880_v45  ;;  %6233 = vmatprep.mubr.f32.mxu0 %v7271_v47  ;;  %v1392_v45 = vld [vmem:[#allocation2 + $0x92] sm:$0xff] }
  0x88   : > { %1143 = vmatprep.mubr.f32.mxu1 %v9315_v54  ;;  %6266 = vmatpush3.msra.mxu0 %v1446_v42  ;;  %v1391_v42 = vld [vmem:[#allocation2 + $0x82] sm:$0xff] }
  0x89   : > { %6425 = vmatprep.subr.mxu1 %v2153_v48  ;;  %6267 = vmatprep.subr.mxu0 %v1445_v50 }
  0x8a   : > { %6426 = vmatpush3.msra.mxu1 %v2153_v48  ;;  %6234 = vmatmul.mubr.f32.gmra.mxu0 %v7282_v52  ;;  %v1823_v48 = vld [vmem:[%s9312_s1 + $0x4a0] sm:$0xff] }
  0x8b   : > { %1144 = vmatmul.mubr.f32.gmra.mxu1 %v881_v55  ;;  %6236 = vmatprep.mubr.f32.mxu0 %v7284_v56  ;;  %v1393_v55 = vld [vmem:[#allocation2 + $0x9a] sm:$0xff] }
  0x8c   : > { %1149 = vmatprep.mubr.f32.mxu1 %v9315_v54  ;;  %6268 = vmatpush3.msra.mxu0 %v1445_v50  ;;  %v889_v50 = vld [vmem:[#allocation2 + $0x109] sm:$0xff] }
  0x8d   : > { %6427 = vmatprep.subr.mxu1 %v2152_v58  ;;  %6269 = vmatprep.subr.mxu0 %v1444_v60 }
  0x8e   : > { %6428 = vmatpush3.msra.mxu1 %v2152_v58  ;;  %6237 = vmatmul.mubr.f32.gmra.mxu0 %v7295_v61  ;;  %v1394_v58 = vld [vmem:[#allocation2 + $0xaa] sm:$0xff] }
  0x8f   : > { %1150 = vmatmul.mubr.f32.gmra.mxu1 %v882_v63  ;;  %6270 = vmatpush3.msra.mxu0 %v1444_v60  ;;  %v1822_v60 = vld [vmem:[%s9312_s1 + $0x420] sm:$0xff]  ;;  %v890_v63 = vld [vmem:[#allocation2 + $0x111] sm:$0xff] }
  0x90   : > { %1155 = vmatprep.mubr.f32.mxu1 %v9315_v54  ;;  %6271 = vmatprep.mubr.f32.mxu0 %v1380_v1  ;;  %v1395_v1 = vld [vmem:[#allocation2 + $0xb2] sm:$0xff] }
  0x91   : > { %6319 = vmatprep.subr.mxu0 %v1829_v2  ;;  %6429 = vmatprep.subr.mxu1 %v2151_v4 }
  0x92   : > { %6272 = vmatmul.mubr.f32.vlgmr.msra.gmra.mxu0 %v1381_v7  ;;  %6430 = vmatpush3.msra.mxu1 %v2151_v4  ;;  %v1821_v4 = vld [vmem:[%s9312_s1 + $0x3a0] sm:$0xff]  ;;  %v1397_v7 = vld [vmem:[#allocation2 + $0xca] sm:$0xff] }
  0x93   : > { %1156 = vmatmul.mubr.f32.gmra.mxu1 %v883_v6  ;;  %6274 = vmatprep.mubr.f32.mxu0 %v1382_v9  ;;  %v891_v6 = vld [vmem:[#allocation2 + $0x121] sm:$0xff] }
  0x94   : > { %1161 = vmatprep.mubr.f32.mxu1 %v9315_v54  ;;  %6320 = vmatpush3.msra.mxu0 %v1829_v2  ;;  %v1396_v2 = vld [vmem:[#allocation2 + $0xc2] sm:$0xff]  ;;  %v1398_v9 = vld [vmem:[#allocation2 + $0xda] sm:$0xff] }
  0x95   : > { %6321 = vmatprep.subr.mxu0 %v1828_v11  ;;  %2937 = vmatprep.subr.mxu1 %v2679_v12  ;;  %v892_v12 = vld [vmem:[#allocation2 + $0x129] sm:$0xff] }
  0x96   : > { %6275 = vmatmul.mubr.f32.gmra.mxu0 %v1383_v16  ;;  %v1400_v16 = vld [vmem:[#allocation2 + $0xf2] sm:$0xff] }
  0x97   : > { %1162 = vmatmul.mubr.f32.gmra.mxu1 %v884_v14  ;;  %6277 = vmatprep.mubr.f32.mxu0 %v1384_v17  ;;  %v1399_v14 = vld [vmem:[#allocation2 + $0xe2] sm:$0xff] }
  0x98   : > { %1167 = vmatprep.mubr.f32.mxu1 %v9315_v54  ;;  %6322 = vmatpush3.msra.mxu0 %v1828_v11  ;;  %v1820_v11 = vld [vmem:[%s9312_s1 + $0x320] sm:$0xff] }
  0x99   : > { %6323 = vmatprep.subr.mxu0 %v1827_v19  ;;  %v1819_v17 = vld [vmem:[%s9312_s1 + $0x2a0] sm:$0xff] }
  0x9a   : > { %6278 = vmatmul.mubr.f32.gmra.mxu0 %v1385_v22  ;;  %v1402_v22 = vld [vmem:[#allocation2 + $0x10a] sm:$0xff] }
  0x9b   : > { %1168 = vmatmul.mubr.f32.gmra.mxu1 %v885_v21  ;;  %6280 = vmatprep.mubr.f32.mxu0 %v1386_v24  ;;  %v1401_v21 = vld [vmem:[#allocation2 + $0xfa] sm:$0xff] }
  0x9c   : > { %1173 = vmatprep.mubr.f32.mxu1 %v9315_v54  ;;  %6324 = vmatpush3.msra.mxu0 %v1827_v19  ;;  %v893_v19 = vld [vmem:[#allocation2 + $0x139] sm:$0xff] }
  0x9d   : > { %6325 = vmatprep.subr.mxu0 %v1826_v26  ;;  %v1818_v24 = vld [vmem:[%s9312_s1 + $0x220] sm:$0xff] }
  0x9e   : > { %6281 = vmatmul.mubr.f32.gmra.mxu0 %v1387_v29  ;;  %v1404_v29 = vld [vmem:[#allocation2 + $0x122] sm:$0xff] }
  0x9f   : > { %1174 = vmatmul.mubr.f32.gmra.mxu1 %v886_v27  ;;  %6283 = vmatprep.mubr.f32.mxu0 %v1388_v31  ;;  %v1403_v27 = vld [vmem:[#allocation2 + $0x112] sm:$0xff]  ;;  %v1817_v31 = vld [vmem:[%s9312_s1 + $0x1a0] sm:$0xff] }
  0xa0   : > { %1179 = vmatprep.mubr.f32.mxu1 %v9315_v54  ;;  %6326 = vmatpush3.msra.mxu0 %v1826_v26  ;;  %v894_v26 = vld [vmem:[#allocation2 + $0x141] sm:$0xff] }
  0xa1   : > { %6327 = vmatprep.subr.mxu0 %v1825_v32 }
  0xa2   : > { %6284 = vmatmul.mubr.f32.gmra.mxu0 %v1389_v36  ;;  %v1406_v36 = vld [vmem:[#allocation2 + $0x13a] sm:$0xff] }
  0xa3   : > { %1180 = vmatmul.mubr.f32.gmra.mxu1 %v887_v34  ;;  %6286 = vmatprep.mubr.f32.mxu0 %v1390_v37  ;;  %v1405_v34 = vld [vmem:[#allocation2 + $0x12a] sm:$0xff]  ;;  %v1816_v37 = vld [vmem:[%s9312_s1 + $0x120] sm:$0xff] }
  0xa4   : > { %1185 = vmatprep.mubr.f32.mxu1 %v9315_v54  ;;  %6328 = vmatpush3.msra.mxu0 %v1825_v32  ;;  %v895_v32 = vld [vmem:[#allocation2 + $0x151] sm:$0xff] }
  0xa5   : > { %6329 = vmatprep.subr.mxu0 %v1824_v39 }
  0xa6   : > { %6287 = vmatmul.mubr.f32.gmra.mxu0 %v1391_v42  ;;  %v1408_v42 = vld [vmem:[#allocation2 + $0x152] sm:$0xff] }
  0xa7   : > { %1186 = vmatmul.mubr.f32.gmra.mxu1 %v888_v41  ;;  %6289 = vmatprep.mubr.f32.mxu0 %v1392_v45  ;;  %v1407_v41 = vld [vmem:[#allocation2 + $0x142] sm:$0xff] }
  0xa8   : > { %1191 = vmatprep.mubr.f32.mxu1 %v9315_v54  ;;  %6330 = vmatpush3.msra.mxu0 %v1824_v39  ;;  %v896_v39 = vld [vmem:[#allocation2 + $0x159] sm:$0xff] }
  0xa9   : > { %6331 = vmatprep.subr.mxu0 %v1823_v48  ;;  %v1815_v45 = vld [vmem:[%s9312_s1 + $0xa0] sm:$0xff] }
  0xaa   : > { %6290 = vmatmul.mubr.f32.gmra.mxu0 %v1393_v55  ;;  %v1410_v55 = vld [vmem:[#allocation2 + $0x16a] sm:$0xff] }
  0xab   : > { %1192 = vmatmul.mubr.f32.gmra.mxu1 %v889_v50  ;;  %6292 = vmatprep.mubr.f32.mxu0 %v1394_v58  ;;  %v1409_v50 = vld [vmem:[#allocation2 + $0x15a] sm:$0xff] }
  0xac   : > { %1197 = vmatprep.mubr.f32.mxu1 %v9315_v54  ;;  %6332 = vmatpush3.msra.mxu0 %v1823_v48  ;;  %v897_v48 = vld [vmem:[#allocation2 + $0x169] sm:$0xff]  ;;  %v1814_v58 = vld [vmem:[%s9312_s1 + $0x20] sm:$0xff] }
  0xad   : > { %6333 = vmatprep.subr.mxu0 %v1822_v60 }
  0xae   : > { %6293 = vmatmul.mubr.f32.gmra.mxu0 %v1395_v1  ;;  %v2677_v1 = vld [vmem:[%s9312_s1 + $0x7b8] sm:$0xff] }
  0xaf   : > { %1198 = vmatmul.mubr.f32.gmra.mxu1 %v890_v63  ;;  %6295 = vmatprep.mubr.f32.mxu0 %v1396_v2  ;;  %v1411_v63 = vld [vmem:[#allocation2 + $0x172] sm:$0xff]  ;;  %v2678_v2 = vld [vmem:[%s9312_s1 + $0x7c0] sm:$0xff] }
  0xb0   : > { %1203 = vmatprep.mubr.f32.mxu1 %v9315_v54  ;;  %6334 = vmatpush3.msra.mxu0 %v1822_v60  ;;  %v898_v60 = vld [vmem:[#allocation2 + $0x171] sm:$0xff] }
  0xb1   : > { %6335 = vmatprep.subr.mxu0 %v1821_v4 }
  0xb2   : > { %6296 = vmatmul.mubr.f32.gmra.mxu0 %v1397_v7  ;;  %v2674_v7 = vld [vmem:[%s9312_s1 + $0x740] sm:$0xff] }
  0xb3   : > { %1204 = vmatmul.mubr.f32.gmra.mxu1 %v891_v6  ;;  %6298 = vmatprep.mubr.f32.mxu0 %v1398_v9  ;;  %v2675_v6 = vld [vmem:[%s9312_s1 + $0x748] sm:$0xff] }
  0xb4   : > { %1209 = vmatprep.mubr.f32.mxu1 %v9315_v54  ;;  %6336 = vmatpush3.msra.mxu0 %v1821_v4  ;;  %v2676_v4 = vld [vmem:[%s9312_s1 + $0x7b0] sm:$0xff]  ;;  %v2671_v9 = vld [vmem:[%s9312_s1 + $0x6c8] sm:$0xff] }
  0xb5   : > { %6337 = vmatprep.subr.mxu0 %v1820_v11 }
  0xb6   : > { %6299 = vmatmul.mubr.f32.gmra.mxu0 %v1399_v14  ;;  %v2666_v14 = vld [vmem:[%s9312_s1 + $0x640] sm:$0xff] }
  0xb7   : > { %1210 = vmatmul.mubr.f32.gmra.mxu1 %v892_v12  ;;  %6301 = vmatprep.mubr.f32.mxu0 %v1400_v16  ;;  %v2667_v12 = vld [vmem:[%s9312_s1 + $0x648] sm:$0xff] }
  0xb8   : > { %1215 = vmatprep.mubr.f32.mxu1 %v9315_v54  ;;  %6338 = vmatpush3.msra.mxu0 %v1820_v11  ;;  %v2670_v11 = vld [vmem:[%s9312_s1 + $0x6c0] sm:$0xff]  ;;  %v2663_v16 = vld [vmem:[%s9312_s1 + $0x5c8] sm:$0xff] }
  0xb9   : > { %6339 = vmatprep.subr.mxu0 %v1819_v17 }
  0xba   : > { %6302 = vmatmul.mubr.f32.gmra.mxu0 %v1401_v21  ;;  %v2658_v21 = vld [vmem:[%s9312_s1 + $0x540] sm:$0xff] }
  0xbb   : > { %1216 = vmatmul.mubr.f32.gmra.mxu1 %v893_v19  ;;  %6304 = vmatprep.mubr.f32.mxu0 %v1402_v22  ;;  %v2659_v19 = vld [vmem:[%s9312_s1 + $0x548] sm:$0xff] }
  0xbc   : > { %1221 = vmatprep.mubr.f32.mxu1 %v9315_v54  ;;  %6340 = vmatpush3.msra.mxu0 %v1819_v17  ;;  %v2662_v17 = vld [vmem:[%s9312_s1 + $0x5c0] sm:$0xff]  ;;  %v2655_v22 = vld [vmem:[%s9312_s1 + $0x4c8] sm:$0xff] }
  0xbd   : > { %6341 = vmatprep.subr.mxu0 %v1818_v24 }
  0xbe   : > { %6305 = vmatmul.mubr.f32.gmra.mxu0 %v1403_v27  ;;  %v2650_v27 = vld [vmem:[%s9312_s1 + $0x440] sm:$0xff] }
  0xbf   : > { %1222 = vmatmul.mubr.f32.gmra.mxu1 %v894_v26  ;;  %6307 = vmatprep.mubr.f32.mxu0 %v1404_v29  ;;  %v2651_v26 = vld [vmem:[%s9312_s1 + $0x448] sm:$0xff] }
  0xc0   : > { %1227 = vmatprep.mubr.f32.mxu1 %v9315_v54  ;;  %6342 = vmatpush3.msra.mxu0 %v1818_v24  ;;  %v2654_v24 = vld [vmem:[%s9312_s1 + $0x4c0] sm:$0xff]  ;;  %v2647_v29 = vld [vmem:[%s9312_s1 + $0x3c8] sm:$0xff] }
  0xc1   : > { %6343 = vmatprep.subr.mxu0 %v1817_v31 }
  0xc2   : > { %6308 = vmatmul.mubr.f32.gmra.mxu0 %v1405_v34  ;;  %v2642_v34 = vld [vmem:[%s9312_s1 + $0x340] sm:$0xff] }
  0xc3   : > { %1228 = vmatmul.mubr.f32.gmra.mxu1 %v895_v32  ;;  %6310 = vmatprep.mubr.f32.mxu0 %v1406_v36  ;;  %v2643_v32 = vld [vmem:[%s9312_s1 + $0x348] sm:$0xff] }
  0xc4   : > { %1233 = vmatprep.mubr.f32.mxu1 %v9315_v54  ;;  %6344 = vmatpush3.msra.mxu0 %v1817_v31  ;;  %v2646_v31 = vld [vmem:[%s9312_s1 + $0x3c0] sm:$0xff]  ;;  %v2639_v36 = vld [vmem:[%s9312_s1 + $0x2c8] sm:$0xff] }
  0xc5   : > { %6345 = vmatprep.subr.mxu0 %v1816_v37 }
  0xc6   : > { %6311 = vmatmul.mubr.f32.gmra.mxu0 %v1407_v41  ;;  %v2634_v41 = vld [vmem:[%s9312_s1 + $0x240] sm:$0xff] }
  0xc7   : > { %1234 = vmatmul.mubr.f32.gmra.mxu1 %v896_v39  ;;  %6313 = vmatprep.mubr.f32.mxu0 %v1408_v42  ;;  %v2635_v39 = vld [vmem:[%s9312_s1 + $0x248] sm:$0xff] }
  0xc8   : > { %1239 = vmatprep.mubr.f32.mxu1 %v9315_v54  ;;  %6346 = vmatpush3.msra.mxu0 %v1816_v37  ;;  %v2638_v37 = vld [vmem:[%s9312_s1 + $0x2c0] sm:$0xff]  ;;  %v2631_v42 = vld [vmem:[%s9312_s1 + $0x1c8] sm:$0xff] }
  0xc9   : > { %6347 = vmatprep.subr.mxu0 %v1815_v45 }
  0xca   : > { %6314 = vmatmul.mubr.f32.gmra.mxu0 %v1409_v50  ;;  %v350_v50 = vlaneseq }
  0xcb   : > { %1240 = vmatmul.mubr.f32.gmra.mxu1 %v897_v48  ;;  %6316 = vmatprep.mubr.f32.mxu0 %v1410_v55  ;;  %v2627_v48 = vld [vmem:[%s9312_s1 + $0x148] sm:$0xff]  ;;  %v2626_v55 = vld [vmem:[%s9312_s1 + $0x140] sm:$0xff] }
  0xcc   : > { %1245 = vmatprep.mubr.f32.mxu1 %v9315_v54  ;;  %6348 = vmatpush3.msra.mxu0 %v1815_v45  ;;  %v2630_v45 = vld [vmem:[%s9312_s1 + $0x1c0] sm:$0xff] }
  0xcd   : > { %6349 = vmatprep.subr.mxu0 %v1814_v58 }
  0xce   : > { %6317 = vmatmul.mubr.f32.gmra.mxu0 %v1411_v63  ;;  %v1780_v63 = vld [vmem:[#allocation2 + $0x180] sm:$0xff] }
  0xcf   : > { %1246 = vmatmul.mubr.f32.gmra.mxu1 %v898_v60  ;;  %6350 = vmatpush3.msra.mxu0 %v1814_v58  ;;  %v2623_v58 = vld [vmem:[%s9312_s1 + $0xc8] sm:$0xff]  ;;  %v7596_v60 = vshrl.u32 %v350_v50, 7 }
  0xd0   : > { %6351 = vmatprep.mubr.f32.mxu0 %v7106_v44  ;;  %6431 = vmatprep.mubr.f32.mxu1 %v7106_v44  ;;  %v2673_v44 = vld [vmem:[%s9312_s1 + $0x738] sm:$0xff] }
  0xd1   : > { %2680 = vmatprep.subr.mxu0 %v2677_v1  ;;  %9318 = vst [vmem:[#allocation7_spill] sm:$0xff] %v7596_v60  ;;  %v2620_v1 = vld [vmem:[%s9312_s1 + $0xb0] sm:$0xff] }
  0xd2   : > { %6352 = vmatmul.mubr.f32.vlgmr.msra.gmra.mxu0 %v7111_v46 }
  0xd3   : > { %6432 = vmatmul.mubr.f32.vlgmr.msra.gmra.mxu1 %v7111_v46  ;;  %6354 = vmatprep.mubr.f32.mxu0 %v7118_v49  ;;  %v2672_v46 = vld [vmem:[%s9312_s1 + $0x730] sm:$0xff] }
  0xd4   : > { %2938 = vmatpush1.msra.mxu1 %v2678_v2  ;;  %6434 = vmatprep.mubr.f32.mxu1 %v7118_v49  ;;  %v2669_v49 = vld [vmem:[%s9312_s1 + $0x6b8] sm:$0xff] }
  0xd5   : > { %2681 = vmatpush1.msra.mxu0 %v2676_v4  ;;  %2939 = vmatprep.subr.mxu1 %v2675_v6  ;;  %v2617_v2 = vld [vmem:[%s9312_s1 + $0x38] sm:$0xff]  ;;  %v1781_v4 = vld [vmem:[#allocation2 + $0x188] sm:$0xff]  ;;  %v352_v6 = vsub.s32 0, %v7596_v60 }
  0xd6   : > { %2682 = vmatprep.subr.mxu0 %v2673_v44  ;;  %6355 = vmatmul.mubr.f32.gmra.mxu0 %v7125_v51  ;;  %v2618_v44 = vld [vmem:[%s9312_s1 + $0x40] sm:$0xff] }
  0xd7   : > { %6435 = vmatmul.mubr.f32.gmra.mxu1 %v7125_v51  ;;  %6357 = vmatprep.mubr.f32.mxu0 %v7128_v53  ;;  %v2668_v51 = vld [vmem:[%s9312_s1 + $0x6b0] sm:$0xff] }
  0xd8   : > { %2940 = vmatpush1.msra.mxu1 %v2674_v7  ;;  %6437 = vmatprep.mubr.f32.mxu1 %v7128_v53  ;;  %v2665_v53 = vld [vmem:[%s9312_s1 + $0x638] sm:$0xff]  ;;  %v7623_v7 = vld [vmem:[%s9313_s2] sm:$0xf] }
  0xd9   : > { %2683 = vmatpush1.msra.mxu0 %v2672_v46  ;;  %2941 = vmatprep.subr.mxu1 %v2671_v9  ;;  %v3866_v46 = vld [vmem:[%s9312_s1 + $0x7d8] sm:$0xff]  ;;  %v3529_v9 = vld [vmem:[%s9312_s1 + $0x7d0] sm:$0xff] }
  0xda   : > { %2684 = vmatprep.subr.mxu0 %v2669_v49  ;;  %6358 = vmatmul.mubr.f32.gmra.mxu0 %v7139_v57  ;;  %v7632_v49 = vrot.slane %v7623_v7, %v352_v6 }
  0xdb   : > { %6438 = vmatmul.mubr.f32.gmra.mxu1 %v7139_v57  ;;  %6360 = vmatprep.mubr.f32.mxu0 %v7141_v59  ;;  %v2664_v57 = vld [vmem:[%s9312_s1 + $0x630] sm:$0xff] }
  0xdc   : > { %2942 = vmatpush1.msra.mxu1 %v2670_v11  ;;  %6440 = vmatprep.mubr.f32.mxu1 %v7141_v59  ;;  %v2661_v59 = vld [vmem:[%s9312_s1 + $0x5b8] sm:$0xff] }
  0xdd   : > { %2685 = vmatpush1.msra.mxu0 %v2668_v51  ;;  %2943 = vmatprep.subr.mxu1 %v2667_v12  ;;  %v2456_v11 = vld [vmem:[#allocation2 + $0x19] sm:$0xff] }
  0xde   : > { %2686 = vmatprep.subr.mxu0 %v2665_v53  ;;  %6361 = vmatmul.mubr.f32.gmra.mxu0 %v7152_v62  ;;  %v3865_v53 = vld [vmem:[%s9312_s1 + $0x758] sm:$0xff] }
  0xdf   : > { %6441 = vmatmul.mubr.f32.gmra.mxu1 %v7152_v62  ;;  %6363 = vmatprep.mubr.f32.mxu0 %v7154_v0  ;;  %v2660_v62 = vld [vmem:[%s9312_s1 + $0x5b0] sm:$0xff] }
  0xe0   : > { %2944 = vmatpush1.msra.mxu1 %v2666_v14  ;;  %6443 = vmatprep.mubr.f32.mxu1 %v7154_v0  ;;  %v2657_v0 = vld [vmem:[%s9312_s1 + $0x538] sm:$0xff]  ;;  %v3528_v14 = vld [vmem:[%s9312_s1 + $0x750] sm:$0xff] }
  0xe1   : > { %2687 = vmatpush1.msra.mxu0 %v2664_v57  ;;  %2945 = vmatprep.subr.mxu1 %v2663_v16 }
  0xe2   : > { %2688 = vmatprep.subr.mxu0 %v2661_v59  ;;  %6364 = vmatmul.mubr.f32.gmra.mxu0 %v7165_v3  ;;  %v2457_v59 = vld [vmem:[#allocation2 + $0x21] sm:$0xff] }
  0xe3   : > { %6444 = vmatmul.mubr.f32.gmra.mxu1 %v7165_v3  ;;  %6366 = vmatprep.mubr.f32.mxu0 %v7167_v5  ;;  %v2656_v3 = vld [vmem:[%s9312_s1 + $0x530] sm:$0xff] }
  0xe4   : > { %2946 = vmatpush1.msra.mxu1 %v2662_v17  ;;  %6446 = vmatprep.mubr.f32.mxu1 %v7167_v5  ;;  %v2653_v5 = vld [vmem:[%s9312_s1 + $0x4b8] sm:$0xff] }
  0xe5   : > { %2689 = vmatpush1.msra.mxu0 %v2660_v62  ;;  %2947 = vmatprep.subr.mxu1 %v2659_v19 }
  0xe6   : > { %2690 = vmatprep.subr.mxu0 %v2657_v0  ;;  %6367 = vmatmul.mubr.f32.gmra.mxu0 %v7178_v8 }
  0xe7   : > { %6447 = vmatmul.mubr.f32.gmra.mxu1 %v7178_v8  ;;  %6369 = vmatprep.mubr.f32.mxu0 %v7180_v10  ;;  %v2652_v8 = vld [vmem:[%s9312_s1 + $0x4b0] sm:$0xff] }
  0xe8   : > { %2948 = vmatpush1.msra.mxu1 %v2658_v21  ;;  %6449 = vmatprep.mubr.f32.mxu1 %v7180_v10  ;;  %v2649_v10 = vld [vmem:[%s9312_s1 + $0x438] sm:$0xff] }
  0xe9   : > { %2691 = vmatpush1.msra.mxu0 %v2656_v3  ;;  %2949 = vmatprep.subr.mxu1 %v2655_v22  ;;  %v3864_v21 = vld [vmem:[%s9312_s1 + $0x6d8] sm:$0xff]  ;;  %v3527_v3 = vld [vmem:[%s9312_s1 + $0x6d0] sm:$0xff] }
  0xea   : > { %2692 = vmatprep.subr.mxu0 %v2653_v5  ;;  %6370 = vmatmul.mubr.f32.gmra.mxu0 %v7191_v13 }
  0xeb   : > { %6450 = vmatmul.mubr.f32.gmra.mxu1 %v7191_v13  ;;  %6372 = vmatprep.mubr.f32.mxu0 %v7193_v15  ;;  %v2648_v13 = vld [vmem:[%s9312_s1 + $0x430] sm:$0xff] }
  0xec   : > { %2950 = vmatpush1.msra.mxu1 %v2654_v24  ;;  %6452 = vmatprep.mubr.f32.mxu1 %v7193_v15  ;;  %v2645_v15 = vld [vmem:[%s9312_s1 + $0x3b8] sm:$0xff] }
  0xed   : > { %2693 = vmatpush1.msra.mxu0 %v2652_v8  ;;  %2951 = vmatprep.subr.mxu1 %v2651_v26  ;;  %v2458_v24 = vld [vmem:[#allocation2 + $0x31] sm:$0xff] }
  0xee   : > { %2694 = vmatprep.subr.mxu0 %v2649_v10  ;;  %6373 = vmatmul.mubr.f32.gmra.mxu0 %v7204_v18 }
  0xef   : > { %6453 = vmatmul.mubr.f32.gmra.mxu1 %v7204_v18  ;;  %6375 = vmatprep.mubr.f32.mxu0 %v7206_v20  ;;  %v2644_v18 = vld [vmem:[%s9312_s1 + $0x3b0] sm:$0xff] }
  0xf0   : > { %2952 = vmatpush1.msra.mxu1 %v2650_v27  ;;  %6455 = vmatprep.mubr.f32.mxu1 %v7206_v20  ;;  %v2641_v20 = vld [vmem:[%s9312_s1 + $0x338] sm:$0xff] }
  0xf1   : > { %2695 = vmatpush1.msra.mxu0 %v2648_v13  ;;  %2953 = vmatprep.subr.mxu1 %v2647_v29  ;;  %v3863_v29 = vld [vmem:[%s9312_s1 + $0x658] sm:$0xff] }
  0xf2   : > { %2696 = vmatprep.subr.mxu0 %v2645_v15  ;;  %6376 = vmatmul.mubr.f32.gmra.mxu0 %v7217_v23  ;;  %v3526_v15 = vld [vmem:[%s9312_s1 + $0x650] sm:$0xff] }
  0xf3   : > { %6456 = vmatmul.mubr.f32.gmra.mxu1 %v7217_v23  ;;  %6378 = vmatprep.mubr.f32.mxu0 %v7219_v25  ;;  %v2640_v23 = vld [vmem:[%s9312_s1 + $0x330] sm:$0xff] }
  0xf4   : > { %2954 = vmatpush1.msra.mxu1 %v2646_v31  ;;  %6458 = vmatprep.mubr.f32.mxu1 %v7219_v25  ;;  %v2637_v25 = vld [vmem:[%s9312_s1 + $0x2b8] sm:$0xff] }
  0xf5   : > { %2697 = vmatpush1.msra.mxu0 %v2644_v18  ;;  %2955 = vmatprep.subr.mxu1 %v2643_v32  ;;  %v2459_v18 = vld [vmem:[#allocation2 + $0x39] sm:$0xff] }
  0xf6   : > { %2698 = vmatprep.subr.mxu0 %v2641_v20  ;;  %6379 = vmatmul.mubr.f32.gmra.mxu0 %v7230_v28 }
  0xf7   : > { %6459 = vmatmul.mubr.f32.gmra.mxu1 %v7230_v28  ;;  %6381 = vmatprep.mubr.f32.mxu0 %v7232_v30  ;;  %v2636_v28 = vld [vmem:[%s9312_s1 + $0x2b0] sm:$0xff] }
  0xf8   : > { %2956 = vmatpush1.msra.mxu1 %v2642_v34  ;;  %6461 = vmatprep.mubr.f32.mxu1 %v7232_v30  ;;  %v2633_v30 = vld [vmem:[%s9312_s1 + $0x238] sm:$0xff] }
  0xf9   : > { %2699 = vmatpush1.msra.mxu0 %v2640_v23  ;;  %2957 = vmatprep.subr.mxu1 %v2639_v36 }
  0xfa   : > { %2700 = vmatprep.subr.mxu0 %v2637_v25  ;;  %6382 = vmatmul.mubr.f32.gmra.mxu0 %v7243_v33  ;;  %v3862_v25 = vld [vmem:[%s9312_s1 + $0x5d8] sm:$0xff] }
  0xfb   : > { %6462 = vmatmul.mubr.f32.gmra.mxu1 %v7243_v33  ;;  %6384 = vmatprep.mubr.f32.mxu0 %v7245_v35  ;;  %v2632_v33 = vld [vmem:[%s9312_s1 + $0x230] sm:$0xff] }
  0xfc   : > { %2958 = vmatpush1.msra.mxu1 %v2638_v37  ;;  %6464 = vmatprep.mubr.f32.mxu1 %v7245_v35  ;;  %v2629_v35 = vld [vmem:[%s9312_s1 + $0x1b8] sm:$0xff]  ;;  %v3525_v37 = vld [vmem:[%s9312_s1 + $0x5d0] sm:$0xff] }
  0xfd   : > { %2701 = vmatpush1.msra.mxu0 %v2636_v28  ;;  %2959 = vmatprep.subr.mxu1 %v2635_v39  ;;  %v2460_v39 = vld [vmem:[#allocation2 + $0x49] sm:$0xff] }
  0xfe   : > { %2702 = vmatprep.subr.mxu0 %v2633_v30  ;;  %6385 = vmatmul.mubr.f32.gmra.mxu0 %v7256_v38 }
  0xff   : > { %6465 = vmatmul.mubr.f32.gmra.mxu1 %v7256_v38  ;;  %6387 = vmatprep.mubr.f32.mxu0 %v7258_v40  ;;  %v2628_v38 = vld [vmem:[%s9312_s1 + $0x1b0] sm:$0xff] }
 0x100   : > { %2960 = vmatpush1.msra.mxu1 %v2634_v41  ;;  %6467 = vmatprep.mubr.f32.mxu1 %v7258_v40  ;;  %v2625_v40 = vld [vmem:[%s9312_s1 + $0x138] sm:$0xff] }
 0x101   : > { %2703 = vmatpush1.msra.mxu0 %v2632_v33  ;;  %2961 = vmatprep.subr.mxu1 %v2631_v42 }
 0x102   : > { %2704 = vmatprep.subr.mxu0 %v2629_v35  ;;  %6388 = vmatmul.mubr.f32.gmra.mxu0 %v7269_v43 }
 0x103   : > { %6468 = vmatmul.mubr.f32.gmra.mxu1 %v7269_v43  ;;  %6390 = vmatprep.mubr.f32.mxu0 %v7271_v47  ;;  %v2624_v43 = vld [vmem:[%s9312_s1 + $0x130] sm:$0xff] }
 0x104   : > { %2962 = vmatpush1.msra.mxu1 %v2630_v45  ;;  %6470 = vmatprep.mubr.f32.mxu1 %v7271_v47  ;;  %v2621_v47 = vld [vmem:[%s9312_s1 + $0xb8] sm:$0xff] }
 0x105   : > { %2705 = vmatpush1.msra.mxu0 %v2628_v38  ;;  %2963 = vmatprep.subr.mxu1 %v2627_v48  ;;  %v3861_v45 = vld [vmem:[%s9312_s1 + $0x558] sm:$0xff]  ;;  %v3524_v38 = vld [vmem:[%s9312_s1 + $0x550] sm:$0xff] }
 0x106   : > { %2706 = vmatprep.subr.mxu0 %v2625_v40  ;;  %6391 = vmatmul.mubr.f32.gmra.mxu0 %v7282_v52  ;;  %v2461_v40 = vld [vmem:[#allocation2 + $0x51] sm:$0xff] }
 0x107   : > { %6471 = vmatmul.mubr.f32.gmra.mxu1 %v7282_v52  ;;  %6393 = vmatprep.mubr.f32.mxu0 %v7284_v56  ;;  %v2622_v52 = vld [vmem:[%s9312_s1 + $0xc0] sm:$0xff] }
 0x108   : > { %2964 = vmatpush1.msra.mxu1 %v2626_v55  ;;  %6473 = vmatprep.mubr.f32.mxu1 %v7284_v56  ;;  %v2619_v56 = vld [vmem:[%s9312_s1 + $0x48] sm:$0xff] }
 0x109   : > { %2707 = vmatpush1.msra.mxu0 %v2624_v43  ;;  %2965 = vmatprep.subr.mxu1 %v2623_v58 }
 0x10a   : > { %2708 = vmatprep.subr.mxu0 %v2621_v47  ;;  %6394 = vmatmul.mubr.f32.gmra.mxu0 %v7295_v61 }
 0x10b   : > { %6474 = vmatmul.mubr.f32.gmra.mxu1 %v7295_v61  ;;  %6396 = vmatprep.mubr.f32.mxu0 %v1780_v63  ;;  %v2616_v61 = vld [vmem:[%s9312_s1 + $0x30] sm:$0xff] }
 0x10c   : > { %2966 = vmatpush1.msra.mxu1 %v2622_v52  ;;  %6476 = vmatprep.mubr.f32.mxu1 %v1780_v63  ;;  %v3860_v52 = vld [vmem:[%s9312_s1 + $0x4d8] sm:$0xff]  ;;  %v3523_v63 = vld [vmem:[%s9312_s1 + $0x4d0] sm:$0xff] }
 0x10d   : > { %2709 = vmatpush1.msra.mxu0 %v2620_v1  ;;  %2967 = vmatprep.subr.mxu1 %v2619_v56  ;;  %v2462_v56 = vld [vmem:[#allocation2 + $0x61] sm:$0xff] }
 0x10e   : > { %2710 = vmatprep.subr.mxu0 %v2617_v2  ;;  %6397 = vmatmul.mubr.f32.gmra.mxu0 %v1781_v4 }
 0x10f   : > { %6477 = vmatmul.mubr.f32.gmra.mxu1 %v1781_v4  ;;  %2711 = vmatpush1.msra.mxu0 %v2616_v61 }
 0x110   : > { %2968 = vmatpush1.msra.mxu1 %v2618_v44  ;;  %2744 = vmatprep.mubr.f32.mxu0 %v9315_v54 }
 0x111   : > { %3001 = vmatprep.mubr.f32.mxu1 %v9315_v54  ;;  %6559 = vmatprep.subr.mxu1 %v3866_v46 }
 0x112   : > { %v6193_v51 = vpop.f32.mrf.mxu0  ;;  %6479 = vmatprep.subr.mxu0 %v3529_v9  ;;  %v1061_v12 = vpop.f32.mrf.mxu1  ;;  %2745 = vmatmul.mubr.f32.vlgmr.msra.gmra.mxu0 %v2456_v11 }
 0x113   : > { %3002 = vmatmul.mubr.f32.vlgmr.msra.gmra.mxu1 %v2456_v11  ;;  %v804_v57 = vadd.f32 %v6193_v51, %v7632_v49  ;;  %2750 = vmatprep.mubr.f32.mxu0 %v9315_v54  ;;  %v2463_v51 = vld [vmem:[#allocation2 + $0x69] sm:$0xff] }
 0x114   : > { %6560 = vmatpush3.msra.mxu1 %v3866_v46  ;;  %v644_v16 = vpop.f32.mrf.mxu0  ;;  %v7645_v62 = vpop.f32.mrf.mxu1  ;;  %3007 = vmatprep.mubr.f32.mxu1 %v9315_v54  ;;  %v3859_v46 = vld [vmem:[%s9312_s1 + $0x458] sm:$0xff] }
 0x115   : > { %v803_v17 = vadd.f32 %v644_v16, %v7632_v49  ;;  %6480 = vmatpush3.msra.mxu0 %v3529_v9  ;;  %6561 = vmatprep.subr.mxu1 %v3865_v53  ;;  %v3522_v9 = vld [vmem:[%s9312_s1 + $0x450] sm:$0xff] }
 0x116   : > { %6481 = vmatprep.subr.mxu0 %v3528_v14  ;;  %v6196_v19 = vpop.f32.mrf.mxu0  ;;  %2751 = vmatmul.mubr.f32.gmra.mxu0 %v2457_v59 }
 0x117   : > { %v1067_v0 = vpop.f32.mrf.mxu1  ;;  %3008 = vmatmul.mubr.f32.gmra.mxu1 %v2457_v59  ;;  %v7654_v22 = vadd.f32 %v1061_v12, %v803_v17  ;;  %2756 = vmatprep.mubr.f32.mxu0 %v9315_v54  ;;  %v806_v34 = vadd.f32 %v6196_v19, %v7632_v49  ;;  %v3858_v59 = vld [vmem:[%s9312_s1 + $0x3d8] sm:$0xff]  ;;  %v3521_v17 = vld [vmem:[%s9312_s1 + $0x3d0] sm:$0xff] }
 0x118   : > { %v7656_v5 = vadd.f32 %v1067_v0, %v804_v57  ;;  %3013 = vmatprep.mubr.f32.mxu1 %v9315_v54  ;;  %v654_v8 = vpop.f32.mrf.mxu0  ;;  %6562 = vmatpush3.msra.mxu1 %v3865_v53  ;;  %v2464_v0 = vld [vmem:[#allocation2 + $0x79] sm:$0xff] }
 0x119   : > { %v7660_v26 = vpop.f32.mrf.mxu1  ;;  %6482 = vmatpush3.msra.mxu0 %v3528_v14  ;;  %v805_v10 = vadd.f32 %v654_v8, %v7632_v49  ;;  %6563 = vmatprep.subr.mxu1 %v3864_v21 }
 0x11a   : > { %6483 = vmatprep.subr.mxu0 %v3527_v3  ;;  %v6199_v27 = vpop.f32.mrf.mxu0  ;;  %2757 = vmatmul.mubr.f32.gmra.mxu0 %v2458_v24 }
 0x11b   : > { %v1073_v13 = vpop.f32.mrf.mxu1  ;;  %3014 = vmatmul.mubr.f32.gmra.mxu1 %v2458_v24  ;;  %2762 = vmatprep.mubr.f32.mxu0 %v9315_v54  ;;  %v808_v43 = vadd.f32 %v6199_v27, %v7632_v49  ;;  %v3857_v27 = vld [vmem:[%s9312_s1 + $0x358] sm:$0xff] }
 0x11c   : > { %v7669_v31 = vadd.f32 %v1073_v13, %v805_v10  ;;  %3019 = vmatprep.mubr.f32.mxu1 %v9315_v54  ;;  %v664_v32 = vpop.f32.mrf.mxu0  ;;  %6564 = vmatpush3.msra.mxu1 %v3864_v21  ;;  %v3520_v13 = vld [vmem:[%s9312_s1 + $0x350] sm:$0xff] }
 0x11d   : > { %v7673_v20 = vpop.f32.mrf.mxu1  ;;  %6484 = vmatpush3.msra.mxu0 %v3527_v3  ;;  %6565 = vmatprep.subr.mxu1 %v3863_v29  ;;  %v807_v33 = vadd.f32 %v664_v32, %v7632_v49 }
 0x11e   : > { %6485 = vmatprep.subr.mxu0 %v3526_v15  ;;  %v7676_v23 = vpop.f32.mrf.mxu0  ;;  %2763 = vmatmul.mubr.f32.gmra.mxu0 %v2459_v18 }
 0x11f   : > { %v1079_v36 = vpop.f32.mrf.mxu1  ;;  %3020 = vmatmul.mubr.f32.gmra.mxu1 %v2459_v18  ;;  %2768 = vmatprep.mubr.f32.mxu0 %v9315_v54  ;;  %v810_v14 = vadd.f32 %v7676_v23, %v7632_v49  ;;  %v2465_v18 = vld [vmem:[#allocation2 + $0x81] sm:$0xff] }
 0x120   : > { %v7684_v28 = vadd.f32 %v1079_v36, %v806_v34  ;;  %3025 = vmatprep.mubr.f32.mxu1 %v9315_v54  ;;  %v674_v30 = vpop.f32.mrf.mxu0  ;;  %6566 = vmatpush3.msra.mxu1 %v3863_v29 }
 0x121   : > { %v7688_v41 = vpop.f32.mrf.mxu1  ;;  %6486 = vmatpush3.msra.mxu0 %v3526_v15  ;;  %6567 = vmatprep.subr.mxu1 %v3862_v25  ;;  %v809_v6 = vadd.f32 %v674_v30, %v7632_v49  ;;  %v3519_v30 = vld [vmem:[%s9312_s1 + $0x2d0] sm:$0xff] }
 0x122   : > { %6487 = vmatprep.subr.mxu0 %v3525_v37  ;;  %v7691_v42 = vpop.f32.mrf.mxu0  ;;  %2769 = vmatmul.mubr.f32.gmra.mxu0 %v2460_v39 }
 0x123   : > { %v1085_v35 = vpop.f32.mrf.mxu1  ;;  %3026 = vmatmul.mubr.f32.gmra.mxu1 %v2460_v39  ;;  %2774 = vmatprep.mubr.f32.mxu0 %v9315_v54  ;;  %v812_v23 = vadd.f32 %v7691_v42, %v7632_v49  ;;  %v3856_v39 = vld [vmem:[%s9312_s1 + $0x2d8] sm:$0xff] }
 0x124   : > { %v7699_v48 = vadd.f32 %v1085_v35, %v807_v33  ;;  %3031 = vmatprep.mubr.f32.mxu1 %v9315_v54  ;;  %v684_v50 = vpop.f32.mrf.mxu0  ;;  %6568 = vmatpush3.msra.mxu1 %v3862_v25  ;;  %v2466_v35 = vld [vmem:[#allocation2 + $0x91] sm:$0xff] }
 0x125   : > { %v7703_v55 = vpop.f32.mrf.mxu1  ;;  %6488 = vmatpush3.msra.mxu0 %v3525_v37  ;;  %6569 = vmatprep.subr.mxu1 %v3861_v45  ;;  %v811_v24 = vadd.f32 %v684_v50, %v7632_v49 }
 0x126   : > { %6489 = vmatprep.subr.mxu0 %v3524_v38  ;;  %v7706_v58 = vpop.f32.mrf.mxu0  ;;  %2775 = vmatmul.mubr.f32.gmra.mxu0 %v2461_v40 }
 0x127   : > { %v1091_v47 = vpop.f32.mrf.mxu1  ;;  %3032 = vmatmul.mubr.f32.gmra.mxu1 %v2461_v40  ;;  %2780 = vmatprep.mubr.f32.mxu0 %v9315_v54 }
 0x128   : > { %v7714_v1 = vadd.f32 %v1091_v47, %v808_v43  ;;  %3037 = vmatprep.mubr.f32.mxu1 %v9315_v54  ;;  %v7718_v2 = vpop.f32.mrf.mxu0  ;;  %6570 = vmatpush3.msra.mxu1 %v3861_v45 }
 0x129   : > { %v7720_v4 = vpop.f32.mrf.mxu1  ;;  %6490 = vmatpush3.msra.mxu0 %v3524_v38  ;;  %6571 = vmatprep.subr.mxu1 %v3860_v52  ;;  %v813_v40 = vadd.f32 %v7718_v2, %v7632_v49 }
 0x12a   : > { %6491 = vmatprep.subr.mxu0 %v3523_v63  ;;  %v7723_v44 = vpop.f32.mrf.mxu0  ;;  %2781 = vmatmul.mubr.f32.gmra.mxu0 %v2462_v56 }
 0x12b   : > { %v1097_v61 = vpop.f32.mrf.mxu1  ;;  %3038 = vmatmul.mubr.f32.gmra.mxu1 %v2462_v56  ;;  %2786 = vmatprep.mubr.f32.mxu0 %v9315_v54 }
 0x12c   : > { %v7731_v11 = vadd.f32 %v1097_v61, %v809_v6  ;;  %3043 = vmatprep.mubr.f32.mxu1 %v9315_v54  ;;  %v7735_v12 = vpop.f32.mrf.mxu0  ;;  %6572 = vmatpush3.msra.mxu1 %v3860_v52  ;;  %v3855_v52 = vld [vmem:[%s9312_s1 + $0x258] sm:$0xff] }
 0x12d   : > { %v7737_v53 = vpop.f32.mrf.mxu1  ;;  %6492 = vmatpush3.msra.mxu0 %v3523_v63  ;;  %6573 = vmatprep.subr.mxu1 %v3859_v46  ;;  %v3518_v63 = vld [vmem:[%s9312_s1 + $0x250] sm:$0xff]  ;;  %v2467_v6 = vld [vmem:[#allocation2 + $0x99] sm:$0xff] }
 0x12e   : > { %6493 = vmatprep.subr.mxu0 %v3522_v9  ;;  %v7741_v57 = vpop.f32.mrf.mxu0  ;;  %2787 = vmatmul.mubr.f32.gmra.mxu0 %v2463_v51 }
 0x12f   : > { %v1103_v16 = vpop.f32.mrf.mxu1  ;;  %3044 = vmatmul.mubr.f32.gmra.mxu1 %v2463_v51  ;;  %2792 = vmatprep.mubr.f32.mxu0 %v9315_v54 }
 0x130   : > { %v7749_v19 = vadd.f32 %v1103_v16, %v810_v14  ;;  %3049 = vmatprep.mubr.f32.mxu1 %v9315_v54  ;;  %v7753_v21 = vpop.f32.mrf.mxu0  ;;  %6574 = vmatpush3.msra.mxu1 %v3859_v46 }
 0x131   : > { %v7755_v3 = vpop.f32.mrf.mxu1  ;;  %6494 = vmatpush3.msra.mxu0 %v3522_v9  ;;  %6575 = vmatprep.subr.mxu1 %v3858_v59  ;;  %v814_v9 = vadd.f32 %v7706_v58, %v7632_v49 }
 0x132   : > { %6495 = vmatprep.subr.mxu0 %v3521_v17  ;;  %v6217_v8 = vpop.f32.mrf.mxu0  ;;  %2793 = vmatmul.mubr.f32.gmra.mxu0 %v2464_v0 }
 0x133   : > { %v1109_v10 = vpop.f32.mrf.mxu1  ;;  %3050 = vmatmul.mubr.f32.gmra.mxu1 %v2464_v0  ;;  %v7765_v29 = vadd.f32 %v6217_v8, %v7632_v49  ;;  %2798 = vmatprep.mubr.f32.mxu0 %v9315_v54 }
 0x134   : > { %v7767_v15 = vadd.f32 %v1109_v10, %v811_v24  ;;  %3055 = vmatprep.mubr.f32.mxu1 %v9315_v54  ;;  %v724_v32 = vpop.f32.mrf.mxu0  ;;  %6576 = vmatpush3.msra.mxu1 %v3858_v59  ;;  %v3854_v59 = vld [vmem:[%s9312_s1 + $0x1d8] sm:$0xff]  ;;  %v2468_v24 = vld [vmem:[#allocation2 + $0xa9] sm:$0xff] }
 0x135   : > { %v7771_v34 = vpop.f32.mrf.mxu1  ;;  %6496 = vmatpush3.msra.mxu0 %v3521_v17  ;;  %v7776_v36 = vadd.f32 %v724_v32, %v7632_v49  ;;  %6577 = vmatprep.subr.mxu1 %v3857_v27  ;;  %v3517_v17 = vld [vmem:[%s9312_s1 + $0x1d0] sm:$0xff] }
 0x136   : > { %6497 = vmatprep.subr.mxu0 %v3520_v13  ;;  %v6220_v25 = vpop.f32.mrf.mxu0  ;;  %2799 = vmatmul.mubr.f32.gmra.mxu0 %v2465_v18 }
 0x137   : > { %v1115_v37 = vpop.f32.mrf.mxu1  ;;  %3056 = vmatmul.mubr.f32.gmra.mxu1 %v2465_v18  ;;  %v7785_v33 = vadd.f32 %v6220_v25, %v7632_v49  ;;  %2804 = vmatprep.mubr.f32.mxu0 %v9315_v54  ;;  %v3516_v25 = vld [vmem:[%s9312_s1 + $0x150] sm:$0xff] }
 0x138   : > { %v7787_v42 = vadd.f32 %v1115_v37, %v812_v23  ;;  %3061 = vmatprep.mubr.f32.mxu1 %v9315_v54  ;;  %v734_v45 = vpop.f32.mrf.mxu0  ;;  %6578 = vmatpush3.msra.mxu1 %v3857_v27  ;;  %v815_v27 = vadd.f32 %v7735_v12, %v7632_v49  ;;  %v3853_v23 = vld [vmem:[%s9312_s1 + $0x158] sm:$0xff] }
 0x139   : > { %v7791_v38 = vpop.f32.mrf.mxu1  ;;  %6498 = vmatpush3.msra.mxu0 %v3520_v13  ;;  %v7796_v50 = vadd.f32 %v734_v45, %v7632_v49  ;;  %6579 = vmatprep.subr.mxu1 %v3856_v39  ;;  %v816_v45 = vadd.f32 %v7723_v44, %v7632_v49 }
 0x13a   : > { %6499 = vmatprep.subr.mxu0 %v3519_v30  ;;  %v6223_v43 = vpop.f32.mrf.mxu0  ;;  %2805 = vmatmul.mubr.f32.gmra.mxu0 %v2466_v35 }
 0x13b   : > { %v1121_v47 = vpop.f32.mrf.mxu1  ;;  %3062 = vmatmul.mubr.f32.gmra.mxu1 %v2466_v35  ;;  %v7805_v56 = vadd.f32 %v6223_v43, %v7632_v49  ;;  %2810 = vmatprep.mubr.f32.mxu0 %v9315_v54 }
 0x13c   : > { %v7807_v2 = vadd.f32 %v1121_v47, %v813_v40  ;;  %3067 = vmatprep.mubr.f32.mxu1 %v9315_v54  ;;  %v744_v61 = vpop.f32.mrf.mxu0  ;;  %6580 = vmatpush3.msra.mxu1 %v3856_v39  ;;  %v2469_v39 = vld [vmem:[#allocation2 + $0xb1] sm:$0xff] }
 0x13d   : > { %v7811_v46 = vpop.f32.mrf.mxu1  ;;  %6500 = vmatpush3.msra.mxu0 %v3519_v30  ;;  %v7816_v51 = vadd.f32 %v744_v61, %v7632_v49  ;;  %6581 = vmatprep.subr.mxu1 %v3855_v52  ;;  %v2470_v61 = vld [vmem:[#allocation2 + $0xc1] sm:$0xff] }
 0x13e   : > { %6501 = vmatprep.subr.mxu0 %v3518_v63  ;;  %v6226_v14 = vpop.f32.mrf.mxu0  ;;  %2811 = vmatmul.mubr.f32.gmra.mxu0 %v2467_v6 }
 0x13f   : > { %v1127_v16 = vpop.f32.mrf.mxu1  ;;  %3068 = vmatmul.mubr.f32.gmra.mxu1 %v2467_v6  ;;  %v7825_v0 = vadd.f32 %v6226_v14, %v7632_v49  ;;  %2816 = vmatprep.mubr.f32.mxu0 %v9315_v54 }
 0x140   : > { %v7827_v58 = vadd.f32 %v1127_v16, %v814_v9  ;;  %3073 = vmatprep.mubr.f32.mxu1 %v9315_v54  ;;  %v754_v8 = vpop.f32.mrf.mxu0  ;;  %6582 = vmatpush3.msra.mxu1 %v3855_v52  ;;  %v3852_v52 = vld [vmem:[%s9312_s1 + $0xd8] sm:$0xff]  ;;  %v817_v16 = vadd.f32 %v7753_v21, %v7632_v49 }
 0x141   : > { %v7831_v10 = vpop.f32.mrf.mxu1  ;;  %6502 = vmatpush3.msra.mxu0 %v3518_v63  ;;  %v7836_v13 = vadd.f32 %v754_v8, %v7632_v49  ;;  %6583 = vmatprep.subr.mxu1 %v3854_v59  ;;  %v3515_v63 = vld [vmem:[%s9312_s1 + $0xd0] sm:$0xff]  ;;  %v3851_v8 = vld [vmem:[%s9312_s1 + $0x58] sm:$0xff] }
 0x142   : > { %6503 = vmatprep.subr.mxu0 %v3517_v17  ;;  %v6229_v18 = vpop.f32.mrf.mxu0  ;;  %2817 = vmatmul.mubr.f32.gmra.mxu0 %v2468_v24 }
 0x143   : > { %v1133_v32 = vpop.f32.mrf.mxu1  ;;  %3074 = vmatmul.mubr.f32.gmra.mxu1 %v2468_v24  ;;  %v7845_v37 = vadd.f32 %v6229_v18, %v7632_v49  ;;  %2822 = vmatprep.mubr.f32.mxu0 %v9315_v54  ;;  %v356_v18 = vsub.s32 1, %v7596_v60 }
 0x144   : > { %v7847_v12 = vadd.f32 %v1133_v32, %v815_v27  ;;  %3079 = vmatprep.mubr.f32.mxu1 %v9315_v54  ;;  %v764_v30 = vpop.f32.mrf.mxu0  ;;  %6584 = vmatpush3.msra.mxu1 %v3854_v59  ;;  %v3514_v27 = vld [vmem:[%s9312_s1 + $0x50] sm:$0xff] }
 0x145   : > { %v7851_v35 = vpop.f32.mrf.mxu1  ;;  %6504 = vmatpush3.msra.mxu0 %v3517_v17  ;;  %v7856_v40 = vadd.f32 %v764_v30, %v7632_v49  ;;  %6585 = vmatprep.subr.mxu1 %v3853_v23  ;;  %v818_v30 = vadd.f32 %v7741_v57, %v7632_v49  ;;  %v7908_v57 = vrot.slane %v7623_v7, %v356_v18 }
 0x146   : > { %6505 = vmatprep.subr.mxu0 %v3516_v25  ;;  %v6232_v43 = vpop.f32.mrf.mxu0  ;;  %2823 = vmatmul.mubr.f32.gmra.mxu0 %v2469_v39 }
 0x147   : > { %v1139_v47 = vpop.f32.mrf.mxu1  ;;  %3080 = vmatmul.mubr.f32.gmra.mxu1 %v2469_v39  ;;  %v7865_v6 = vadd.f32 %v6232_v43, %v7632_v49  ;;  %2828 = vmatprep.mubr.f32.mxu0 %v9315_v54 }
 0x148   : > { %v7867_v44 = vadd.f32 %v1139_v47, %v816_v45  ;;  %3085 = vmatprep.mubr.f32.mxu1 %v9315_v54  ;;  %v774_v9 = vpop.f32.mrf.mxu0  ;;  %6586 = vmatpush3.msra.mxu1 %v3853_v23  ;;  %v2471_v23 = vld [vmem:[#allocation2 + $0xc9] sm:$0xff] }
 0x149   : > { %v7871_v14 = vpop.f32.mrf.mxu1  ;;  %6506 = vmatpush3.msra.mxu0 %v3516_v25  ;;  %v7876_v59 = vadd.f32 %v774_v9, %v7632_v49  ;;  %6587 = vmatprep.subr.mxu1 %v3852_v52 }
 0x14a   : > { %6507 = vmatprep.subr.mxu0 %v3515_v63  ;;  %v6235_v17 = vpop.f32.mrf.mxu0  ;;  %2829 = vmatmul.mubr.f32.gmra.mxu0 %v2470_v61 }
 0x14b   : > { %v1145_v24 = vpop.f32.mrf.mxu1  ;;  %3086 = vmatmul.mubr.f32.gmra.mxu1 %v2470_v61  ;;  %v7886_v21 = vadd.f32 %v6235_v17, %v7632_v49  ;;  %2834 = vmatprep.mubr.f32.mxu0 %v9315_v54  ;;  %v4653_v61 = vld [vmem:[%s9312_s1 + $0x7f0] sm:$0xff] }
 0x14c   : > { %v7888_v32 = vadd.f32 %v1145_v24, %v817_v16  ;;  %3091 = vmatprep.mubr.f32.mxu1 %v9315_v54  ;;  %v784_v25 = vpop.f32.mrf.mxu0  ;;  %6588 = vmatpush3.msra.mxu1 %v3852_v52  ;;  %v7905_v52 = vld [vmem:[%s9312_s1 + $0x7e0] sm:$0xff] }
 0x14d   : > { %v7892_v39 = vpop.f32.mrf.mxu1  ;;  %6508 = vmatpush3.msra.mxu0 %v3515_v63  ;;  %v7897_v45 = vadd.f32 %v784_v25, %v7632_v49  ;;  %6589 = vmatprep.subr.mxu1 %v3851_v8  ;;  %v2472_v16 = vld [vmem:[#allocation2 + $0xd9] sm:$0xff] }
 0x14e   : > { %6509 = vmatprep.subr.mxu0 %v3514_v27  ;;  %v6238_v43 = vpop.f32.mrf.mxu0  ;;  %2835 = vmatmul.mubr.f32.gmra.mxu0 %v2471_v23 }
 0x14f   : > { %v1151_v47 = vpop.f32.mrf.mxu1  ;;  %3092 = vmatmul.mubr.f32.gmra.mxu1 %v2471_v23  ;;  %v7911_v63 = vadd.f32 %v6238_v43, %v7632_v49  ;;  %2840 = vmatprep.mubr.f32.mxu0 %v9315_v54  ;;  %v1255_v23 = vadd.f32 %v7660_v26, %v7908_v57 }
 0x150   : > { %v7913_v9 = vadd.f32 %v1151_v47, %v818_v30  ;;  %3097 = vmatprep.mubr.f32.mxu1 %v9315_v54  ;;  %v794_v17 = vpop.f32.mrf.mxu0  ;;  %6590 = vmatpush3.msra.mxu1 %v3851_v8  ;;  %v1253_v30 = vadd.f32 %v7645_v62, %v7908_v57  ;;  %v1259_v47 = vadd.f32 %v7688_v41, %v7908_v57 }
 0x151   : > { %v7917_v24 = vpop.f32.mrf.mxu1  ;;  %6510 = vmatpush3.msra.mxu0 %v3514_v27  ;;  %v7922_v7 = vadd.f32 %v794_v17, %v7632_v49  ;;  %4654 = vmatprep.subr.mxu1 %v4653_v61  ;;  %v2473_v49 = vld [vmem:[#allocation2 + $0xe1] sm:$0xff] }
 0x152   : > { %6639 = vmatprep.subr.mxu0 %v7905_v52  ;;  %v6273_v25 = vpop.f32.mrf.mxu0  ;;  %2841 = vmatmul.mubr.f32.gmra.mxu0 %v2472_v16 }
 0x153   : > { %v1157_v18 = vpop.f32.mrf.mxu1  ;;  %3098 = vmatmul.mubr.f32.gmra.mxu1 %v2472_v16  ;;  %v7930_v8 = vadd.f32 %v6273_v25, %v1255_v23  ;;  %2846 = vmatprep.mubr.f32.mxu0 %v9315_v54 }
 0x154   : > { %v7928_v43 = vadd.f32 %v1157_v18, %v7776_v36  ;;  %3103 = vmatprep.mubr.f32.mxu1 %v9315_v54  ;;  %v1526_v27 = vpop.f32.mrf.mxu0  ;;  %v1257_v36 = vadd.f32 %v7673_v20, %v7908_v57  ;;  %v2474_v18 = vld [vmem:[#allocation2 + $0xf1] sm:$0xff] }
 0x155   : > { %v7934_v26 = vpop.f32.mrf.mxu1  ;;  %v7938_v61 = vadd.f32 %v1526_v27, %v1253_v30  ;;  %v1263_v30 = vadd.f32 %v7720_v4, %v7908_v57 }
 0x156   : > { %v6276_v62 = vpop.f32.mrf.mxu0  ;;  %2847 = vmatmul.mubr.f32.gmra.mxu0 %v2473_v49 }
 0x157   : > { %v1163_v16 = vpop.f32.mrf.mxu1  ;;  %3104 = vmatmul.mubr.f32.gmra.mxu1 %v2473_v49  ;;  %v7945_v23 = vadd.f32 %v6276_v62, %v1259_v47  ;;  %2852 = vmatprep.mubr.f32.mxu0 %v9315_v54  ;;  %v2475_v62 = vld [vmem:[#allocation2 + $0xf9] sm:$0xff] }
 0x158   : > { %v7943_v17 = vadd.f32 %v1163_v16, %v7765_v29  ;;  %3109 = vmatprep.mubr.f32.mxu1 %v9315_v54  ;;  %v1536_v25 = vpop.f32.mrf.mxu0  ;;  %v1261_v29 = vadd.f32 %v7703_v55, %v7908_v57 }
 0x159   : > { %9319 = vst [vmem:[#allocation8_spill] sm:$0xff] %v7945_v23  ;;  %v7949_v41 = vpop.f32.mrf.mxu1  ;;  %v7953_v49 = vadd.f32 %v1536_v25, %v1257_v36  ;;  %v1267_v25 = vadd.f32 %v7755_v3, %v7908_v57 }
 0x15a   : > { %v6279_v20 = vpop.f32.mrf.mxu0  ;;  %2853 = vmatmul.mubr.f32.gmra.mxu0 %v2474_v18 }
 0x15b   : > { %v1169_v27 = vpop.f32.mrf.mxu1  ;;  %3110 = vmatmul.mubr.f32.gmra.mxu1 %v2474_v18  ;;  %v7960_v16 = vadd.f32 %v6279_v20, %v1263_v30  ;;  %2858 = vmatprep.mubr.f32.mxu0 %v9315_v54  ;;  %v2476_v20 = vld [vmem:[#allocation2 + $0x109] sm:$0xff] }
 0x15c   : > { %v7958_v47 = vadd.f32 %v1169_v27, %v7796_v50  ;;  %3115 = vmatprep.mubr.f32.mxu1 %v9315_v54  ;;  %v1546_v36 = vpop.f32.mrf.mxu0  ;;  %v1265_v50 = vadd.f32 %v7737_v53, %v7908_v57 }
 0x15d   : > { %9320 = vst [vmem:[#allocation9_spill] sm:$0xff] %v7960_v16  ;;  %v7964_v4 = vpop.f32.mrf.mxu1  ;;  %v7968_v18 = vadd.f32 %v1546_v36, %v1261_v29  ;;  %v1271_v36 = vadd.f32 %v7791_v38, %v7908_v57 }
 0x15e   : > { %v6282_v55 = vpop.f32.mrf.mxu0  ;;  %2859 = vmatmul.mubr.f32.gmra.mxu0 %v2475_v62 }
 0x15f   : > { %v1175_v23 = vpop.f32.mrf.mxu1  ;;  %3116 = vmatmul.mubr.f32.gmra.mxu1 %v2475_v62  ;;  %v7975_v27 = vadd.f32 %v6282_v55, %v1267_v25  ;;  %2864 = vmatprep.mubr.f32.mxu0 %v9315_v54  ;;  %v2477_v55 = vld [vmem:[#allocation2 + $0x111] sm:$0xff] }
 0x160   : > { %v7973_v30 = vadd.f32 %v1175_v23, %v7785_v33  ;;  %3121 = vmatprep.mubr.f32.mxu1 %v9315_v54  ;;  %v1556_v29 = vpop.f32.mrf.mxu0  ;;  %v1269_v33 = vadd.f32 %v7771_v34, %v7908_v57 }
 0x161   : > { %9321 = vst [vmem:[#allocation10_spill] sm:$0xff] %v7975_v27  ;;  %v7979_v3 = vpop.f32.mrf.mxu1  ;;  %v7983_v62 = vadd.f32 %v1556_v29, %v1265_v50  ;;  %v1275_v29 = vadd.f32 %v7831_v10, %v7908_v57 }
 0x162   : > { %v6285_v53 = vpop.f32.mrf.mxu0  ;;  %2865 = vmatmul.mubr.f32.gmra.mxu0 %v2476_v20 }
 0x163   : > { %v1181_v16 = vpop.f32.mrf.mxu1  ;;  %3122 = vmatmul.mubr.f32.gmra.mxu1 %v2476_v20  ;;  %v7990_v25 = vadd.f32 %v6285_v53, %v1271_v36  ;;  %2870 = vmatprep.mubr.f32.mxu0 %v9315_v54  ;;  %v2478_v53 = vld [vmem:[#allocation2 + $0x121] sm:$0xff] }
 0x164   : > { %v7988_v23 = vadd.f32 %v1181_v16, %v7816_v51  ;;  %3127 = vmatprep.mubr.f32.mxu1 %v9315_v54  ;;  %v1566_v50 = vpop.f32.mrf.mxu0  ;;  %v1273_v51 = vadd.f32 %v7811_v46, %v7908_v57 }
 0x165   : > { %9322 = vst [vmem:[#allocation11_spill] sm:$0xff] %v7990_v25  ;;  %v7994_v38 = vpop.f32.mrf.mxu1  ;;  %v7998_v20 = vadd.f32 %v1566_v50, %v1269_v33  ;;  %v1279_v50 = vadd.f32 %v7871_v14, %v7908_v57 }
 0x166   : > { %v6288_v34 = vpop.f32.mrf.mxu0  ;;  %2871 = vmatmul.mubr.f32.gmra.mxu0 %v2477_v55 }
 0x167   : > { %9323 = vst [vmem:[#allocation12_spill] sm:$0xff] %v7998_v20  ;;  %v1187_v27 = vpop.f32.mrf.mxu1  ;;  %3128 = vmatmul.mubr.f32.gmra.mxu1 %v2477_v55  ;;  %v8005_v36 = vadd.f32 %v6288_v34, %v1275_v29  ;;  %2876 = vmatprep.mubr.f32.mxu0 %v9315_v54  ;;  %v2479_v29 = vld [vmem:[#allocation2 + $0x129] sm:$0xff] }
 0x168   : > { %v8003_v16 = vadd.f32 %v1187_v27, %v7805_v56  ;;  %3133 = vmatprep.mubr.f32.mxu1 %v9315_v54  ;;  %v1576_v33 = vpop.f32.mrf.mxu0  ;;  %v1277_v56 = vadd.f32 %v7851_v35, %v7908_v57 }
 0x169   : > { %9324 = vst [vmem:[#allocation13_spill] sm:$0xff] %v8005_v36  ;;  %v1189_v10 = vpop.f32.mrf.mxu1  ;;  %v8011_v25 = vadd.f32 %v1576_v33, %v1273_v51  ;;  %v1283_v51 = vadd.f32 %v7917_v24, %v7908_v57 }
 0x16a   : > { %v6291_v20 = vpop.f32.mrf.mxu0  ;;  %2877 = vmatmul.mubr.f32.gmra.mxu0 %v2478_v53 }
 0x16b   : > { %9325 = vst [vmem:[#allocation14_spill] sm:$0xff] %v8011_v25  ;;  %v1193_v55 = vpop.f32.mrf.mxu1  ;;  %3134 = vmatmul.mubr.f32.gmra.mxu1 %v2478_v53  ;;  %v8018_v27 = vadd.f32 %v6291_v20, %v1279_v50  ;;  %2882 = vmatprep.mubr.f32.mxu0 %v9315_v54 }
 0x16c   : > { %v8016_v46 = vadd.f32 %v1193_v55, %v7836_v13  ;;  %3139 = vmatprep.mubr.f32.mxu1 %v9315_v54  ;;  %v1586_v34 = vpop.f32.mrf.mxu0  ;;  %v1281_v13 = vadd.f32 %v7892_v39, %v7908_v57  ;;  %v2480_v55 = vld [vmem:[#allocation2 + $0x139] sm:$0xff] }
 0x16d   : > { %9326 = vst [vmem:[#allocation15_spill] sm:$0xff] %v8018_v27  ;;  %v8022_v14 = vpop.f32.mrf.mxu1  ;;  %v8026_v53 = vadd.f32 %v1586_v34, %v1277_v56  ;;  %v1287_v34 = vadd.f32 %v7949_v41, %v7908_v57 }
 0x16e   : > { %v6294_v35 = vpop.f32.mrf.mxu0  ;;  %2883 = vmatmul.mubr.f32.gmra.mxu0 %v2479_v29 }
 0x16f   : > { %9327 = vst [vmem:[#allocation16_spill] sm:$0xff] %v8026_v53  ;;  %v1199_v33 = vpop.f32.mrf.mxu1  ;;  %3140 = vmatmul.mubr.f32.gmra.mxu1 %v2479_v29  ;;  %v8033_v50 = vadd.f32 %v6294_v35, %v1283_v51  ;;  %2888 = vmatprep.mubr.f32.mxu0 %v9315_v54 }
 0x170   : > { %v8031_v20 = vadd.f32 %v1199_v33, %v7825_v0  ;;  %3145 = vmatprep.mubr.f32.mxu1 %v9315_v54  ;;  %v1596_v56 = vpop.f32.mrf.mxu0  ;;  %v1285_v0 = vadd.f32 %v7934_v26, %v7908_v57  ;;  %v2481_v33 = vld [vmem:[#allocation2 + $0x141] sm:$0xff] }
 0x171   : > { %9328 = vst [vmem:[#allocation17_spill] sm:$0xff] %v8033_v50  ;;  %v1201_v24 = vpop.f32.mrf.mxu1  ;;  %v8039_v27 = vadd.f32 %v1596_v56, %v1281_v13  ;;  %v1291_v13 = vadd.f32 %v7979_v3, %v7908_v57 }
 0x172   : > { %v6297_v53 = vpop.f32.mrf.mxu0  ;;  %2889 = vmatmul.mubr.f32.gmra.mxu0 %v2480_v55 }
 0x173   : > { %9329 = vst [vmem:[#allocation18_spill] sm:$0xff] %v8039_v27  ;;  %v1205_v29 = vpop.f32.mrf.mxu1  ;;  %3146 = vmatmul.mubr.f32.gmra.mxu1 %v2480_v55  ;;  %v8046_v51 = vadd.f32 %v6297_v53, %v1287_v34  ;;  %2894 = vmatprep.mubr.f32.mxu0 %v9315_v54  ;;  %v2482_v34 = vld [vmem:[#allocation2 + $0x151] sm:$0xff]  ;;  %v3464_v27 = vld [vmem:[#allocation2 + $0xc2] sm:$0xff] }
 0x174   : > { %v8044_v39 = vadd.f32 %v1205_v29, %v7856_v40  ;;  %3151 = vmatprep.mubr.f32.mxu1 %v9315_v54  ;;  %v1606_v35 = vpop.f32.mrf.mxu0  ;;  %v1289_v40 = vadd.f32 %v7964_v4, %v7908_v57 }
 0x175   : > { %9330 = vst [vmem:[#allocation19_spill] sm:$0xff] %v8046_v51  ;;  %v1207_v41 = vpop.f32.mrf.mxu1  ;;  %v8052_v56 = vadd.f32 %v1606_v35, %v1285_v0  ;;  %v1295_v0 = vadd.f32 %v1189_v10, %v7908_v57 }
 0x176   : > { %v6300_v50 = vpop.f32.mrf.mxu0  ;;  %2895 = vmatmul.mubr.f32.gmra.mxu0 %v2481_v33 }
 0x177   : > { %9331 = vst [vmem:[#allocation20_spill] sm:$0xff] %v8052_v56  ;;  %v1211_v55 = vpop.f32.mrf.mxu1  ;;  %3152 = vmatmul.mubr.f32.gmra.mxu1 %v2481_v33  ;;  %v8059_v53 = vadd.f32 %v6300_v50, %v1291_v13  ;;  %2900 = vmatprep.mubr.f32.mxu0 %v9315_v54  ;;  %v2483_v13 = vld [vmem:[#allocation2 + $0x159] sm:$0xff] }
 0x178   : > { %v8057_v26 = vadd.f32 %v1211_v55, %v7845_v37  ;;  %3157 = vmatprep.mubr.f32.mxu1 %v9315_v54  ;;  %v1616_v29 = vpop.f32.mrf.mxu0  ;;  %v1293_v37 = vadd.f32 %v7994_v38, %v7908_v57 }
 0x179   : > { %9332 = vst [vmem:[#allocation21_spill] sm:$0xff] %v8059_v53  ;;  %v1213_v3 = vpop.f32.mrf.mxu1  ;;  %v8064_v35 = vadd.f32 %v1616_v29, %v1289_v40  ;;  %v1299_v40 = vadd.f32 %v1201_v24, %v7908_v57 }
 0x17a   : > { %v6303_v51 = vpop.f32.mrf.mxu0  ;;  %2901 = vmatmul.mubr.f32.gmra.mxu0 %v2482_v34 }
 0x17b   : > { %9333 = vst [vmem:[#allocation22_spill] sm:$0xff] %v8064_v35  ;;  %v1217_v33 = vpop.f32.mrf.mxu1  ;;  %3158 = vmatmul.mubr.f32.gmra.mxu1 %v2482_v34  ;;  %v8071_v50 = vadd.f32 %v6303_v51, %v1295_v0  ;;  %2906 = vmatprep.mubr.f32.mxu0 %v9315_v54  ;;  %v2484_v0 = vld [vmem:[#allocation2 + $0x169] sm:$0xff] }
 0x17c   : > { %v8069_v4 = vadd.f32 %v1217_v33, %v7876_v59  ;;  %3163 = vmatprep.mubr.f32.mxu1 %v9315_v54  ;;  %v1626_v55 = vpop.f32.mrf.mxu0  ;;  %v1297_v59 = vadd.f32 %v8022_v14, %v7908_v57  ;;  %v3462_v35 = vld [vmem:[#allocation2 + $0xaa] sm:$0xff] }
 0x17d   : > { %9334 = vst [vmem:[#allocation23_spill] sm:$0xff] %v8071_v50  ;;  %v1219_v10 = vpop.f32.mrf.mxu1  ;;  %v8076_v29 = vadd.f32 %v1626_v55, %v1293_v37  ;;  %v1303_v37 = vadd.f32 %v1213_v3, %v7908_v57 }
 0x17e   : > { %v6306_v53 = vpop.f32.mrf.mxu0  ;;  %2907 = vmatmul.mubr.f32.gmra.mxu0 %v2483_v13 }
 0x17f   : > { %9335 = vst [vmem:[#allocation24_spill] sm:$0xff] %v8076_v29  ;;  %v1223_v34 = vpop.f32.mrf.mxu1  ;;  %3164 = vmatmul.mubr.f32.gmra.mxu1 %v2483_v13  ;;  %v8083_v51 = vadd.f32 %v6306_v53, %v1299_v40  ;;  %2912 = vmatprep.mubr.f32.mxu0 %v9315_v54  ;;  %v2485_v40 = vld [vmem:[#allocation2 + $0x171] sm:$0xff] }
 0x180   : > { %v8081_v38 = vadd.f32 %v1223_v34, %v7865_v6  ;;  %3169 = vmatprep.mubr.f32.mxu1 %v9315_v54  ;;  %v1636_v33 = vpop.f32.mrf.mxu0  ;;  %v1301_v6 = vadd.f32 %v1207_v41, %v7908_v57 }
 0x181   : > { %9336 = vst [vmem:[#allocation25_spill] sm:$0xff] %v8083_v51  ;;  %v1225_v24 = vpop.f32.mrf.mxu1  ;;  %v8088_v55 = vadd.f32 %v1636_v33, %v1297_v59 }
 0x182   : > { %v6309_v50 = vpop.f32.mrf.mxu0  ;;  %2913 = vmatmul.mubr.f32.gmra.mxu0 %v2484_v0  ;;  %v1307_v59 = vadd.f32 %v1225_v24, %v7908_v57 }
 0x183   : > { %9337 = vst [vmem:[#allocation26_spill] sm:$0xff] %v8088_v55  ;;  %v1229_v13 = vpop.f32.mrf.mxu1  ;;  %3170 = vmatmul.mubr.f32.gmra.mxu1 %v2484_v0  ;;  %v8094_v53 = vadd.f32 %v6309_v50, %v1303_v37  ;;  %2918 = vmatprep.mubr.f32.mxu0 %v9315_v54  ;;  %v2486_v37 = vld [vmem:[#allocation2 + $0x181] sm:$0xff]  ;;  %v3460_v55 = vld [vmem:[#allocation2 + $0x92] sm:$0xff] }
 0x184   : > { %v8092_v14 = vadd.f32 %v1229_v13, %v7897_v45  ;;  %3175 = vmatprep.mubr.f32.mxu1 %v9315_v54  ;;  %v1646_v3 = vpop.f32.mrf.mxu0  ;;  %v1305_v45 = vadd.f32 %v1219_v10, %v7908_v57 }
 0x185   : > { %9338 = vst [vmem:[#allocation27_spill] sm:$0xff] %v8094_v53  ;;  %v1231_v34 = vpop.f32.mrf.mxu1  ;;  %v8099_v33 = vadd.f32 %v1646_v3, %v1301_v6 }
 0x186   : > { %v6312_v0 = vpop.f32.mrf.mxu0  ;;  %2919 = vmatmul.mubr.f32.gmra.mxu0 %v2485_v40 }
 0x187   : > { %9339 = vst [vmem:[#allocation28_spill] sm:$0xff] %v8099_v33  ;;  %v1235_v51 = vpop.f32.mrf.mxu1  ;;  %3176 = vmatmul.mubr.f32.gmra.mxu1 %v2485_v40  ;;  %v8105_v50 = vadd.f32 %v6312_v0, %v1307_v59  ;;  %2924 = vmatprep.mubr.f32.mxu0 %v9315_v54  ;;  %v2487_v59 = vld [vmem:[#allocation2 + $0x189] sm:$0xff] }
 0x188   : > { %v8103_v41 = vadd.f32 %v1235_v51, %v7886_v21  ;;  %3181 = vmatprep.mubr.f32.mxu1 %v9315_v54  ;;  %v1656_v24 = vpop.f32.mrf.mxu0  ;;  %v1309_v21 = vadd.f32 %v1231_v34, %v7908_v57 }
 0x189   : > { %9340 = vst [vmem:[#allocation29_spill] sm:$0xff] %v8105_v50  ;;  %v1237_v13 = vpop.f32.mrf.mxu1  ;;  %v8110_v3 = vadd.f32 %v1656_v24, %v1305_v45  ;;  %v3450_v45 = vld [vmem:[#allocation2 + $0x1a] sm:$0xff] }
 0x18a   : > { %v1311_v6 = vadd.f32 %v1237_v13, %v7908_v57  ;;  %v6315_v40 = vpop.f32.mrf.mxu0  ;;  %2925 = vmatmul.mubr.f32.gmra.mxu0 %v2486_v37 }
 0x18b   : > { %9341 = vst [vmem:[#allocation30_spill] sm:$0xff] %v8110_v3  ;;  %v1241_v53 = vpop.f32.mrf.mxu1  ;;  %3182 = vmatmul.mubr.f32.gmra.mxu1 %v2486_v37  ;;  %2930 = vmatprep.mubr.f32.mxu0 %v9315_v54 }
 0x18c   : > { %v8114_v10 = vadd.f32 %v1241_v53, %v7922_v7  ;;  %v8116_v51 = vadd.f32 %v6315_v40, %v1311_v6  ;;  %3187 = vmatprep.mubr.f32.mxu1 %v9315_v54  ;;  %v1666_v13 = vpop.f32.mrf.mxu0  ;;  %v3451_v53 = vld [vmem:[#allocation2 + $0x22] sm:$0xff] }
 0x18d   : > { %v1243_v0 = vpop.f32.mrf.mxu1  ;;  %v8120_v24 = vadd.f32 %v1666_v13, %v1309_v21  ;;  %v4652_v40 = vld [vmem:[%s9312_s1 + $0x7e8] sm:$0xff]  ;;  %v3452_v21 = vld [vmem:[#allocation2 + $0x32] sm:$0xff] }
 0x18e   : > { %9342 = vst [vmem:[#allocation31_spill] sm:$0xff] %v8116_v51  ;;  %v6318_v3 = vpop.f32.mrf.mxu0  ;;  %2931 = vmatmul.mubr.f32.gmra.mxu0 %v2487_v59  ;;  %v1313_v34 = vadd.f32 %v1243_v0, %v7908_v57 }
 0x18f   : > { %9343 = vst [vmem:[#allocation32_spill] sm:$0xff] %v8120_v24  ;;  %v1247_v50 = vpop.f32.mrf.mxu1  ;;  %3188 = vmatmul.mubr.f32.gmra.mxu1 %v2487_v59  ;;  %6511 = vmatprep.mubr.f32.mxu0 %v3450_v45  ;;  %v3458_v24 = vld [vmem:[#allocation2 + $0x7a] sm:$0xff] }
 0x190   : > { %v8124_v7 = vadd.f32 %v1247_v50, %v7911_v63  ;;  %6591 = vmatprep.mubr.f32.mxu1 %v3450_v45  ;;  %v1676_v6 = vpop.f32.mrf.mxu0  ;;  %v4651_v63 = vld [vmem:[%s9312_s1 + $0x770] sm:$0xff]  ;;  %v4235_v50 = vld [vmem:[%s9312_s1 + $0x760] sm:$0xff] }
 0x191   : > { %v1249_v37 = vpop.f32.mrf.mxu1  ;;  %v8130_v54 = vadd.f32 %v1676_v6, %v1313_v34  ;;  %v3454_v6 = vld [vmem:[#allocation2 + $0x4a] sm:$0xff] }
 0x192   : > { %v1315_v13 = vadd.f32 %v1249_v37, %v7908_v57  ;;  %v6353_v59 = vpop.f32.mrf.mxu0  ;;  %6512 = vmatmul.mubr.f32.vlgmr.msra.gmra.mxu0 %v3451_v53  ;;  %v3453_v57 = vld [vmem:[#allocation2 + $0x3a] sm:$0xff] }
 0x193   : > { %9344 = vst [vmem:[#allocation33_spill] sm:$0xff] %v8130_v54  ;;  %v8132_v51 = vpop.f32.mrf.mxu1  ;;  %6592 = vmatmul.mubr.f32.vlgmr.msra.gmra.mxu1 %v3451_v53  ;;  %v8141_v0 = vadd.f32 %v6353_v59, %v7656_v5  ;;  %6514 = vmatprep.mubr.f32.mxu0 %v3452_v21  ;;  %v4650_v53 = vld [vmem:[%s9312_s1 + $0x768] sm:$0xff] }
 0x194   : > { %4655 = vmatpush1.msra.mxu1 %v4652_v40  ;;  %v8143_v45 = vadd.f32 %v6318_v3, %v1315_v13  ;;  %v8145_v34 = vpop.f32.mrf.mxu0  ;;  %6594 = vmatprep.mubr.f32.mxu1 %v3452_v21  ;;  %v4649_v3 = vld [vmem:[%s9312_s1 + $0x6f0] sm:$0xff] }
 0x195   : > { %v8147_v37 = vpop.f32.mrf.mxu1  ;;  %6640 = vmatpush3.msra.mxu0 %v7905_v52  ;;  %4656 = vmatprep.subr.mxu1 %v4651_v63  ;;  %v4234_v52 = vld [vmem:[%s9312_s1 + $0x6e0] sm:$0xff]  ;;  %v3455_v13 = vld [vmem:[#allocation2 + $0x52] sm:$0xff] }
 0x196   : > { %9345 = vst [vmem:[#allocation34_spill] sm:$0xff] %v8143_v45  ;;  %6641 = vmatprep.subr.mxu0 %v4235_v50  ;;  %v6356_v5 = vpop.f32.mrf.mxu0  ;;  %6515 = vmatmul.mubr.f32.gmra.mxu0 %v3453_v57  ;;  %v3456_v45 = vld [vmem:[#allocation2 + $0x62] sm:$0xff] }
 0x197   : > { %v8153_v40 = vpop.f32.mrf.mxu1  ;;  %6595 = vmatmul.mubr.f32.gmra.mxu1 %v3453_v57  ;;  %v8162_v21 = vadd.f32 %v6356_v5, %v7684_v28  ;;  %6517 = vmatprep.mubr.f32.mxu0 %v3454_v6  ;;  %v4648_v57 = vld [vmem:[%s9312_s1 + $0x6e8] sm:$0xff] }
 0x198   : > { %4657 = vmatpush1.msra.mxu1 %v4650_v53  ;;  %v1906_v59 = vpop.f32.mrf.mxu0  ;;  %6597 = vmatprep.mubr.f32.mxu1 %v3454_v6  ;;  %v4647_v53 = vld [vmem:[%s9312_s1 + $0x670] sm:$0xff] }
 0x199   : > { %v8164_v63 = vpop.f32.mrf.mxu1  ;;  %6642 = vmatpush3.msra.mxu0 %v4235_v50  ;;  %v8170_v54 = vadd.f32 %v1906_v59, %v7669_v31  ;;  %4658 = vmatprep.subr.mxu1 %v4649_v3  ;;  %v4233_v50 = vld [vmem:[%s9312_s1 + $0x660] sm:$0xff]  ;;  %v3457_v31 = vld [vmem:[#allocation2 + $0x6a] sm:$0xff] }
 0x19a   : > { %6643 = vmatprep.subr.mxu0 %v4234_v52  ;;  %v6359_v28 = vpop.f32.mrf.mxu0  ;;  %6518 = vmatmul.mubr.f32.gmra.mxu0 %v3455_v13 }
 0x19b   : > { %v8172_v5 = vpop.f32.mrf.mxu1  ;;  %6598 = vmatmul.mubr.f32.gmra.mxu1 %v3455_v13  ;;  %v8181_v6 = vadd.f32 %v6359_v28, %v7714_v1  ;;  %6520 = vmatprep.mubr.f32.mxu0 %v3456_v45  ;;  %v4646_v13 = vld [vmem:[%s9312_s1 + $0x668] sm:$0xff] }
 0x19c   : > { %4659 = vmatpush1.msra.mxu1 %v4648_v57  ;;  %v1916_v3 = vpop.f32.mrf.mxu0  ;;  %6600 = vmatprep.mubr.f32.mxu1 %v3456_v45  ;;  %v4645_v45 = vld [vmem:[%s9312_s1 + $0x5f0] sm:$0xff] }
 0x19d   : > { %v8183_v59 = vpop.f32.mrf.mxu1  ;;  %6644 = vmatpush3.msra.mxu0 %v4234_v52  ;;  %v8189_v33 = vadd.f32 %v1916_v3, %v7699_v48  ;;  %4660 = vmatprep.subr.mxu1 %v4647_v53  ;;  %v4232_v52 = vld [vmem:[%s9312_s1 + $0x5e0] sm:$0xff] }
 0x19e   : > { %6645 = vmatprep.subr.mxu0 %v4233_v50  ;;  %v6362_v1 = vpop.f32.mrf.mxu0  ;;  %6521 = vmatmul.mubr.f32.gmra.mxu0 %v3457_v31  ;;  %v3459_v48 = vld [vmem:[#allocation2 + $0x82] sm:$0xff] }
 0x19f   : > { %v8191_v28 = vpop.f32.mrf.mxu1  ;;  %6601 = vmatmul.mubr.f32.gmra.mxu1 %v3457_v31  ;;  %v8200_v57 = vadd.f32 %v6362_v1, %v7749_v19  ;;  %6523 = vmatprep.mubr.f32.mxu0 %v3458_v24  ;;  %v4644_v31 = vld [vmem:[%s9312_s1 + $0x5e8] sm:$0xff] }
 0x1a0   : > { %4661 = vmatpush1.msra.mxu1 %v4646_v13  ;;  %v1926_v53 = vpop.f32.mrf.mxu0  ;;  %6603 = vmatprep.mubr.f32.mxu1 %v3458_v24  ;;  %v4643_v24 = vld [vmem:[%s9312_s1 + $0x570] sm:$0xff] }
 0x1a1   : > { %v8202_v3 = vpop.f32.mrf.mxu1  ;;  %6646 = vmatpush3.msra.mxu0 %v4233_v50  ;;  %v8208_v29 = vadd.f32 %v1926_v53, %v7731_v11  ;;  %4662 = vmatprep.subr.mxu1 %v4645_v45  ;;  %v4231_v50 = vld [vmem:[%s9312_s1 + $0x560] sm:$0xff] }
 0x1a2   : > { %6647 = vmatprep.subr.mxu0 %v4232_v52  ;;  %v6365_v19 = vpop.f32.mrf.mxu0  ;;  %6524 = vmatmul.mubr.f32.gmra.mxu0 %v3459_v48  ;;  %v3461_v11 = vld [vmem:[#allocation2 + $0x9a] sm:$0xff] }
 0x1a3   : > { %v8210_v1 = vpop.f32.mrf.mxu1  ;;  %6604 = vmatmul.mubr.f32.gmra.mxu1 %v3459_v48  ;;  %v8219_v13 = vadd.f32 %v6365_v19, %v7787_v42  ;;  %6526 = vmatprep.mubr.f32.mxu0 %v3460_v55  ;;  %v4642_v48 = vld [vmem:[%s9312_s1 + $0x568] sm:$0xff] }
 0x1a4   : > { %4663 = vmatpush1.msra.mxu1 %v4644_v31  ;;  %v1936_v45 = vpop.f32.mrf.mxu0  ;;  %6606 = vmatprep.mubr.f32.mxu1 %v3460_v55  ;;  %v4641_v55 = vld [vmem:[%s9312_s1 + $0x4f0] sm:$0xff] }
 0x1a5   : > { %v8221_v53 = vpop.f32.mrf.mxu1  ;;  %6648 = vmatpush3.msra.mxu0 %v4232_v52  ;;  %v8227_v56 = vadd.f32 %v1936_v45, %v7767_v15  ;;  %4664 = vmatprep.subr.mxu1 %v4643_v24  ;;  %v4230_v52 = vld [vmem:[%s9312_s1 + $0x4e0] sm:$0xff]  ;;  %v3463_v15 = vld [vmem:[#allocation2 + $0xb2] sm:$0xff] }
 0x1a6   : > { %6649 = vmatprep.subr.mxu0 %v4231_v50  ;;  %v6368_v42 = vpop.f32.mrf.mxu0  ;;  %6527 = vmatmul.mubr.f32.gmra.mxu0 %v3461_v11 }
 0x1a7   : > { %v8229_v19 = vpop.f32.mrf.mxu1  ;;  %6607 = vmatmul.mubr.f32.gmra.mxu1 %v3461_v11  ;;  %v8238_v31 = vadd.f32 %v6368_v42, %v7827_v58  ;;  %6529 = vmatprep.mubr.f32.mxu0 %v3462_v35  ;;  %v4640_v11 = vld [vmem:[%s9312_s1 + $0x4e8] sm:$0xff] }
 0x1a8   : > { %4665 = vmatpush1.msra.mxu1 %v4642_v48  ;;  %v1946_v24 = vpop.f32.mrf.mxu0  ;;  %6609 = vmatprep.mubr.f32.mxu1 %v3462_v35  ;;  %v4639_v35 = vld [vmem:[%s9312_s1 + $0x470] sm:$0xff] }
 0x1a9   : > { %9346 = vst [vmem:[#allocation35_spill] sm:$0xff] %v8238_v31  ;;  %v8240_v45 = vpop.f32.mrf.mxu1  ;;  %6650 = vmatpush3.msra.mxu0 %v4231_v50  ;;  %v8246_v36 = vadd.f32 %v1946_v24, %v7807_v2  ;;  %4666 = vmatprep.subr.mxu1 %v4641_v55  ;;  %v4229_v50 = vld [vmem:[%s9312_s1 + $0x460] sm:$0xff]  ;;  %v3465_v2 = vld [vmem:[#allocation2 + $0xca] sm:$0xff]  ;;  %v360_v31 = vsub.s32 2, %v7596_v60  ;;  %v3468_v60 = vld [vmem:[#allocation2 + $0xf2] sm:$0xff] }
 0x1aa   : > { %6651 = vmatprep.subr.mxu0 %v4230_v52  ;;  %v6371_v58 = vpop.f32.mrf.mxu0  ;;  %6530 = vmatmul.mubr.f32.gmra.mxu0 %v3463_v15 }
 0x1ab   : > { %v8248_v42 = vpop.f32.mrf.mxu1  ;;  %6610 = vmatmul.mubr.f32.gmra.mxu1 %v3463_v15  ;;  %v8257_v48 = vadd.f32 %v6371_v58, %v7867_v44  ;;  %6532 = vmatprep.mubr.f32.mxu0 %v3464_v27  ;;  %v4638_v15 = vld [vmem:[%s9312_s1 + $0x468] sm:$0xff] }
 0x1ac   : > { %9347 = vst [vmem:[#allocation36_spill] sm:$0xff] %v8248_v42  ;;  %4667 = vmatpush1.msra.mxu1 %v4640_v11  ;;  %v1956_v55 = vpop.f32.mrf.mxu0  ;;  %6612 = vmatprep.mubr.f32.mxu1 %v3464_v27  ;;  %v3466_v42 = vld [vmem:[#allocation2 + $0xda] sm:$0xff]  ;;  %v4637_v27 = vld [vmem:[%s9312_s1 + $0x3f0] sm:$0xff] }
 0x1ad   : > { %9348 = vst [vmem:[#allocation37_spill] sm:$0xff] %v8257_v48  ;;  %v8259_v24 = vpop.f32.mrf.mxu1  ;;  %6652 = vmatpush3.msra.mxu0 %v4230_v52  ;;  %v8266_v25 = vadd.f32 %v1956_v55, %v7847_v12  ;;  %4668 = vmatprep.subr.mxu1 %v4639_v35  ;;  %v4228_v52 = vld [vmem:[%s9312_s1 + $0x3e0] sm:$0xff] }
 0x1ae   : > { %6653 = vmatprep.subr.mxu0 %v4229_v50  ;;  %v6374_v44 = vpop.f32.mrf.mxu0  ;;  %6533 = vmatmul.mubr.f32.gmra.mxu0 %v3465_v2  ;;  %v3467_v12 = vld [vmem:[#allocation2 + $0xe2] sm:$0xff] }
 0x1af   : > { %v8268_v11 = vpop.f32.mrf.mxu1  ;;  %6613 = vmatmul.mubr.f32.gmra.mxu1 %v3465_v2  ;;  %v8277_v58 = vadd.f32 %v6374_v44, %v7913_v9  ;;  %6535 = vmatprep.mubr.f32.mxu0 %v3466_v42  ;;  %v4636_v2 = vld [vmem:[%s9312_s1 + $0x3e8] sm:$0xff] }
 0x1b0   : > { %9349 = vst [vmem:[#allocation38_spill] sm:$0xff] %v8268_v11  ;;  %4669 = vmatpush1.msra.mxu1 %v4638_v15  ;;  %v1966_v35 = vpop.f32.mrf.mxu0  ;;  %6615 = vmatprep.mubr.f32.mxu1 %v3466_v42  ;;  %v6824_v11 = vld [vmem:[%s9313_s2] sm:$0xf]  ;;  %v4635_v42 = vld [vmem:[%s9312_s1 + $0x370] sm:$0xff] }
 0x1b1   : > { %9350 = vst [vmem:[#allocation39_spill] sm:$0xff] %v8277_v58  ;;  %v8279_v55 = vpop.f32.mrf.mxu1  ;;  %6654 = vmatpush3.msra.mxu0 %v4229_v50  ;;  %v8287_v48 = vrot.slane %v6824_v11, %v360_v31  ;;  %v8290_v9 = vadd.f32 %v1966_v35, %v7888_v32  ;;  %4670 = vmatprep.subr.mxu1 %v4637_v27  ;;  %v4227_v50 = vld [vmem:[%s9312_s1 + $0x360] sm:$0xff]  ;;  %v3470_v58 = vld [vmem:[#allocation2 + $0x10a] sm:$0xff] }
 0x1b2   : > { %6655 = vmatprep.subr.mxu0 %v4228_v52  ;;  %v6377_v15 = vpop.f32.mrf.mxu0  ;;  %6536 = vmatmul.mubr.f32.gmra.mxu0 %v3467_v12  ;;  %v3469_v11 = vld [vmem:[#allocation2 + $0xfa] sm:$0xff] }
 0x1b3   : > { %9351 = vst [vmem:[#allocation40_spill] sm:$0xff] %v8290_v9  ;;  %v6457_v44 = vpop.f32.mrf.mxu1  ;;  %6616 = vmatmul.mubr.f32.gmra.mxu1 %v3467_v12  ;;  %v8299_v31 = vadd.f32 %v6377_v15, %v7943_v17  ;;  %6538 = vmatprep.mubr.f32.mxu0 %v3468_v60  ;;  %v4634_v12 = vld [vmem:[%s9312_s1 + $0x368] sm:$0xff] }
 0x1b4   : > { %v8302_v32 = vadd.f32 %v6457_v44, %v8287_v48  ;;  %4671 = vmatpush1.msra.mxu1 %v4636_v2  ;;  %v1976_v27 = vpop.f32.mrf.mxu0  ;;  %6618 = vmatprep.mubr.f32.mxu1 %v3468_v60  ;;  %v4633_v2 = vld [vmem:[%s9312_s1 + $0x2f0] sm:$0xff]  ;;  %v4226_v60 = vld [vmem:[%s9312_s1 + $0x2e0] sm:$0xff] }
 0x1b5   : > { %9352 = vst [vmem:[#allocation41_spill] sm:$0xff] %v8299_v31  ;;  %v8304_v35 = vpop.f32.mrf.mxu1  ;;  %6656 = vmatpush3.msra.mxu0 %v4228_v52  ;;  %v8310_v9 = vadd.f32 %v1976_v27, %v7928_v43  ;;  %4672 = vmatprep.subr.mxu1 %v4635_v42  ;;  %v3471_v44 = vld [vmem:[#allocation2 + $0x112] sm:$0xff] }
 0x1b6   : > { %9353 = vst [vmem:[#allocation42_spill] sm:$0xff] %v8302_v32  ;;  %6657 = vmatprep.subr.mxu0 %v4227_v50  ;;  %v6380_v17 = vpop.f32.mrf.mxu0  ;;  %6539 = vmatmul.mubr.f32.gmra.mxu0 %v3469_v11  ;;  %v3472_v32 = vld [vmem:[#allocation2 + $0x122] sm:$0xff] }
 0x1b7   : > { %v6460_v15 = vpop.f32.mrf.mxu1  ;;  %6619 = vmatmul.mubr.f32.gmra.mxu1 %v3469_v11  ;;  %v8319_v52 = vadd.f32 %v6380_v17, %v7973_v30  ;;  %6541 = vmatprep.mubr.f32.mxu0 %v3470_v58  ;;  %v4632_v11 = vld [vmem:[%s9312_s1 + $0x2e8] sm:$0xff] }
 0x1b8   : > { %v8322_v43 = vadd.f32 %v6460_v15, %v8287_v48  ;;  %4673 = vmatpush1.msra.mxu1 %v4634_v12  ;;  %v1986_v42 = vpop.f32.mrf.mxu0  ;;  %6621 = vmatprep.mubr.f32.mxu1 %v3470_v58  ;;  %v4631_v58 = vld [vmem:[%s9312_s1 + $0x270] sm:$0xff] }
 0x1b9   : > { %9354 = vst [vmem:[#allocation43_spill] sm:$0xff] %v8319_v52  ;;  %v2323_v27 = vpop.f32.mrf.mxu1  ;;  %6658 = vmatpush3.msra.mxu0 %v4227_v50  ;;  %v8328_v31 = vadd.f32 %v1986_v42, %v7958_v47  ;;  %4674 = vmatprep.subr.mxu1 %v4633_v2  ;;  %v4225_v50 = vld [vmem:[%s9312_s1 + $0x260] sm:$0xff]  ;;  %v3473_v2 = vld [vmem:[#allocation2 + $0x12a] sm:$0xff] }
 0x1ba   : > { %9355 = vst [vmem:[#allocation44_spill] sm:$0xff] %v8322_v43  ;;  %v8331_v30 = vadd.f32 %v2323_v27, %v8287_v48  ;;  %6659 = vmatprep.subr.mxu0 %v4226_v60  ;;  %v6383_v12 = vpop.f32.mrf.mxu0  ;;  %6542 = vmatmul.mubr.f32.gmra.mxu0 %v3471_v44  ;;  %v3474_v43 = vld [vmem:[#allocation2 + $0x13a] sm:$0xff] }
 0x1bb   : > { %v6463_v17 = vpop.f32.mrf.mxu1  ;;  %6622 = vmatmul.mubr.f32.gmra.mxu1 %v3471_v44  ;;  %v8340_v47 = vadd.f32 %v6383_v12, %v8003_v16  ;;  %6544 = vmatprep.mubr.f32.mxu0 %v3472_v32  ;;  %v4630_v44 = vld [vmem:[%s9312_s1 + $0x268] sm:$0xff] }
 0x1bc   : > { %v8343_v15 = vadd.f32 %v6463_v17, %v8287_v48  ;;  %4675 = vmatpush1.msra.mxu1 %v4632_v11  ;;  %v1996_v42 = vpop.f32.mrf.mxu0  ;;  %6624 = vmatprep.mubr.f32.mxu1 %v3472_v32  ;;  %v4629_v32 = vld [vmem:[%s9312_s1 + $0x1f0] sm:$0xff] }
 0x1bd   : > { %9356 = vst [vmem:[#allocation45_spill] sm:$0xff] %v8340_v47  ;;  %v2333_v27 = vpop.f32.mrf.mxu1  ;;  %6660 = vmatpush3.msra.mxu0 %v4226_v60  ;;  %v8349_v52 = vadd.f32 %v1996_v42, %v7988_v23  ;;  %4676 = vmatprep.subr.mxu1 %v4631_v58  ;;  %v4224_v60 = vld [vmem:[%s9312_s1 + $0x1e0] sm:$0xff] }
 0x1be   : > { %9357 = vst [vmem:[#allocation46_spill] sm:$0xff] %v8343_v15  ;;  %v8352_v16 = vadd.f32 %v2333_v27, %v8287_v48  ;;  %6661 = vmatprep.subr.mxu0 %v4225_v50  ;;  %v6386_v11 = vpop.f32.mrf.mxu0  ;;  %6545 = vmatmul.mubr.f32.gmra.mxu0 %v3473_v2  ;;  %v3475_v58 = vld [vmem:[#allocation2 + $0x142] sm:$0xff]  ;;  %v3476_v15 = vld [vmem:[#allocation2 + $0x152] sm:$0xff] }
 0x1bf   : > { %v6466_v12 = vpop.f32.mrf.mxu1  ;;  %6625 = vmatmul.mubr.f32.gmra.mxu1 %v3473_v2  ;;  %v8361_v23 = vadd.f32 %v6386_v11, %v8031_v20  ;;  %6547 = vmatprep.mubr.f32.mxu0 %v3474_v43  ;;  %v4628_v2 = vld [vmem:[%s9312_s1 + $0x1e8] sm:$0xff] }
 0x1c0   : > { %v8364_v17 = vadd.f32 %v6466_v12, %v8287_v48  ;;  %4677 = vmatpush1.msra.mxu1 %v4630_v44  ;;  %v2006_v42 = vpop.f32.mrf.mxu0  ;;  %6627 = vmatprep.mubr.f32.mxu1 %v3474_v43  ;;  %v4627_v43 = vld [vmem:[%s9312_s1 + $0x170] sm:$0xff] }
 0x1c1   : > { %9358 = vst [vmem:[#allocation47_spill] sm:$0xff] %v8361_v23  ;;  %v2343_v27 = vpop.f32.mrf.mxu1  ;;  %6662 = vmatpush3.msra.mxu0 %v4225_v50  ;;  %v8370_v47 = vadd.f32 %v2006_v42, %v8016_v46  ;;  %4678 = vmatprep.subr.mxu1 %v4629_v32  ;;  %v4223_v50 = vld [vmem:[%s9312_s1 + $0x160] sm:$0xff] }
 0x1c2   : > { %9359 = vst [vmem:[#allocation48_spill] sm:$0xff] %v8364_v17  ;;  %v8373_v20 = vadd.f32 %v2343_v27, %v8287_v48  ;;  %6663 = vmatprep.subr.mxu0 %v4224_v60  ;;  %v6389_v44 = vpop.f32.mrf.mxu0  ;;  %6548 = vmatmul.mubr.f32.gmra.mxu0 %v3475_v58  ;;  %v3477_v32 = vld [vmem:[#allocation2 + $0x15a] sm:$0xff]  ;;  %v3478_v17 = vld [vmem:[#allocation2 + $0x16a] sm:$0xff] }
 0x1c3   : > { %v6469_v11 = vpop.f32.mrf.mxu1  ;;  %6628 = vmatmul.mubr.f32.gmra.mxu1 %v3475_v58  ;;  %v8382_v46 = vadd.f32 %v6389_v44, %v8057_v26  ;;  %6550 = vmatprep.mubr.f32.mxu0 %v3476_v15  ;;  %v4626_v58 = vld [vmem:[%s9312_s1 + $0x168] sm:$0xff] }
 0x1c4   : > { %v8385_v12 = vadd.f32 %v6469_v11, %v8287_v48  ;;  %4679 = vmatpush1.msra.mxu1 %v4628_v2  ;;  %v2016_v42 = vpop.f32.mrf.mxu0  ;;  %6630 = vmatprep.mubr.f32.mxu1 %v3476_v15  ;;  %v4625_v15 = vld [vmem:[%s9312_s1 + $0xf0] sm:$0xff] }
 0x1c5   : > { %9360 = vst [vmem:[#allocation49_spill] sm:$0xff] %v8382_v46  ;;  %v2353_v27 = vpop.f32.mrf.mxu1  ;;  %6664 = vmatpush3.msra.mxu0 %v4224_v60  ;;  %v8391_v23 = vadd.f32 %v2016_v42, %v8044_v39  ;;  %4680 = vmatprep.subr.mxu1 %v4627_v43  ;;  %v4222_v60 = vld [vmem:[%s9312_s1 + $0xe0] sm:$0xff]  ;;  %v3479_v43 = vld [vmem:[#allocation2 + $0x172] sm:$0xff] }
 0x1c6   : > { %9361 = vst [vmem:[#allocation50_spill] sm:$0xff] %v8385_v12  ;;  %v8394_v26 = vadd.f32 %v2353_v27, %v8287_v48  ;;  %6665 = vmatprep.subr.mxu0 %v4223_v50  ;;  %v6392_v2 = vpop.f32.mrf.mxu0  ;;  %6551 = vmatmul.mubr.f32.gmra.mxu0 %v3477_v32  ;;  %v3480_v12 = vld [vmem:[#allocation2 + $0x182] sm:$0xff] }
 0x1c7   : > { %v6472_v44 = vpop.f32.mrf.mxu1  ;;  %6631 = vmatmul.mubr.f32.gmra.mxu1 %v3477_v32  ;;  %v8403_v39 = vadd.f32 %v6392_v2, %v8081_v38  ;;  %6553 = vmatprep.mubr.f32.mxu0 %v3478_v17  ;;  %v4624_v32 = vld [vmem:[%s9312_s1 + $0xe8] sm:$0xff] }
 0x1c8   : > { %v8406_v11 = vadd.f32 %v6472_v44, %v8287_v48  ;;  %4681 = vmatpush1.msra.mxu1 %v4626_v58  ;;  %v2026_v42 = vpop.f32.mrf.mxu0  ;;  %6633 = vmatprep.mubr.f32.mxu1 %v3478_v17  ;;  %v4623_v17 = vld [vmem:[%s9312_s1 + $0x70] sm:$0xff] }
 0x1c9   : > { %v2363_v27 = vpop.f32.mrf.mxu1  ;;  %6666 = vmatpush3.msra.mxu0 %v4223_v50  ;;  %v8412_v46 = vadd.f32 %v2026_v42, %v8069_v4  ;;  %4682 = vmatprep.subr.mxu1 %v4625_v15  ;;  %v4221_v50 = vld [vmem:[%s9312_s1 + $0x60] sm:$0xff]  ;;  %v3481_v15 = vld [vmem:[#allocation2 + $0x18a] sm:$0xff] }
 0x1ca   : > { %9362 = vst [vmem:[#allocation51_spill] sm:$0xff] %v8406_v11  ;;  %v8415_v38 = vadd.f32 %v2363_v27, %v8287_v48  ;;  %6667 = vmatprep.subr.mxu0 %v4222_v60  ;;  %v6395_v58 = vpop.f32.mrf.mxu0  ;;  %6554 = vmatmul.mubr.f32.gmra.mxu0 %v3479_v43 }
 0x1cb   : > { %v6475_v2 = vpop.f32.mrf.mxu1  ;;  %6634 = vmatmul.mubr.f32.gmra.mxu1 %v3479_v43  ;;  %v8424_v4 = vadd.f32 %v6395_v58, %v8103_v41  ;;  %6556 = vmatprep.mubr.f32.mxu0 %v3480_v12  ;;  %v4622_v43 = vld [vmem:[%s9312_s1 + $0x68] sm:$0xff]  ;;  %v4157_v58 = vld [vmem:[#allocation2 + $0x30] sm:$0xff] }
 0x1cc   : > { %v8427_v44 = vadd.f32 %v6475_v2, %v8287_v48  ;;  %4683 = vmatpush1.msra.mxu1 %v4624_v32  ;;  %v2036_v42 = vpop.f32.mrf.mxu0  ;;  %6636 = vmatprep.mubr.f32.mxu1 %v3480_v12  ;;  %v5118_v12 = vld [vmem:[%s9312_s1 + $0x7f8] sm:$0xff] }
 0x1cd   : > { %9363 = vst [vmem:[#allocation52_spill] sm:$0xff] %v8424_v4  ;;  %v2373_v27 = vpop.f32.mrf.mxu1  ;;  %6668 = vmatpush3.msra.mxu0 %v4222_v60  ;;  %v8433_v11 = vadd.f32 %v2036_v42, %v8092_v14  ;;  %4684 = vmatprep.subr.mxu1 %v4623_v17  ;;  %v4158_v42 = vld [vmem:[#allocation2 + $0x38] sm:$0xff]  ;;  %v9367_v4 = vmov 0.0  }
 0x1ce   : > { %9364 = vst [vmem:[#allocation53_spill] sm:$0xff] %v8427_v44  ;;  %v8436_v41 = vadd.f32 %v2373_v27, %v8287_v48  ;;  %6669 = vmatprep.subr.mxu0 %v4221_v50  ;;  %v6398_v32 = vpop.f32.mrf.mxu0  ;;  %6557 = vmatmul.mubr.f32.gmra.mxu0 %v3481_v15  ;;  %v4526_v17 = vld [vmem:[#allocation2 + $0x31] sm:$0xff] }
 0x1cf   : > { %v6478_v2 = vpop.f32.mrf.mxu1  ;;  %6637 = vmatmul.mubr.f32.gmra.mxu1 %v3481_v15  ;;  %v8442_v60 = vadd.f32 %v6398_v32, %v8124_v7  ;;  %6670 = vmatpush3.msra.mxu0 %v4221_v50  ;;  %v4159_v15 = vld [vmem:[#allocation2 + $0x48] sm:$0xff]  ;;  %v2392_v7 = vadd.f32 %v8147_v37, %v8287_v48  ;;  %v4527_v37 = vld [vmem:[#allocation2 + $0x39] sm:$0xff] }
 0x1d0   : > { %9365 = vst [vmem:[#allocation54_spill] sm:$0xff] %v8436_v41  ;;  %v8445_v14 = vadd.f32 %v6478_v2, %v8287_v48  ;;  %4685 = vmatpush1.msra.mxu1 %v4622_v43  ;;  %v2046_v27 = vpop.f32.mrf.mxu0  ;;  %6671 = vmatprep.mubr.f32.mxu0 %v4157_v58  ;;  %v2055_v41 = vadd.f32 %v8145_v34, %v7654_v22  ;;  %v5117_v58 = vld [vmem:[%s9312_s1 + $0x778] sm:$0xff] }
 0x1d1   : > { %v2383_v44 = vpop.f32.mrf.mxu1  ;;  %4718 = vmatprep.mubr.f32.mxu1 %v9367_v4  ;;  %v8453_v32 = vadd.f32 %v2046_v27, %v8114_v10  ;;  %6719 = vmatprep.subr.mxu0 %v5118_v12  ;;  %v4160_v10 = vld [vmem:[#allocation2 + $0x50] sm:$0xff] }
 0x1d2   : > { %9366 = vst [vmem:[#allocation55_spill] sm:$0xff] %v8445_v14  ;;  %v8456_v43 = vadd.f32 %v2383_v44, %v8287_v48  ;;  %v2746_v50 = vpop.f32.mrf.mxu0  ;;  %6672 = vmatmul.mubr.f32.vlgmr.msra.gmra.mxu0 %v4158_v42  ;;  %v4161_v14 = vld [vmem:[#allocation2 + $0x60] sm:$0xff]  ;;  %v2393_v42 = vadd.f32 %v8132_v51, %v8287_v48  ;;  %v4162_v51 = vld [vmem:[#allocation2 + $0x68] sm:$0xff] }
 0x1d3   : > { %v3003_v2 = vpop.f32.mrf.mxu1  ;;  %4719 = vmatmul.mubr.f32.vlgmr.msra.gmra.mxu1 %v4526_v17  ;;  %v3194_v22 = vadd.f32 %v2746_v50, %v2055_v41  ;;  %6674 = vmatprep.mubr.f32.mxu0 %v4159_v15 }
 0x1d4   : > { %v8461_v34 = vadd.f32 %v3003_v2, %v2392_v7  ;;  %4724 = vmatprep.mubr.f32.mxu1 %v9367_v4  ;;  %v2748_v44 = vpop.f32.mrf.mxu0  ;;  %6720 = vmatpush3.msra.mxu0 %v5118_v12  ;;  %v5116_v7 = vld [vmem:[%s9312_s1 + $0x6f8] sm:$0xff] }
 0x1d5   : > { %v8464_v27 = vpop.f32.mrf.mxu1  ;;  %5536 = vst [vmem:[%s6908_s24] sm:$0xff] %v3194_v22  ;;  %v8470_v17 = vadd.f32 %v2748_v44, %v7938_v61  ;;  %6721 = vmatprep.subr.mxu0 %v5117_v58  ;;  %v4528_v61 = vld [vmem:[#allocation2 + $0x49] sm:$0xff]  ;;  %v4163_v44 = vld [vmem:[#allocation2 + $0x78] sm:$0xff] }
 0x1d6   : > { %9368 = vst [vmem:[#allocation56_spill] sm:$0xff] %v8461_v34  ;;  %v2752_v41 = vpop.f32.mrf.mxu0  ;;  %6675 = vmatmul.mubr.f32.gmra.mxu0 %v4160_v10  ;;  %v2394_v10 = vadd.f32 %v8164_v63, %v8287_v48  ;;  %v4164_v63 = vld [vmem:[#allocation2 + $0x80] sm:$0xff] }
 0x1d7   : > { %v3009_v15 = vpop.f32.mrf.mxu1  ;;  %4725 = vmatmul.mubr.f32.gmra.mxu1 %v4527_v37  ;;  %v3198_v12 = vadd.f32 %v2752_v41, %v8141_v0  ;;  %6677 = vmatprep.mubr.f32.mxu0 %v4161_v14 }
 0x1d8   : > { %v8476_v50 = vadd.f32 %v3009_v15, %v2393_v42  ;;  %4730 = vmatprep.mubr.f32.mxu1 %v9367_v4  ;;  %v2754_v2 = vpop.f32.mrf.mxu0  ;;  %6722 = vmatpush3.msra.mxu0 %v5117_v58  ;;  %v5115_v42 = vld [vmem:[%s9312_s1 + $0x678] sm:$0xff] }
 0x1d9   : > { %v8479_v22 = vpop.f32.mrf.mxu1  ;;  %5540 = vst [vmem:[%s6908_s24 + $0x20] sm:$0xff] %v3198_v12  ;;  %v8485_v37 = vadd.f32 %v2754_v2, %v7930_v8  ;;  %6723 = vmatprep.subr.mxu0 %v5116_v7  ;;  %v4529_v8 = vld [vmem:[#allocation2 + $0x51] sm:$0xff] }
 0x1da   : > { %9369 = vst [vmem:[#allocation57_spill] sm:$0xff] %v8476_v50  ;;  %v2758_v0 = vpop.f32.mrf.mxu0  ;;  %6678 = vmatmul.mubr.f32.gmra.mxu0 %v4162_v51  ;;  %v4165_v2 = vld [vmem:[#allocation2 + $0x90] sm:$0xff]  ;;  %v2395_v51 = vadd.f32 %v8153_v40, %v8287_v48  ;;  %v4166_v40 = vld [vmem:[#allocation2 + $0x98] sm:$0xff] }
 0x1db   : > { %v3015_v14 = vpop.f32.mrf.mxu1  ;;  %4731 = vmatmul.mubr.f32.gmra.mxu1 %v4528_v61  ;;  %v3202_v58 = vadd.f32 %v2758_v0, %v8170_v54  ;;  %6680 = vmatprep.mubr.f32.mxu0 %v4163_v44 }
 0x1dc   : > { %v8491_v41 = vadd.f32 %v3015_v14, %v2394_v10  ;;  %4736 = vmatprep.mubr.f32.mxu1 %v9367_v4  ;;  %v2760_v15 = vpop.f32.mrf.mxu0  ;;  %6724 = vmatpush3.msra.mxu0 %v5116_v7  ;;  %v5114_v10 = vld [vmem:[%s9312_s1 + $0x5f8] sm:$0xff] }
 0x1dd   : > { %v8494_v12 = vpop.f32.mrf.mxu1  ;;  %5544 = vst [vmem:[%s6908_s24 + $0x40] sm:$0xff] %v3202_v58  ;;  %v8500_v61 = vadd.f32 %v2760_v15, %v7953_v49  ;;  %6725 = vmatprep.subr.mxu0 %v5115_v42  ;;  %v4530_v49 = vld [vmem:[#allocation2 + $0x61] sm:$0xff] }
 0x1de   : > { %9370 = vst [vmem:[#allocation58_spill] sm:$0xff] %v8491_v41  ;;  %v2764_v54 = vpop.f32.mrf.mxu0  ;;  %6681 = vmatmul.mubr.f32.gmra.mxu0 %v4164_v63  ;;  %v4167_v15 = vld [vmem:[#allocation2 + $0xa8] sm:$0xff]  ;;  %v2396_v63 = vadd.f32 %v8183_v59, %v8287_v48  ;;  %v4168_v59 = vld [vmem:[#allocation2 + $0xb0] sm:$0xff] }
 0x1df   : > { %v3021_v44 = vpop.f32.mrf.mxu1  ;;  %4737 = vmatmul.mubr.f32.gmra.mxu1 %v4529_v8  ;;  %v3206_v7 = vadd.f32 %v2764_v54, %v8162_v21  ;;  %6683 = vmatprep.mubr.f32.mxu0 %v4165_v2  ;;  %v9372_v8 = vld [vmem:[#allocation8_spill] sm:$0xff] }
 0x1e0   : > { %v8506_v0 = vadd.f32 %v3021_v44, %v2395_v51  ;;  %4742 = vmatprep.mubr.f32.mxu1 %v9367_v4  ;;  %v2766_v14 = vpop.f32.mrf.mxu0  ;;  %6726 = vmatpush3.msra.mxu0 %v5115_v42  ;;  %v5113_v51 = vld [vmem:[%s9312_s1 + $0x578] sm:$0xff]  ;;  %v4531_v44 = vld [vmem:[#allocation2 + $0x69] sm:$0xff] }
 0x1e1   : > { %v8509_v58 = vpop.f32.mrf.mxu1  ;;  %5548 = vst [vmem:[%s6908_s24 + $0x60] sm:$0xff] %v3206_v7  ;;  %v8515_v41 = vadd.f32 %v2766_v14, %v9372_v8  ;;  %6727 = vmatprep.subr.mxu0 %v5114_v10  ;;  %v4169_v8 = vld [vmem:[#allocation2 + $0xc0] sm:$0xff] }
 0x1e2   : > { %9371 = vst [vmem:[#allocation59_spill] sm:$0xff] %v8506_v0  ;;  %v2770_v21 = vpop.f32.mrf.mxu0  ;;  %6684 = vmatmul.mubr.f32.gmra.mxu0 %v4166_v40  ;;  %v2397_v40 = vadd.f32 %v8172_v5, %v8287_v48  ;;  %v4170_v5 = vld [vmem:[#allocation2 + $0xc8] sm:$0xff] }
 0x1e3   : > { %v3027_v2 = vpop.f32.mrf.mxu1  ;;  %4743 = vmatmul.mubr.f32.gmra.mxu1 %v4530_v49  ;;  %v3210_v42 = vadd.f32 %v2770_v21, %v8189_v33  ;;  %6686 = vmatprep.mubr.f32.mxu0 %v4167_v15 }
 0x1e4   : > { %v8521_v54 = vadd.f32 %v3027_v2, %v2396_v63  ;;  %4748 = vmatprep.mubr.f32.mxu1 %v9367_v4  ;;  %v2772_v7 = vpop.f32.mrf.mxu0  ;;  %6728 = vmatpush3.msra.mxu0 %v5114_v10  ;;  %v5112_v63 = vld [vmem:[%s9312_s1 + $0x4f8] sm:$0xff] }
 0x1e5   : > { %v8524_v14 = vpop.f32.mrf.mxu1  ;;  %5552 = vst [vmem:[%s6908_s24 + $0x80] sm:$0xff] %v3210_v42  ;;  %v8530_v49 = vadd.f32 %v2772_v7, %v7968_v18  ;;  %6729 = vmatprep.subr.mxu0 %v5113_v51  ;;  %v4532_v18 = vld [vmem:[#allocation2 + $0x79] sm:$0xff] }
 0x1e6   : > { %9373 = vst [vmem:[#allocation8_spill] sm:$0xff] %v8521_v54  ;;  %v2776_v33 = vpop.f32.mrf.mxu0  ;;  %6687 = vmatmul.mubr.f32.gmra.mxu0 %v4168_v59  ;;  %v4171_v7 = vld [vmem:[#allocation2 + $0xd8] sm:$0xff]  ;;  %v2398_v59 = vadd.f32 %v8202_v3, %v8287_v48  ;;  %v4172_v3 = vld [vmem:[#allocation2 + $0xe0] sm:$0xff] }
 0x1e7   : > { %v3033_v15 = vpop.f32.mrf.mxu1  ;;  %4749 = vmatmul.mubr.f32.gmra.mxu1 %v4531_v44  ;;  %v3214_v10 = vadd.f32 %v2776_v33, %v8181_v6  ;;  %6689 = vmatprep.mubr.f32.mxu0 %v4169_v8  ;;  %v9375_v44 = vld [vmem:[#allocation9_spill] sm:$0xff] }
 0x1e8   : > { %v8536_v21 = vadd.f32 %v3033_v15, %v2397_v40  ;;  %4754 = vmatprep.mubr.f32.mxu1 %v9367_v4  ;;  %v2778_v2 = vpop.f32.mrf.mxu0  ;;  %6730 = vmatpush3.msra.mxu0 %v5113_v51  ;;  %v5111_v40 = vld [vmem:[%s9312_s1 + $0x478] sm:$0xff]  ;;  %v4533_v15 = vld [vmem:[#allocation2 + $0x81] sm:$0xff] }
 0x1e9   : > { %v8539_v42 = vpop.f32.mrf.mxu1  ;;  %5556 = vst [vmem:[%s6908_s24 + $0xa0] sm:$0xff] %v3214_v10  ;;  %v8545_v54 = vadd.f32 %v2778_v2, %v9375_v44  ;;  %6731 = vmatprep.subr.mxu0 %v5112_v63  ;;  %v4173_v44 = vld [vmem:[#allocation2 + $0xf0] sm:$0xff] }
 0x1ea   : > { %9374 = vst [vmem:[#allocation60_spill] sm:$0xff] %v8536_v21  ;;  %v2782_v6 = vpop.f32.mrf.mxu0  ;;  %6690 = vmatmul.mubr.f32.gmra.mxu0 %v4170_v5  ;;  %v2399_v5 = vadd.f32 %v8191_v28, %v8287_v48  ;;  %v4174_v28 = vld [vmem:[#allocation2 + $0xf8] sm:$0xff] }
 0x1eb   : > { %v3039_v8 = vpop.f32.mrf.mxu1  ;;  %4755 = vmatmul.mubr.f32.gmra.mxu1 %v4532_v18  ;;  %v3218_v51 = vadd.f32 %v2782_v6, %v8208_v29  ;;  %6692 = vmatprep.mubr.f32.mxu0 %v4171_v7 }
 0x1ec   : > { %v8551_v33 = vadd.f32 %v3039_v8, %v2398_v59  ;;  %4760 = vmatprep.mubr.f32.mxu1 %v9367_v4  ;;  %v2784_v10 = vpop.f32.mrf.mxu0  ;;  %6732 = vmatpush3.msra.mxu0 %v5112_v63  ;;  %v5110_v59 = vld [vmem:[%s9312_s1 + $0x3f8] sm:$0xff] }
 0x1ed   : > { %v8554_v2 = vpop.f32.mrf.mxu1  ;;  %5560 = vst [vmem:[%s6908_s24 + $0xc0] sm:$0xff] %v3218_v51  ;;  %v8560_v18 = vadd.f32 %v2784_v10, %v7983_v62  ;;  %6733 = vmatprep.subr.mxu0 %v5111_v40  ;;  %v4534_v62 = vld [vmem:[#allocation2 + $0x91] sm:$0xff]  ;;  %v4175_v10 = vld [vmem:[#allocation2 + $0x108] sm:$0xff] }
 0x1ee   : > { %9376 = vst [vmem:[#allocation9_spill] sm:$0xff] %v8551_v33  ;;  %v2788_v29 = vpop.f32.mrf.mxu0  ;;  %6693 = vmatmul.mubr.f32.gmra.mxu0 %v4172_v3  ;;  %v2400_v3 = vadd.f32 %v8221_v53, %v8287_v48  ;;  %v4176_v53 = vld [vmem:[#allocation2 + $0x110] sm:$0xff] }
 0x1ef   : > { %v3045_v7 = vpop.f32.mrf.mxu1  ;;  %4761 = vmatmul.mubr.f32.gmra.mxu1 %v4533_v15  ;;  %v3222_v63 = vadd.f32 %v2788_v29, %v8200_v57  ;;  %6695 = vmatprep.mubr.f32.mxu0 %v4173_v44  ;;  %v9378_v15 = vld [vmem:[#allocation10_spill] sm:$0xff] }
 0x1f0   : > { %v8566_v6 = vadd.f32 %v3045_v7, %v2399_v5  ;;  %4766 = vmatprep.mubr.f32.mxu1 %v9367_v4  ;;  %v2790_v8 = vpop.f32.mrf.mxu0  ;;  %6734 = vmatpush3.msra.mxu0 %v5111_v40  ;;  %v5109_v5 = vld [vmem:[%s9312_s1 + $0x378] sm:$0xff] }
 0x1f1   : > { %v8569_v51 = vpop.f32.mrf.mxu1  ;;  %5564 = vst [vmem:[%s6908_s24 + $0xe0] sm:$0xff] %v3222_v63  ;;  %v8575_v33 = vadd.f32 %v2790_v8, %v9378_v15  ;;  %6735 = vmatprep.subr.mxu0 %v5110_v59  ;;  %v4535_v7 = vld [vmem:[#allocation2 + $0x99] sm:$0xff] }
 0x1f2   : > { %9377 = vst [vmem:[#allocation61_spill] sm:$0xff] %v8566_v6  ;;  %v2794_v57 = vpop.f32.mrf.mxu0  ;;  %6696 = vmatmul.mubr.f32.gmra.mxu0 %v4174_v28  ;;  %v4177_v15 = vld [vmem:[#allocation2 + $0x120] sm:$0xff]  ;;  %v2401_v28 = vadd.f32 %v8210_v1, %v8287_v48  ;;  %v4178_v1 = vld [vmem:[#allocation2 + $0x128] sm:$0xff] }
 0x1f3   : > { %v3051_v44 = vpop.f32.mrf.mxu1  ;;  %4767 = vmatmul.mubr.f32.gmra.mxu1 %v4534_v62  ;;  %v3226_v40 = vadd.f32 %v2794_v57, %v8227_v56  ;;  %6698 = vmatprep.mubr.f32.mxu0 %v4175_v10  ;;  %v9380_v62 = vld [vmem:[#allocation12_spill] sm:$0xff] }
 0x1f4   : > { %v8581_v29 = vadd.f32 %v3051_v44, %v2400_v3  ;;  %4772 = vmatprep.mubr.f32.mxu1 %v9367_v4  ;;  %v2796_v63 = vpop.f32.mrf.mxu0  ;;  %6736 = vmatpush3.msra.mxu0 %v5110_v59  ;;  %v5108_v3 = vld [vmem:[%s9312_s1 + $0x2f8] sm:$0xff]  ;;  %v4536_v44 = vld [vmem:[#allocation2 + $0xa9] sm:$0xff] }
 0x1f5   : > { %v8584_v8 = vpop.f32.mrf.mxu1  ;;  %5568 = vst [vmem:[%s6908_s24 + $0x100] sm:$0xff] %v3226_v40  ;;  %v8590_v6 = vadd.f32 %v2796_v63, %v9380_v62  ;;  %6737 = vmatprep.subr.mxu0 %v5109_v5  ;;  %v4179_v62 = vld [vmem:[#allocation2 + $0x138] sm:$0xff] }
 0x1f6   : > { %9379 = vst [vmem:[#allocation10_spill] sm:$0xff] %v8581_v29  ;;  %v2800_v56 = vpop.f32.mrf.mxu0  ;;  %6699 = vmatmul.mubr.f32.gmra.mxu0 %v4176_v53  ;;  %v2402_v53 = vadd.f32 %v8240_v45, %v8287_v48  ;;  %v4180_v45 = vld [vmem:[#allocation2 + $0x140] sm:$0xff] }
 0x1f7   : > { %v3057_v10 = vpop.f32.mrf.mxu1  ;;  %4773 = vmatmul.mubr.f32.gmra.mxu1 %v4535_v7  ;;  %v3230_v59 = vadd.f32 %v2800_v56, %v8219_v13  ;;  %6701 = vmatprep.mubr.f32.mxu0 %v4177_v15  ;;  %v9382_v7 = vld [vmem:[#allocation11_spill] sm:$0xff] }
 0x1f8   : > { %v8596_v57 = vadd.f32 %v3057_v10, %v2401_v28  ;;  %4778 = vmatprep.mubr.f32.mxu1 %v9367_v4  ;;  %v2802_v40 = vpop.f32.mrf.mxu0  ;;  %6738 = vmatpush3.msra.mxu0 %v5109_v5  ;;  %v5107_v28 = vld [vmem:[%s9312_s1 + $0x278] sm:$0xff] }
 0x1f9   : > { %v8599_v63 = vpop.f32.mrf.mxu1  ;;  %5572 = vst [vmem:[%s6908_s24 + $0x120] sm:$0xff] %v3230_v59  ;;  %v8605_v29 = vadd.f32 %v2802_v40, %v9382_v7  ;;  %6739 = vmatprep.subr.mxu0 %v5108_v3  ;;  %v4537_v10 = vld [vmem:[#allocation2 + $0xb1] sm:$0xff] }
 0x1fa   : > { %9381 = vst [vmem:[#allocation12_spill] sm:$0xff] %v8596_v57  ;;  %v2806_v13 = vpop.f32.mrf.mxu0  ;;  %6702 = vmatmul.mubr.f32.gmra.mxu0 %v4178_v1  ;;  %v4181_v7 = vld [vmem:[#allocation2 + $0x150] sm:$0xff]  ;;  %v2403_v1 = vadd.f32 %v8229_v19, %v8287_v48  ;;  %v4182_v19 = vld [vmem:[#allocation2 + $0x158] sm:$0xff] }
 0x1fb   : > { %v3063_v15 = vpop.f32.mrf.mxu1  ;;  %4779 = vmatmul.mubr.f32.gmra.mxu1 %v4536_v44  ;;  %v3234_v5 = vadd.f32 %v2806_v13, %v8246_v36  ;;  %6704 = vmatprep.mubr.f32.mxu0 %v4179_v62  ;;  %v9384_v44 = vld [vmem:[#allocation14_spill] sm:$0xff]  ;;  %v9385_v13 = vld [vmem:[#allocation35_spill] sm:$0xff] }
 0x1fc   : > { %v8611_v56 = vadd.f32 %v3063_v15, %v2402_v53  ;;  %4784 = vmatprep.mubr.f32.mxu1 %v9367_v4  ;;  %v2808_v59 = vpop.f32.mrf.mxu0  ;;  %6740 = vmatpush3.msra.mxu0 %v5108_v3  ;;  %v5106_v53 = vld [vmem:[%s9312_s1 + $0x1f8] sm:$0xff] }
 0x1fd   : > { %v8614_v40 = vpop.f32.mrf.mxu1  ;;  %5576 = vst [vmem:[%s6908_s24 + $0x140] sm:$0xff] %v3234_v5  ;;  %v8620_v57 = vadd.f32 %v2808_v59, %v9384_v44  ;;  %6741 = vmatprep.subr.mxu0 %v5107_v28  ;;  %v4538_v5 = vld [vmem:[#allocation2 + $0xc1] sm:$0xff] }
 0x1fe   : > { %9383 = vst [vmem:[#allocation11_spill] sm:$0xff] %v8611_v56  ;;  %v2812_v36 = vpop.f32.mrf.mxu0  ;;  %6705 = vmatmul.mubr.f32.gmra.mxu0 %v4180_v45  ;;  %v4183_v56 = vld [vmem:[#allocation2 + $0x168] sm:$0xff]  ;;  %v2404_v45 = vadd.f32 %v8259_v24, %v8287_v48  ;;  %v4184_v24 = vld [vmem:[#allocation2 + $0x170] sm:$0xff] }
 0x1ff   : > { %v3069_v62 = vpop.f32.mrf.mxu1  ;;  %4785 = vmatmul.mubr.f32.gmra.mxu1 %v4537_v10  ;;  %v3238_v3 = vadd.f32 %v2812_v36, %v9385_v13  ;;  %6707 = vmatprep.mubr.f32.mxu0 %v4181_v7  ;;  %v9387_v10 = vld [vmem:[#allocation13_spill] sm:$0xff]  ;;  %v5105_v36 = vld [vmem:[%s9312_s1 + $0x178] sm:$0xff]  ;;  %v4539_v13 = vld [vmem:[#allocation2 + $0xc9] sm:$0xff] }
 0x200   : > { %v8626_v15 = vadd.f32 %v3069_v62, %v2403_v1  ;;  %4790 = vmatprep.mubr.f32.mxu1 %v9367_v4  ;;  %v2814_v59 = vpop.f32.mrf.mxu0  ;;  %6742 = vmatpush3.msra.mxu0 %v5107_v28 }
 0x201   : > { %v8629_v44 = vpop.f32.mrf.mxu1  ;;  %5580 = vst [vmem:[%s6908_s24 + $0x160] sm:$0xff] %v3238_v3  ;;  %v8635_v21 = vadd.f32 %v2814_v59, %v9387_v10  ;;  %6743 = vmatprep.subr.mxu0 %v5106_v53  ;;  %v4185_v10 = vld [vmem:[#allocation2 + $0x180] sm:$0xff] }
 0x202   : > { %9386 = vst [vmem:[#allocation14_spill] sm:$0xff] %v8626_v15  ;;  %v2818_v1 = vpop.f32.mrf.mxu0  ;;  %6708 = vmatmul.mubr.f32.gmra.mxu0 %v4182_v19  ;;  %v9389_v19 = vld [vmem:[#allocation36_spill] sm:$0xff] }
 0x203   : > { %v3075_v7 = vpop.f32.mrf.mxu1  ;;  %4791 = vmatmul.mubr.f32.gmra.mxu1 %v4538_v5  ;;  %v3242_v28 = vadd.f32 %v2818_v1, %v8266_v25  ;;  %6710 = vmatprep.mubr.f32.mxu0 %v4183_v56  ;;  %v2405_v5 = vadd.f32 %v9389_v19, %v8287_v48  ;;  %v9390_v15 = vld [vmem:[#allocation16_spill] sm:$0xff]  ;;  %v9391_v1 = vld [vmem:[#allocation37_spill] sm:$0xff] }
 0x204   : > { %v8641_v62 = vadd.f32 %v3075_v7, %v2404_v45  ;;  %4796 = vmatprep.mubr.f32.mxu1 %v9367_v4  ;;  %v2820_v3 = vpop.f32.mrf.mxu0  ;;  %6744 = vmatpush3.msra.mxu0 %v5106_v53  ;;  %v5104_v45 = vld [vmem:[%s9312_s1 + $0xf8] sm:$0xff] }
 0x205   : > { %v8644_v59 = vpop.f32.mrf.mxu1  ;;  %5584 = vst [vmem:[%s6908_s24 + $0x180] sm:$0xff] %v3242_v28  ;;  %v8650_v0 = vadd.f32 %v2820_v3, %v9390_v15  ;;  %6745 = vmatprep.subr.mxu0 %v5105_v36  ;;  %v4186_v28 = vld [vmem:[#allocation2 + $0x188] sm:$0xff]  ;;  %v4540_v15 = vld [vmem:[#allocation2 + $0xd9] sm:$0xff] }
 0x206   : > { %9388 = vst [vmem:[#allocation35_spill] sm:$0xff] %v8641_v62  ;;  %v2824_v25 = vpop.f32.mrf.mxu0  ;;  %6711 = vmatmul.mubr.f32.gmra.mxu0 %v4184_v24  ;;  %v4187_v62 = vld [vmem:[#allocation2 + $0x198] sm:$0xff]  ;;  %v2406_v24 = vadd.f32 %v8279_v55, %v8287_v48  ;;  %v4188_v55 = vld [vmem:[#allocation2 + $0x1a0] sm:$0xff] }
 0x207   : > { %v3081_v56 = vpop.f32.mrf.mxu1  ;;  %4797 = vmatmul.mubr.f32.gmra.mxu1 %v4539_v13  ;;  %v3246_v53 = vadd.f32 %v2824_v25, %v9391_v1  ;;  %6713 = vmatprep.mubr.f32.mxu0 %v4185_v10  ;;  %v9393_v13 = vld [vmem:[#allocation15_spill] sm:$0xff]  ;;  %v5103_v25 = vld [vmem:[%s9312_s1 + $0x78] sm:$0xff] }
 0x208   : > { %v8656_v7 = vadd.f32 %v3081_v56, %v2405_v5  ;;  %4802 = vmatprep.mubr.f32.mxu1 %v9367_v4  ;;  %v2826_v3 = vpop.f32.mrf.mxu0  ;;  %6746 = vmatpush3.msra.mxu0 %v5105_v36  ;;  %v9394_v56 = vld [vmem:[#allocation40_spill] sm:$0xff] }
 0x209   : > { %v8659_v19 = vpop.f32.mrf.mxu1  ;;  %5588 = vst [vmem:[%s6908_s24 + $0x1a0] sm:$0xff] %v3246_v53  ;;  %v8665_v34 = vadd.f32 %v2826_v3, %v9393_v13  ;;  %6747 = vmatprep.subr.mxu0 %v5104_v45  ;;  %v4541_v53 = vld [vmem:[#allocation2 + $0xe1] sm:$0xff] }
 0x20a   : > { %9392 = vst [vmem:[#allocation13_spill] sm:$0xff] %v8656_v7  ;;  %v2830_v5 = vpop.f32.mrf.mxu0  ;;  %6714 = vmatmul.mubr.f32.gmra.mxu0 %v4186_v28  ;;  %v9397_v28 = vld [vmem:[#allocation38_spill] sm:$0xff] }
 0x20b   : > { %v3087_v10 = vpop.f32.mrf.mxu1  ;;  %4803 = vmatmul.mubr.f32.gmra.mxu1 %v4540_v15  ;;  %v3250_v36 = vadd.f32 %v2830_v5, %v9394_v56  ;;  %6716 = vmatprep.mubr.f32.mxu0 %v4187_v62  ;;  %v2407_v15 = vadd.f32 %v9397_v28, %v8287_v48  ;;  %v9398_v7 = vld [vmem:[#allocation18_spill] sm:$0xff]  ;;  %v5039_v5 = vld [vmem:[#allocation2 + $0x32] sm:$0xff]  ;;  %v5040_v28 = vld [vmem:[#allocation2 + $0x3a] sm:$0xff] }
 0x20c   : > { %v8671_v1 = vadd.f32 %v3087_v10, %v2406_v24  ;;  %4808 = vmatprep.mubr.f32.mxu1 %v9367_v4  ;;  %v2832_v3 = vpop.f32.mrf.mxu0  ;;  %6748 = vmatpush3.msra.mxu0 %v5104_v45  ;;  %v9399_v10 = vld [vmem:[#allocation39_spill] sm:$0xff] }
 0x20d   : > { %v8674_v13 = vpop.f32.mrf.mxu1  ;;  %5592 = vst [vmem:[%s6908_s24 + $0x1c0] sm:$0xff] %v3250_v36  ;;  %v8680_v50 = vadd.f32 %v2832_v3, %v9398_v7  ;;  %6749 = vmatprep.subr.mxu0 %v5103_v25  ;;  %v4542_v45 = vld [vmem:[#allocation2 + $0xf1] sm:$0xff]  ;;  %v2408_v3 = vadd.f32 %v8304_v35, %v8287_v48  ;;  %v5043_v35 = vld [vmem:[#allocation2 + $0x62] sm:$0xff] }
 0x20e   : > { %9395 = vst [vmem:[#allocation36_spill] sm:$0xff] %v8671_v1  ;;  %9396 = vst [vmem:[#allocation16_spill] sm:$0xff] %v8674_v13  ;;  %v2836_v24 = vpop.f32.mrf.mxu0  ;;  %6717 = vmatmul.mubr.f32.gmra.mxu0 %v4188_v55  ;;  %v5041_v7 = vld [vmem:[#allocation2 + $0x4a] sm:$0xff]  ;;  %v9401_v55 = vld [vmem:[#allocation17_spill] sm:$0xff] }
 0x20f   : > { %v3093_v62 = vpop.f32.mrf.mxu1  ;;  %4809 = vmatmul.mubr.f32.gmra.mxu1 %v4541_v53  ;;  %v3254_v56 = vadd.f32 %v2836_v24, %v9399_v10  ;;  %6750 = vmatpush3.msra.mxu0 %v5103_v25  ;;  %v5042_v10 = vld [vmem:[#allocation2 + $0x52] sm:$0xff] }
 0x210   : > { %v8683_v1 = vadd.f32 %v3093_v62, %v2407_v15  ;;  %4814 = vmatprep.mubr.f32.mxu1 %v9367_v4  ;;  %v2838_v36 = vpop.f32.mrf.mxu0  ;;  %6751 = vmatprep.mubr.f32.mxu0 %v5039_v5  ;;  %v4543_v5 = vld [vmem:[#allocation2 + $0xf9] sm:$0xff] }
 0x211   : > { %v8686_v13 = vpop.f32.mrf.mxu1  ;;  %5596 = vst [vmem:[%s6908_s24 + $0x1e0] sm:$0xff] %v3254_v56  ;;  %v8692_v53 = vadd.f32 %v2838_v36, %v9401_v55  ;;  %v9404_v56 = vld [vmem:[#allocation20_spill] sm:$0xff]  ;;  %v9407_v55 = vld [vmem:[#allocation42_spill] sm:$0xff] }
 0x212   : > { %9400 = vst [vmem:[#allocation37_spill] sm:$0xff] %v8683_v1  ;;  %v2842_v15 = vpop.f32.mrf.mxu0  ;;  %6752 = vmatmul.mubr.f32.vlgmr.msra.gmra.mxu0 %v5040_v28 }
 0x213   : > { %v3099_v24 = vpop.f32.mrf.mxu1  ;;  %4815 = vmatmul.mubr.f32.gmra.mxu1 %v4542_v45  ;;  %v3258_v25 = vadd.f32 %v2842_v15, %v8310_v9  ;;  %6754 = vmatprep.mubr.f32.mxu0 %v5041_v7  ;;  %v9406_v9 = vld [vmem:[#allocation41_spill] sm:$0xff]  ;;  %v4544_v7 = vld [vmem:[#allocation2 + $0x109] sm:$0xff] }
 0x214   : > { %v8695_v62 = vadd.f32 %v3099_v24, %v2408_v3  ;;  %4820 = vmatprep.mubr.f32.mxu1 %v9367_v4  ;;  %v2844_v1 = vpop.f32.mrf.mxu0  ;;  %v5044_v24 = vld [vmem:[#allocation2 + $0x6a] sm:$0xff] }
 0x215   : > { %v8698_v48 = vpop.f32.mrf.mxu1  ;;  %5600 = vst [vmem:[%s6908_s24 + $0x200] sm:$0xff] %v3258_v25  ;;  %v8702_v36 = vadd.f32 %v2844_v1, %v9404_v56  ;;  %v5045_v25 = vld [vmem:[#allocation2 + $0x7a] sm:$0xff]  ;;  %v9409_v1 = vld [vmem:[#allocation19_spill] sm:$0xff] }
 0x216   : > { %9402 = vst [vmem:[#allocation15_spill] sm:$0xff] %v8695_v62  ;;  %9403 = vst [vmem:[#allocation40_spill] sm:$0xff] %v8698_v48  ;;  %v2848_v45 = vpop.f32.mrf.mxu0  ;;  %6755 = vmatmul.mubr.f32.gmra.mxu0 %v5042_v10 }
 0x217   : > { %9405 = vst [vmem:[#allocation38_spill] sm:$0xff] %v8702_v36  ;;  %v3105_v28 = vpop.f32.mrf.mxu1  ;;  %4821 = vmatmul.mubr.f32.gmra.mxu1 %v4543_v5  ;;  %v3262_v3 = vadd.f32 %v2848_v45, %v9406_v9  ;;  %6757 = vmatprep.mubr.f32.mxu0 %v5043_v35  ;;  %v4545_v35 = vld [vmem:[#allocation2 + $0x111] sm:$0xff]  ;;  %v5046_v9 = vld [vmem:[#allocation2 + $0x82] sm:$0xff] }
 0x218   : > { %v8706_v15 = vadd.f32 %v3105_v28, %v9407_v55  ;;  %4826 = vmatprep.mubr.f32.mxu1 %v9367_v4  ;;  %v2850_v62 = vpop.f32.mrf.mxu0 }
 0x219   : > { %v8709_v48 = vpop.f32.mrf.mxu1  ;;  %5604 = vst [vmem:[%s6908_s24 + $0x220] sm:$0xff] %v3262_v3  ;;  %v8713_v56 = vadd.f32 %v2850_v62, %v9409_v1  ;;  %v5047_v3 = vld [vmem:[#allocation2 + $0x92] sm:$0xff]  ;;  %v9412_v62 = vld [vmem:[#allocation22_spill] sm:$0xff] }
 0x21a   : > { %9408 = vst [vmem:[#allocation18_spill] sm:$0xff] %v8706_v15  ;;  %v2854_v5 = vpop.f32.mrf.mxu0  ;;  %6758 = vmatmul.mubr.f32.gmra.mxu0 %v5044_v24 }
 0x21b   : > { %v3111_v10 = vpop.f32.mrf.mxu1  ;;  %4827 = vmatmul.mubr.f32.gmra.mxu1 %v4544_v7  ;;  %v3266_v45 = vadd.f32 %v2854_v5, %v8328_v31  ;;  %6760 = vmatprep.mubr.f32.mxu0 %v5045_v25  ;;  %v9414_v31 = vld [vmem:[#allocation43_spill] sm:$0xff]  ;;  %v9415_v5 = vld [vmem:[#allocation44_spill] sm:$0xff]  ;;  %v4546_v25 = vld [vmem:[#allocation2 + $0x121] sm:$0xff] }
 0x21c   : > { %v8717_v28 = vadd.f32 %v3111_v10, %v8331_v30  ;;  %4832 = vmatprep.mubr.f32.mxu1 %v9367_v4  ;;  %v2856_v55 = vpop.f32.mrf.mxu0 }
 0x21d   : > { %v8720_v15 = vpop.f32.mrf.mxu1  ;;  %5608 = vst [vmem:[%s6908_s24 + $0x240] sm:$0xff] %v3266_v45  ;;  %v8724_v1 = vadd.f32 %v2856_v55, %v9412_v62  ;;  %v5049_v45 = vld [vmem:[#allocation2 + $0xaa] sm:$0xff]  ;;  %v9417_v55 = vld [vmem:[#allocation21_spill] sm:$0xff] }
 0x21e   : > { %9410 = vst [vmem:[#allocation39_spill] sm:$0xff] %v8717_v28  ;;  %9411 = vst [vmem:[#allocation17_spill] sm:$0xff] %v8720_v15  ;;  %v2860_v7 = vpop.f32.mrf.mxu0  ;;  %6761 = vmatmul.mubr.f32.gmra.mxu0 %v5046_v9  ;;  %v5048_v28 = vld [vmem:[#allocation2 + $0x9a] sm:$0xff] }
 0x21f   : > { %9413 = vst [vmem:[#allocation20_spill] sm:$0xff] %v8724_v1  ;;  %v3117_v24 = vpop.f32.mrf.mxu1  ;;  %4833 = vmatmul.mubr.f32.gmra.mxu1 %v4545_v35  ;;  %v3270_v30 = vadd.f32 %v2860_v7, %v9414_v31  ;;  %6763 = vmatprep.mubr.f32.mxu0 %v5047_v3  ;;  %v4547_v3 = vld [vmem:[#allocation2 + $0x129] sm:$0xff]  ;;  %v5050_v31 = vld [vmem:[#allocation2 + $0xb2] sm:$0xff] }
 0x220   : > { %v8728_v10 = vadd.f32 %v3117_v24, %v9415_v5  ;;  %4838 = vmatprep.mubr.f32.mxu1 %v9367_v4  ;;  %v2862_v15 = vpop.f32.mrf.mxu0 }
 0x221   : > { %v8731_v36 = vpop.f32.mrf.mxu1  ;;  %5612 = vst [vmem:[%s6908_s24 + $0x260] sm:$0xff] %v3270_v30  ;;  %v8735_v62 = vadd.f32 %v2862_v15, %v9417_v55  ;;  %v5051_v30 = vld [vmem:[#allocation2 + $0xc2] sm:$0xff]  ;;  %v9420_v15 = vld [vmem:[#allocation24_spill] sm:$0xff] }
 0x222   : > { %9416 = vst [vmem:[#allocation41_spill] sm:$0xff] %v8728_v10  ;;  %v2866_v35 = vpop.f32.mrf.mxu0  ;;  %6764 = vmatmul.mubr.f32.gmra.mxu0 %v5048_v28 }
 0x223   : > { %v3123_v9 = vpop.f32.mrf.mxu1  ;;  %4839 = vmatmul.mubr.f32.gmra.mxu1 %v4546_v25  ;;  %v3274_v7 = vadd.f32 %v2866_v35, %v8349_v52  ;;  %6766 = vmatprep.mubr.f32.mxu0 %v5049_v45  ;;  %v9422_v52 = vld [vmem:[#allocation45_spill] sm:$0xff]  ;;  %v9423_v35 = vld [vmem:[#allocation46_spill] sm:$0xff] }
 0x224   : > { %v8739_v24 = vadd.f32 %v3123_v9, %v8352_v16  ;;  %4844 = vmatprep.mubr.f32.mxu1 %v9367_v4  ;;  %v2868_v5 = vpop.f32.mrf.mxu0  ;;  %v4548_v45 = vld [vmem:[#allocation2 + $0x139] sm:$0xff] }
 0x225   : > { %v8742_v10 = vpop.f32.mrf.mxu1  ;;  %5616 = vst [vmem:[%s6908_s24 + $0x280] sm:$0xff] %v3274_v7  ;;  %v8746_v55 = vadd.f32 %v2868_v5, %v9420_v15  ;;  %v5053_v7 = vld [vmem:[#allocation2 + $0xda] sm:$0xff]  ;;  %v9425_v5 = vld [vmem:[#allocation23_spill] sm:$0xff] }
 0x226   : > { %9418 = vst [vmem:[#allocation42_spill] sm:$0xff] %v8739_v24  ;;  %9419 = vst [vmem:[#allocation19_spill] sm:$0xff] %v8742_v10  ;;  %v2872_v28 = vpop.f32.mrf.mxu0  ;;  %6767 = vmatmul.mubr.f32.gmra.mxu0 %v5050_v31  ;;  %v5052_v24 = vld [vmem:[#allocation2 + $0xca] sm:$0xff] }
 0x227   : > { %9421 = vst [vmem:[#allocation22_spill] sm:$0xff] %v8746_v55  ;;  %v3129_v25 = vpop.f32.mrf.mxu1  ;;  %4845 = vmatmul.mubr.f32.gmra.mxu1 %v4547_v3  ;;  %v3278_v16 = vadd.f32 %v2872_v28, %v9422_v52  ;;  %6769 = vmatprep.mubr.f32.mxu0 %v5051_v30  ;;  %v4549_v30 = vld [vmem:[#allocation2 + $0x141] sm:$0xff] }
 0x228   : > { %v8750_v9 = vadd.f32 %v3129_v25, %v9423_v35  ;;  %4850 = vmatprep.mubr.f32.mxu1 %v9367_v4  ;;  %v2874_v10 = vpop.f32.mrf.mxu0  ;;  %v5054_v52 = vld [vmem:[#allocation2 + $0xe2] sm:$0xff] }
 0x229   : > { %v8753_v1 = vpop.f32.mrf.mxu1  ;;  %5620 = vst [vmem:[%s6908_s24 + $0x2a0] sm:$0xff] %v3278_v16  ;;  %v8757_v15 = vadd.f32 %v2874_v10, %v9425_v5  ;;  %v5055_v16 = vld [vmem:[#allocation2 + $0xf2] sm:$0xff]  ;;  %v9428_v10 = vld [vmem:[#allocation26_spill] sm:$0xff] }
 0x22a   : > { %9424 = vst [vmem:[#allocation43_spill] sm:$0xff] %v8750_v9  ;;  %v2878_v3 = vpop.f32.mrf.mxu0  ;;  %6770 = vmatmul.mubr.f32.gmra.mxu0 %v5052_v24 }
 0x22b   : > { %v3135_v31 = vpop.f32.mrf.mxu1  ;;  %4851 = vmatmul.mubr.f32.gmra.mxu1 %v4548_v45  ;;  %v3282_v28 = vadd.f32 %v2878_v3, %v8370_v47  ;;  %6772 = vmatprep.mubr.f32.mxu0 %v5053_v7  ;;  %v9430_v47 = vld [vmem:[#allocation47_spill] sm:$0xff]  ;;  %v9431_v3 = vld [vmem:[#allocation48_spill] sm:$0xff] }
 0x22c   : > { %v8761_v25 = vadd.f32 %v3135_v31, %v8373_v20  ;;  %4856 = vmatprep.mubr.f32.mxu1 %v9367_v4  ;;  %v2880_v35 = vpop.f32.mrf.mxu0  ;;  %v4550_v7 = vld [vmem:[#allocation2 + $0x151] sm:$0xff] }
 0x22d   : > { %v8764_v9 = vpop.f32.mrf.mxu1  ;;  %5624 = vst [vmem:[%s6908_s24 + $0x2c0] sm:$0xff] %v3282_v28  ;;  %v8768_v5 = vadd.f32 %v2880_v35, %v9428_v10  ;;  %v5057_v28 = vld [vmem:[#allocation2 + $0x10a] sm:$0xff]  ;;  %v9433_v35 = vld [vmem:[#allocation25_spill] sm:$0xff] }
 0x22e   : > { %9426 = vst [vmem:[#allocation44_spill] sm:$0xff] %v8761_v25  ;;  %9427 = vst [vmem:[#allocation21_spill] sm:$0xff] %v8764_v9  ;;  %v2884_v24 = vpop.f32.mrf.mxu0  ;;  %6773 = vmatmul.mubr.f32.gmra.mxu0 %v5054_v52  ;;  %v5056_v25 = vld [vmem:[#allocation2 + $0xfa] sm:$0xff] }
 0x22f   : > { %9429 = vst [vmem:[#allocation24_spill] sm:$0xff] %v8768_v5  ;;  %v3141_v45 = vpop.f32.mrf.mxu1  ;;  %4857 = vmatmul.mubr.f32.gmra.mxu1 %v4549_v30  ;;  %v3286_v20 = vadd.f32 %v2884_v24, %v9430_v47  ;;  %6775 = vmatprep.mubr.f32.mxu0 %v5055_v16  ;;  %v4551_v16 = vld [vmem:[#allocation2 + $0x159] sm:$0xff] }
 0x230   : > { %v8772_v31 = vadd.f32 %v3141_v45, %v9431_v3  ;;  %4862 = vmatprep.mubr.f32.mxu1 %v9367_v4  ;;  %v2886_v9 = vpop.f32.mrf.mxu0  ;;  %v5058_v47 = vld [vmem:[#allocation2 + $0x112] sm:$0xff] }
 0x231   : > { %v8775_v55 = vpop.f32.mrf.mxu1  ;;  %5628 = vst [vmem:[%s6908_s24 + $0x2e0] sm:$0xff] %v3286_v20  ;;  %v8779_v10 = vadd.f32 %v2886_v9, %v9433_v35  ;;  %v5059_v20 = vld [vmem:[#allocation2 + $0x122] sm:$0xff]  ;;  %v9436_v9 = vld [vmem:[#allocation28_spill] sm:$0xff] }
 0x232   : > { %9432 = vst [vmem:[#allocation45_spill] sm:$0xff] %v8772_v31  ;;  %v2890_v30 = vpop.f32.mrf.mxu0  ;;  %6776 = vmatmul.mubr.f32.gmra.mxu0 %v5056_v25 }
 0x233   : > { %v3147_v52 = vpop.f32.mrf.mxu1  ;;  %4863 = vmatmul.mubr.f32.gmra.mxu1 %v4550_v7  ;;  %v3290_v24 = vadd.f32 %v2890_v30, %v8391_v23  ;;  %6778 = vmatprep.mubr.f32.mxu0 %v5057_v28  ;;  %v9437_v23 = vld [vmem:[#allocation49_spill] sm:$0xff]  ;;  %v9438_v30 = vld [vmem:[#allocation50_spill] sm:$0xff] }
 0x234   : > { %v8783_v45 = vadd.f32 %v3147_v52, %v8394_v26  ;;  %4868 = vmatprep.mubr.f32.mxu1 %v9367_v4  ;;  %v2892_v3 = vpop.f32.mrf.mxu0  ;;  %v4552_v28 = vld [vmem:[#allocation2 + $0x169] sm:$0xff] }
 0x235   : > { %v8786_v31 = vpop.f32.mrf.mxu1  ;;  %5632 = vst [vmem:[%s6908_s24 + $0x300] sm:$0xff] %v3290_v24  ;;  %v8790_v35 = vadd.f32 %v2892_v3, %v9436_v9  ;;  %v5061_v24 = vld [vmem:[#allocation2 + $0x13a] sm:$0xff]  ;;  %v9440_v3 = vld [vmem:[#allocation27_spill] sm:$0xff] }
 0x236   : > { %9434 = vst [vmem:[#allocation46_spill] sm:$0xff] %v8783_v45  ;;  %9435 = vst [vmem:[#allocation23_spill] sm:$0xff] %v8786_v31  ;;  %v2896_v25 = vpop.f32.mrf.mxu0  ;;  %6779 = vmatmul.mubr.f32.gmra.mxu0 %v5058_v47  ;;  %v5060_v45 = vld [vmem:[#allocation2 + $0x12a] sm:$0xff] }
 0x237   : > { %v3153_v7 = vpop.f32.mrf.mxu1  ;;  %4869 = vmatmul.mubr.f32.gmra.mxu1 %v4551_v16  ;;  %v3294_v26 = vadd.f32 %v2896_v25, %v9437_v23  ;;  %6781 = vmatprep.mubr.f32.mxu0 %v5059_v20  ;;  %v4553_v20 = vld [vmem:[#allocation2 + $0x171] sm:$0xff]  ;;  %v5062_v23 = vld [vmem:[#allocation2 + $0x142] sm:$0xff] }
 0x238   : > { %v8794_v52 = vadd.f32 %v3153_v7, %v9438_v30  ;;  %4874 = vmatprep.mubr.f32.mxu1 %v9367_v4  ;;  %v2898_v31 = vpop.f32.mrf.mxu0 }
 0x239   : > { %v8797_v5 = vpop.f32.mrf.mxu1  ;;  %5636 = vst [vmem:[%s6908_s24 + $0x320] sm:$0xff] %v3294_v26  ;;  %v8801_v9 = vadd.f32 %v2898_v31, %v9440_v3  ;;  %v5063_v26 = vld [vmem:[#allocation2 + $0x152] sm:$0xff]  ;;  %v9443_v31 = vld [vmem:[#allocation30_spill] sm:$0xff] }
 0x23a   : > { %9439 = vst [vmem:[#allocation26_spill] sm:$0xff] %v8794_v52  ;;  %v2902_v16 = vpop.f32.mrf.mxu0  ;;  %6782 = vmatmul.mubr.f32.gmra.mxu0 %v5060_v45 }
 0x23b   : > { %v3159_v47 = vpop.f32.mrf.mxu1  ;;  %4875 = vmatmul.mubr.f32.gmra.mxu1 %v4552_v28  ;;  %v3298_v25 = vadd.f32 %v2902_v16, %v8412_v46  ;;  %6784 = vmatprep.mubr.f32.mxu0 %v5061_v24  ;;  %v4554_v24 = vld [vmem:[#allocation2 + $0x181] sm:$0xff] }
 0x23c   : > { %v8805_v7 = vadd.f32 %v3159_v47, %v8415_v38  ;;  %4880 = vmatprep.mubr.f32.mxu1 %v9367_v4  ;;  %v2904_v30 = vpop.f32.mrf.mxu0  ;;  %v9445_v38 = vld [vmem:[#allocation51_spill] sm:$0xff]  ;;  %v5064_v47 = vld [vmem:[#allocation2 + $0x15a] sm:$0xff] }
 0x23d   : > { %v8808_v52 = vpop.f32.mrf.mxu1  ;;  %5640 = vst [vmem:[%s6908_s24 + $0x340] sm:$0xff] %v3298_v25  ;;  %v8812_v3 = vadd.f32 %v2904_v30, %v9443_v31  ;;  %v5065_v25 = vld [vmem:[#allocation2 + $0x16a] sm:$0xff]  ;;  %v9447_v30 = vld [vmem:[#allocation29_spill] sm:$0xff] }
 0x23e   : > { %9441 = vst [vmem:[#allocation47_spill] sm:$0xff] %v8805_v7  ;;  %9442 = vst [vmem:[#allocation48_spill] sm:$0xff] %v8808_v52  ;;  %v2908_v45 = vpop.f32.mrf.mxu0  ;;  %6785 = vmatmul.mubr.f32.gmra.mxu0 %v5062_v23 }
 0x23f   : > { %9444 = vst [vmem:[#allocation25_spill] sm:$0xff] %v8812_v3  ;;  %v3165_v28 = vpop.f32.mrf.mxu1  ;;  %4881 = vmatmul.mubr.f32.gmra.mxu1 %v4553_v20  ;;  %v3302_v46 = vadd.f32 %v2908_v45, %v8403_v39  ;;  %6787 = vmatprep.mubr.f32.mxu0 %v5063_v26  ;;  %v9449_v45 = vld [vmem:[#allocation54_spill] sm:$0xff] }
 0x240   : > { %v8816_v16 = vadd.f32 %v3165_v28, %v9445_v38  ;;  %4886 = vmatprep.mubr.f32.mxu1 %v9367_v4  ;;  %v2910_v7 = vpop.f32.mrf.mxu0  ;;  %v4555_v26 = vld [vmem:[#allocation2 + $0x189] sm:$0xff]  ;;  %v5066_v38 = vld [vmem:[#allocation2 + $0x172] sm:$0xff] }
 0x241   : > { %v8819_v52 = vpop.f32.mrf.mxu1  ;;  %5644 = vst [vmem:[%s6908_s24 + $0x360] sm:$0xff] %v3302_v46  ;;  %v8823_v31 = vadd.f32 %v2910_v7, %v9447_v30  ;;  %v5067_v46 = vld [vmem:[#allocation2 + $0x182] sm:$0xff]  ;;  %v9452_v7 = vld [vmem:[#allocation32_spill] sm:$0xff] }
 0x242   : > { %9446 = vst [vmem:[#allocation28_spill] sm:$0xff] %v8816_v16  ;;  %v2914_v20 = vpop.f32.mrf.mxu0  ;;  %6788 = vmatmul.mubr.f32.gmra.mxu0 %v5064_v47 }
 0x243   : > { %9448 = vst [vmem:[#allocation49_spill] sm:$0xff] %v8823_v31  ;;  %v3171_v23 = vpop.f32.mrf.mxu1  ;;  %4887 = vmatmul.mubr.f32.gmra.mxu1 %v4554_v24  ;;  %v3306_v39 = vadd.f32 %v2914_v20, %v8433_v11  ;;  %6790 = vmatprep.mubr.f32.mxu0 %v5065_v25  ;;  %v9453_v11 = vld [vmem:[#allocation52_spill] sm:$0xff] }
 0x244   : > { %v8827_v28 = vadd.f32 %v3171_v23, %v9449_v45  ;;  %4892 = vmatprep.mubr.f32.mxu1 %v9367_v4  ;;  %v2916_v16 = vpop.f32.mrf.mxu0  ;;  %v9454_v23 = vld [vmem:[#allocation53_spill] sm:$0xff] }
 0x245   : > { %v8830_v3 = vpop.f32.mrf.mxu1  ;;  %5648 = vst [vmem:[%s6908_s24 + $0x380] sm:$0xff] %v3306_v39  ;;  %v8834_v30 = vadd.f32 %v2916_v16, %v9452_v7  ;;  %v4556_v25 = vld [vmem:[#allocation2 + $0x199] sm:$0xff]  ;;  %v9456_v16 = vld [vmem:[#allocation31_spill] sm:$0xff] }
 0x246   : > { %9450 = vst [vmem:[#allocation50_spill] sm:$0xff] %v8827_v28  ;;  %9451 = vst [vmem:[#allocation27_spill] sm:$0xff] %v8830_v3  ;;  %v2920_v24 = vpop.f32.mrf.mxu0  ;;  %6791 = vmatmul.mubr.f32.gmra.mxu0 %v5066_v38  ;;  %v5068_v28 = vld [vmem:[#allocation2 + $0x18a] sm:$0xff]  ;;  %v5069_v39 = vld [vmem:[#allocation2 + $0x19a] sm:$0xff] }
 0x247   : > { %v3177_v47 = vpop.f32.mrf.mxu1  ;;  %4893 = vmatmul.mubr.f32.gmra.mxu1 %v4555_v26  ;;  %v3310_v20 = vadd.f32 %v2920_v24, %v9453_v11  ;;  %6793 = vmatprep.mubr.f32.mxu0 %v5067_v46  ;;  %v9457_v24 = vld [vmem:[#allocation7_spill] sm:$0xff] }
 0x248   : > { %v8838_v45 = vadd.f32 %v3177_v47, %v9454_v23  ;;  %4898 = vmatprep.mubr.f32.mxu1 %v9367_v4  ;;  %v2922_v3 = vpop.f32.mrf.mxu0  ;;  %v364_v47 = vsub.s32 3, %v9457_v24  ;;  %v4557_v23 = vld [vmem:[#allocation2 + $0x1a1] sm:$0xff] }
 0x249   : > { %v8841_v31 = vpop.f32.mrf.mxu1  ;;  %5652 = vst [vmem:[%s6908_s24 + $0x3a0] sm:$0xff] %v3310_v20  ;;  %v8845_v7 = vadd.f32 %v2922_v3, %v9456_v16  ;;  %v9459_v16 = vld [vmem:[#allocation33_spill] sm:$0xff] }
 0x24a   : > { %9455 = vst [vmem:[#allocation30_spill] sm:$0xff] %v8838_v45  ;;  %v2926_v26 = vpop.f32.mrf.mxu0  ;;  %6794 = vmatmul.mubr.f32.gmra.mxu0 %v5068_v28  ;;  %v5070_v45 = vld [vmem:[#allocation2 + $0x1a2] sm:$0xff] }
 0x24b   : > { %v3183_v38 = vpop.f32.mrf.mxu1  ;;  %4899 = vmatmul.mubr.f32.gmra.mxu1 %v4556_v25  ;;  %v3314_v11 = vadd.f32 %v2926_v26, %v8453_v32  ;;  %6796 = vmatprep.mubr.f32.mxu0 %v5069_v39  ;;  %v6825_v32 = vld [vmem:[%s9313_s2] sm:$0xf]  ;;  %v9460_v39 = vld [vmem:[#allocation55_spill] sm:$0xff] }
 0x24c   : > { %v8850_v46 = vadd.f32 %v3183_v38, %v8456_v43  ;;  %4904 = vmatprep.mubr.f32.mxu1 %v9367_v4  ;;  %v2928_v20 = vpop.f32.mrf.mxu0  ;;  %v8862_v4 = vrot.slane %v6825_v32, %v364_v47 }
 0x24d   : > { %v8853_v3 = vpop.f32.mrf.mxu1  ;;  %5656 = vst [vmem:[%s6908_s24 + $0x3c0] sm:$0xff] %v3314_v11  ;;  %v8857_v25 = vadd.f32 %v2928_v20, %v9459_v16 }
 0x24e   : > { %9458 = vst [vmem:[#allocation51_spill] sm:$0xff] %v8850_v46  ;;  %v2932_v28 = vpop.f32.mrf.mxu0  ;;  %6797 = vmatmul.mubr.f32.gmra.mxu0 %v5070_v45  ;;  %v3201_v20 = vadd.f32 %v8479_v22, %v8862_v4  ;;  %v3197_v16 = vadd.f32 %v8464_v27, %v8862_v4  ;;  %v3209_v22 = vadd.f32 %v8509_v58, %v8862_v4 }
 0x24f   : > { %v3189_v24 = vpop.f32.mrf.mxu1  ;;  %4905 = vmatmul.mubr.f32.gmra.mxu1 %v4557_v23  ;;  %v3318_v43 = vadd.f32 %v2932_v28, %v8442_v60  ;;  %v3205_v27 = vadd.f32 %v8494_v12, %v8862_v4  ;;  %v3217_v58 = vadd.f32 %v8539_v42, %v8862_v4  ;;  %v3213_v12 = vadd.f32 %v8524_v14, %v8862_v4 }
 0x250   : > { %v8866_v26 = vadd.f32 %v3189_v24, %v9460_v39  ;;  %v8868_v38 = vpop.f32.mrf.mxu0  ;;  %v3225_v42 = vadd.f32 %v8569_v51, %v8862_v4  ;;  %v3221_v14 = vadd.f32 %v8554_v2, %v8862_v4  ;;  %v3233_v51 = vadd.f32 %v8599_v63, %v8862_v4 }
 0x251   : > { %v3191_v11 = vpop.f32.mrf.mxu1  ;;  %5660 = vst [vmem:[%s6908_s24 + $0x3e0] sm:$0xff] %v3318_v43  ;;  %v3229_v2 = vadd.f32 %v8584_v8, %v8862_v4  ;;  %v3241_v63 = vadd.f32 %v8629_v44, %v8862_v4  ;;  %v3237_v8 = vadd.f32 %v8614_v40, %v8862_v4  ;;  %v3249_v44 = vadd.f32 %v8659_v19, %v8862_v4 }
 0x252   : > { %9461 = vst [vmem:[#allocation29_spill] sm:$0xff] %v8866_v26  ;;  %v8874_v45 = vadd.f32 %v3191_v11, %v8862_v4  ;;  %v6513_v23 = vpop.f32.mrf.mxu0  ;;  %v3245_v40 = vadd.f32 %v8644_v59, %v8862_v4  ;;  %v3257_v19 = vadd.f32 %v8686_v13, %v8862_v4  ;;  %v9462_v59 = vld [vmem:[#allocation16_spill] sm:$0xff]  ;;  %v3265_v13 = vadd.f32 %v8709_v48, %v8862_v4 }
 0x253   : > { %v6593_v47 = vpop.f32.mrf.mxu1  ;;  %v3756_v60 = vadd.f32 %v6513_v23, %v8485_v37  ;;  %v3273_v48 = vadd.f32 %v8731_v36, %v8862_v4  ;;  %v3281_v36 = vadd.f32 %v8753_v1, %v8862_v4  ;;  %v3289_v1 = vadd.f32 %v8775_v55, %v8862_v4 }
 0x254   : > { %v8879_v28 = vadd.f32 %v6593_v47, %v3201_v20  ;;  %v3596_v24 = vpop.f32.mrf.mxu0  ;;  %v3297_v55 = vadd.f32 %v8797_v5, %v8862_v4  ;;  %v3305_v5 = vadd.f32 %v8819_v52, %v8862_v4  ;;  %v3313_v52 = vadd.f32 %v8841_v31, %v8862_v4  ;;  %v9482_v31 = vld [vmem:[#allocation34_spill] sm:$0xff] }
 0x255   : > { %v3933_v32 = vpop.f32.mrf.mxu1  ;;  %5541 = vst [vmem:[%s6908_s24 + $0x28] sm:$0xff] %v3756_v60  ;;  %v3755_v43 = vadd.f32 %v3596_v24, %v8470_v17 }
 0x256   : > { %v8885_v39 = vadd.f32 %v3933_v32, %v3197_v16  ;;  %v6516_v11 = vpop.f32.mrf.mxu0 }
 0x257   : > { %v6596_v26 = vpop.f32.mrf.mxu1  ;;  %5537 = vst [vmem:[%s6908_s24 + $0x8] sm:$0xff] %v3755_v43  ;;  %v3758_v37 = vadd.f32 %v6516_v11, %v8515_v41 }
 0x258   : > { %v8891_v20 = vadd.f32 %v6596_v26, %v3209_v22  ;;  %v3606_v23 = vpop.f32.mrf.mxu0 }
 0x259   : > { %v3943_v47 = vpop.f32.mrf.mxu1  ;;  %5549 = vst [vmem:[%s6908_s24 + $0x68] sm:$0xff] %v3758_v37  ;;  %v3757_v17 = vadd.f32 %v3606_v23, %v8500_v61 }
 0x25a   : > { %v8897_v16 = vadd.f32 %v3943_v47, %v3205_v27  ;;  %v6519_v60 = vpop.f32.mrf.mxu0 }
 0x25b   : > { %v6599_v24 = vpop.f32.mrf.mxu1  ;;  %5545 = vst [vmem:[%s6908_s24 + $0x48] sm:$0xff] %v3757_v17  ;;  %v3760_v41 = vadd.f32 %v6519_v60, %v8545_v54 }
 0x25c   : > { %v8903_v26 = vadd.f32 %v6599_v24, %v3217_v58  ;;  %v3616_v32 = vpop.f32.mrf.mxu0 }
 0x25d   : > { %v3953_v22 = vpop.f32.mrf.mxu1  ;;  %5557 = vst [vmem:[%s6908_s24 + $0xa8] sm:$0xff] %v3760_v41  ;;  %v3759_v61 = vadd.f32 %v3616_v32, %v8530_v49 }
 0x25e   : > { %v8909_v43 = vadd.f32 %v3953_v22, %v3213_v12  ;;  %v6522_v11 = vpop.f32.mrf.mxu0 }
 0x25f   : > { %v6602_v27 = vpop.f32.mrf.mxu1  ;;  %5553 = vst [vmem:[%s6908_s24 + $0x88] sm:$0xff] %v3759_v61  ;;  %v3762_v54 = vadd.f32 %v6522_v11, %v8575_v33 }
 0x260   : > { %v8915_v37 = vadd.f32 %v6602_v27, %v3225_v42  ;;  %v3626_v23 = vpop.f32.mrf.mxu0 }
 0x261   : > { %v3963_v47 = vpop.f32.mrf.mxu1  ;;  %5565 = vst [vmem:[%s6908_s24 + $0xe8] sm:$0xff] %v3762_v54  ;;  %v3761_v49 = vadd.f32 %v3626_v23, %v8560_v18 }
 0x262   : > { %v8921_v58 = vadd.f32 %v3963_v47, %v3221_v14  ;;  %v6525_v17 = vpop.f32.mrf.mxu0 }
 0x263   : > { %v6605_v60 = vpop.f32.mrf.mxu1  ;;  %5561 = vst [vmem:[%s6908_s24 + $0xc8] sm:$0xff] %v3761_v49  ;;  %v3764_v33 = vadd.f32 %v6525_v17, %v8605_v29 }
 0x264   : > { %v8927_v24 = vadd.f32 %v6605_v60, %v3233_v51  ;;  %v3636_v12 = vpop.f32.mrf.mxu0 }
 0x265   : > { %v3973_v41 = vpop.f32.mrf.mxu1  ;;  %5573 = vst [vmem:[%s6908_s24 + $0x128] sm:$0xff] %v3764_v33  ;;  %v3763_v18 = vadd.f32 %v3636_v12, %v8590_v6  ;;  %v3253_v33 = vadd.f32 %v9462_v59, %v8862_v4 }
 0x266   : > { %v8933_v32 = vadd.f32 %v3973_v41, %v3229_v2  ;;  %v6528_v22 = vpop.f32.mrf.mxu0 }
 0x267   : > { %v6608_v42 = vpop.f32.mrf.mxu1  ;;  %5569 = vst [vmem:[%s6908_s24 + $0x108] sm:$0xff] %v3763_v18  ;;  %v3766_v29 = vadd.f32 %v6528_v22, %v8635_v21 }
 0x268   : > { %v8939_v61 = vadd.f32 %v6608_v42, %v3241_v63  ;;  %v3646_v11 = vpop.f32.mrf.mxu0 }
 0x269   : > { %v3983_v27 = vpop.f32.mrf.mxu1  ;;  %5581 = vst [vmem:[%s6908_s24 + $0x168] sm:$0xff] %v3766_v29  ;;  %v3765_v6 = vadd.f32 %v3646_v11, %v8620_v57 }
 0x26a   : > { %v8945_v14 = vadd.f32 %v3983_v27, %v3237_v8  ;;  %v6531_v54 = vpop.f32.mrf.mxu0  ;;  %v9463_v8 = vld [vmem:[#allocation40_spill] sm:$0xff] }
 0x26b   : > { %v6611_v23 = vpop.f32.mrf.mxu1  ;;  %5577 = vst [vmem:[%s6908_s24 + $0x148] sm:$0xff] %v3765_v6  ;;  %v3768_v21 = vadd.f32 %v6531_v54, %v8665_v34  ;;  %v3261_v29 = vadd.f32 %v9463_v8, %v8862_v4 }
 0x26c   : > { %v8951_v47 = vadd.f32 %v6611_v23, %v3249_v44  ;;  %v3656_v51 = vpop.f32.mrf.mxu0 }
 0x26d   : > { %v3993_v49 = vpop.f32.mrf.mxu1  ;;  %5589 = vst [vmem:[%s6908_s24 + $0x1a8] sm:$0xff] %v3768_v21  ;;  %v3767_v57 = vadd.f32 %v3656_v51, %v8650_v0  ;;  %v9465_v21 = vld [vmem:[#allocation17_spill] sm:$0xff] }
 0x26e   : > { %v8957_v17 = vadd.f32 %v3993_v49, %v3245_v40  ;;  %v6534_v60 = vpop.f32.mrf.mxu0  ;;  %v3269_v51 = vadd.f32 %v9465_v21, %v8862_v4 }
 0x26f   : > { %v6614_v2 = vpop.f32.mrf.mxu1  ;;  %5585 = vst [vmem:[%s6908_s24 + $0x188] sm:$0xff] %v3767_v57  ;;  %v3770_v34 = vadd.f32 %v6534_v60, %v8692_v53  ;;  %v9466_v60 = vld [vmem:[#allocation20_spill] sm:$0xff] }
 0x270   : > { %v8963_v12 = vadd.f32 %v6614_v2, %v3257_v19  ;;  %v3666_v41 = vpop.f32.mrf.mxu0 }
 0x271   : > { %v4003_v63 = vpop.f32.mrf.mxu1  ;;  %5597 = vst [vmem:[%s6908_s24 + $0x1e8] sm:$0xff] %v3770_v34  ;;  %v3769_v0 = vadd.f32 %v3666_v41, %v8680_v50  ;;  %v9464_v50 = vld [vmem:[#allocation38_spill] sm:$0xff]  ;;  %v9467_v41 = vld [vmem:[#allocation19_spill] sm:$0xff] }
 0x272   : > { %v8969_v18 = vadd.f32 %v4003_v63, %v3253_v33  ;;  %v6537_v22 = vpop.f32.mrf.mxu0  ;;  %v3277_v63 = vadd.f32 %v9467_v41, %v8862_v4 }
 0x273   : > { %v6617_v42 = vpop.f32.mrf.mxu1  ;;  %5593 = vst [vmem:[%s6908_s24 + $0x1c8] sm:$0xff] %v3769_v0  ;;  %v3772_v53 = vadd.f32 %v6537_v22, %v8713_v56 }
 0x274   : > { %v8975_v11 = vadd.f32 %v6617_v42, %v3265_v13  ;;  %v3676_v27 = vpop.f32.mrf.mxu0  ;;  %v9468_v42 = vld [vmem:[#allocation22_spill] sm:$0xff] }
 0x275   : > { %v4013_v44 = vpop.f32.mrf.mxu1  ;;  %5605 = vst [vmem:[%s6908_s24 + $0x228] sm:$0xff] %v3772_v53  ;;  %v3771_v6 = vadd.f32 %v3676_v27, %v9464_v50 }
 0x276   : > { %v8981_v54 = vadd.f32 %v4013_v44, %v3261_v29  ;;  %v6540_v23 = vpop.f32.mrf.mxu0  ;;  %v9469_v44 = vld [vmem:[#allocation21_spill] sm:$0xff] }
 0x277   : > { %v6620_v40 = vpop.f32.mrf.mxu1  ;;  %5601 = vst [vmem:[%s6908_s24 + $0x208] sm:$0xff] %v3771_v6  ;;  %v3774_v56 = vadd.f32 %v6540_v23, %v8735_v62 }
 0x278   : > { %v8987_v49 = vadd.f32 %v6620_v40, %v3273_v48  ;;  %v3686_v19 = vpop.f32.mrf.mxu0  ;;  %v3285_v48 = vadd.f32 %v9469_v44, %v8862_v4  ;;  %v9470_v40 = vld [vmem:[#allocation24_spill] sm:$0xff] }
 0x279   : > { %v4023_v57 = vpop.f32.mrf.mxu1  ;;  %5613 = vst [vmem:[%s6908_s24 + $0x268] sm:$0xff] %v3774_v56  ;;  %v3773_v2 = vadd.f32 %v3686_v19, %v9466_v60 }
 0x27a   : > { %v8993_v59 = vadd.f32 %v4023_v57, %v3269_v51  ;;  %v6543_v33 = vpop.f32.mrf.mxu0  ;;  %v9472_v57 = vld [vmem:[#allocation23_spill] sm:$0xff] }
 0x27b   : > { %v6623_v34 = vpop.f32.mrf.mxu1  ;;  %5609 = vst [vmem:[%s6908_s24 + $0x248] sm:$0xff] %v3773_v2  ;;  %v3776_v62 = vadd.f32 %v6543_v33, %v8757_v15 }
 0x27c   : > { %v8999_v13 = vadd.f32 %v6623_v34, %v3281_v36  ;;  %v3696_v0 = vpop.f32.mrf.mxu0  ;;  %v3293_v36 = vadd.f32 %v9472_v57, %v8862_v4 }
 0x27d   : > { %v4033_v22 = vpop.f32.mrf.mxu1  ;;  %5621 = vst [vmem:[%s6908_s24 + $0x2a8] sm:$0xff] %v3776_v62  ;;  %v3775_v8 = vadd.f32 %v3696_v0, %v9468_v42  ;;  %v9475_v0 = vld [vmem:[#allocation48_spill] sm:$0xff] }
 0x27e   : > { %v9005_v29 = vadd.f32 %v4033_v22, %v3277_v63  ;;  %v6546_v53 = vpop.f32.mrf.mxu0  ;;  %v3301_v22 = vadd.f32 %v9475_v0, %v8862_v4 }
 0x27f   : > { %v6626_v27 = vpop.f32.mrf.mxu1  ;;  %5617 = vst [vmem:[%s6908_s24 + $0x288] sm:$0xff] %v3775_v8  ;;  %v3778_v15 = vadd.f32 %v6546_v53, %v8779_v10 }
 0x280   : > { %v9011_v50 = vadd.f32 %v6626_v27, %v3289_v1  ;;  %v3706_v6 = vpop.f32.mrf.mxu0 }
 0x281   : > { %v4043_v23 = vpop.f32.mrf.mxu1  ;;  %5629 = vst [vmem:[%s6908_s24 + $0x2e8] sm:$0xff] %v3778_v15  ;;  %v3777_v21 = vadd.f32 %v3706_v6, %v9470_v40  ;;  %v9480_v6 = vld [vmem:[#allocation27_spill] sm:$0xff] }
 0x282   : > { %v9017_v51 = vadd.f32 %v4043_v23, %v3285_v48  ;;  %v6549_v56 = vpop.f32.mrf.mxu0  ;;  %v3309_v23 = vadd.f32 %v9480_v6, %v8862_v4 }
 0x283   : > { %v6629_v19 = vpop.f32.mrf.mxu1  ;;  %5625 = vst [vmem:[%s6908_s24 + $0x2c8] sm:$0xff] %v3777_v21  ;;  %v3780_v10 = vadd.f32 %v6549_v56, %v8801_v9  ;;  %v9476_v9 = vld [vmem:[#allocation49_spill] sm:$0xff] }
 0x284   : > { %9471 = vst [vmem:[#allocation54_spill] sm:$0xff] %v9017_v51  ;;  %v9023_v60 = vadd.f32 %v6629_v19, %v3297_v55  ;;  %v3716_v2 = vpop.f32.mrf.mxu0  ;;  %v3319_v19 = vadd.f32 %v8868_v38, %v9482_v31  ;;  %v9489_v31 = vld [vmem:[#allocation59_spill] sm:$0xff] }
 0x285   : > { %v4053_v33 = vpop.f32.mrf.mxu1  ;;  %5637 = vst [vmem:[%s6908_s24 + $0x328] sm:$0xff] %v3780_v10  ;;  %v3779_v34 = vadd.f32 %v3716_v2, %v8790_v35  ;;  %v9478_v35 = vld [vmem:[#allocation25_spill] sm:$0xff] }
 0x286   : > { %9473 = vst [vmem:[#allocation32_spill] sm:$0xff] %v9023_v60  ;;  %v9029_v41 = vadd.f32 %v4053_v33, %v3293_v36  ;;  %v6552_v63 = vpop.f32.mrf.mxu0  ;;  %v3317_v33 = vadd.f32 %v8853_v3, %v8862_v4  ;;  %v9486_v3 = vld [vmem:[#allocation57_spill] sm:$0xff] }
 0x287   : > { %v6632_v62 = vpop.f32.mrf.mxu1  ;;  %5633 = vst [vmem:[%s6908_s24 + $0x308] sm:$0xff] %v3779_v34  ;;  %v3782_v1 = vadd.f32 %v6552_v63, %v9476_v9 }
 0x288   : > { %9474 = vst [vmem:[#allocation52_spill] sm:$0xff] %v9029_v41  ;;  %v9035_v42 = vadd.f32 %v6632_v62, %v3305_v5  ;;  %v3726_v8 = vpop.f32.mrf.mxu0 }
 0x289   : > { %v4063_v53 = vpop.f32.mrf.mxu1  ;;  %5645 = vst [vmem:[%s6908_s24 + $0x368] sm:$0xff] %v3782_v1  ;;  %v3781_v27 = vadd.f32 %v3726_v8, %v9478_v35  ;;  %v9487_v1 = vld [vmem:[#allocation56_spill] sm:$0xff] }
 0x28a   : > { %9477 = vst [vmem:[#allocation53_spill] sm:$0xff] %v9035_v42  ;;  %v9041_v44 = vadd.f32 %v4063_v53, %v3301_v22  ;;  %v6555_v48 = vpop.f32.mrf.mxu0 }
 0x28b   : > { %v6635_v15 = vpop.f32.mrf.mxu1  ;;  %5641 = vst [vmem:[%s6908_s24 + $0x348] sm:$0xff] %v3781_v27  ;;  %v3784_v55 = vadd.f32 %v6555_v48, %v8845_v7  ;;  %v9488_v48 = vld [vmem:[#allocation58_spill] sm:$0xff] }
 0x28c   : > { %9479 = vst [vmem:[#allocation31_spill] sm:$0xff] %v9041_v44  ;;  %v9047_v40 = vadd.f32 %v6635_v15, %v3313_v52  ;;  %v3736_v21 = vpop.f32.mrf.mxu0 }
 0x28d   : > { %v4073_v56 = vpop.f32.mrf.mxu1  ;;  %5653 = vst [vmem:[%s6908_s24 + $0x3a8] sm:$0xff] %v3784_v55  ;;  %v3783_v57 = vadd.f32 %v3736_v21, %v8834_v30 }
 0x28e   : > { %9481 = vst [vmem:[#allocation7_spill] sm:$0xff] %v9047_v40  ;;  %v9053_v36 = vadd.f32 %v4073_v56, %v3309_v23  ;;  %v6558_v10 = vpop.f32.mrf.mxu0 }
 0x28f   : > { %v6638_v2 = vpop.f32.mrf.mxu1  ;;  %5649 = vst [vmem:[%s6908_s24 + $0x388] sm:$0xff] %v3783_v57  ;;  %v3786_v7 = vadd.f32 %v6558_v10, %v3319_v19 }
 0x290   : > { %9483 = vst [vmem:[#allocation33_spill] sm:$0xff] %v9053_v36  ;;  %v9059_v5 = vadd.f32 %v6638_v2, %v8874_v45  ;;  %v3746_v34 = vpop.f32.mrf.mxu0 }
 0x291   : > { %v4083_v63 = vpop.f32.mrf.mxu1  ;;  %5661 = vst [vmem:[%s6908_s24 + $0x3e8] sm:$0xff] %v3786_v7  ;;  %v3785_v38 = vadd.f32 %v3746_v34, %v8857_v25  ;;  %v9490_v34 = vld [vmem:[#allocation8_spill] sm:$0xff] }
 0x292   : > { %9484 = vst [vmem:[#allocation55_spill] sm:$0xff] %v9059_v5  ;;  %v9063_v30 = vadd.f32 %v4083_v63, %v3317_v33  ;;  %v6673_v62 = vpop.f32.mrf.mxu0 }
 0x293   : > { %v4720_v0 = vpop.f32.mrf.mxu1  ;;  %5657 = vst [vmem:[%s6908_s24 + $0x3c8] sm:$0xff] %v3785_v38  ;;  %v4463_v4 = vadd.f32 %v6673_v62, %v9486_v3 }
 0x294   : > { %9485 = vst [vmem:[#allocation16_spill] sm:$0xff] %v9063_v30  ;;  %v4303_v22 = vpop.f32.mrf.mxu0 }
 0x295   : > { %v9066_v9 = vpop.f32.mrf.mxu1  ;;  %v4462_v45 = vadd.f32 %v4303_v22, %v9487_v1 }
 0x296   : > { %v6676_v8 = vpop.f32.mrf.mxu0 }
 0x297   : > { %v4726_v53 = vpop.f32.mrf.mxu1  ;;  %v4911_v52 = vadd.f32 %v4720_v0, %v4462_v45  ;;  %v4465_v19 = vadd.f32 %v6676_v8, %v9489_v31 }
 0x298   : > { %v4913_v35 = vadd.f32 %v4726_v53, %v4463_v4  ;;  %v4313_v27 = vpop.f32.mrf.mxu0  ;;  %v9491_v4 = vld [vmem:[#allocation60_spill] sm:$0xff] }
 0x299   : > { %v9070_v25 = vpop.f32.mrf.mxu1  ;;  %5538 = vst [vmem:[%s6908_s24 + $0x10] sm:$0xff] %v4911_v52  ;;  %v4464_v15 = vadd.f32 %v4313_v27, %v9488_v48  ;;  %v9492_v27 = vld [vmem:[#allocation9_spill] sm:$0xff] }
 0x29a   : > { %5542 = vst [vmem:[%s6908_s24 + $0x30] sm:$0xff] %v4913_v35  ;;  %v6679_v6 = vpop.f32.mrf.mxu0 }
 0x29b   : > { %v4732_v23 = vpop.f32.mrf.mxu1  ;;  %v4467_v1 = vadd.f32 %v6679_v6, %v9491_v4 }
 0x29c   : > { %v4915_v55 = vadd.f32 %v4732_v23, %v4464_v15  ;;  %v4323_v21 = vpop.f32.mrf.mxu0 }
 0x29d   : > { %v9075_v56 = vpop.f32.mrf.mxu1  ;;  %v4466_v63 = vadd.f32 %v4323_v21, %v9490_v34 }
 0x29e   : > { %5546 = vst [vmem:[%s6908_s24 + $0x50] sm:$0xff] %v4915_v55  ;;  %v6682_v57 = vpop.f32.mrf.mxu0 }
 0x29f   : > { %v4738_v10 = vpop.f32.mrf.mxu1 }
 0x2a0   : > { %v4917_v2 = vadd.f32 %v4738_v10, %v4465_v19  ;;  %v4333_v33 = vpop.f32.mrf.mxu0  ;;  %v9493_v19 = vld [vmem:[#allocation61_spill] sm:$0xff] }
 0x2a1   : > { %v9079_v7 = vpop.f32.mrf.mxu1  ;;  %v4468_v48 = vadd.f32 %v4333_v33, %v9492_v27  ;;  %v4469_v6 = vadd.f32 %v6682_v57, %v9493_v19 }
 0x2a2   : > { %5550 = vst [vmem:[%s6908_s24 + $0x70] sm:$0xff] %v4917_v2  ;;  %v6685_v38 = vpop.f32.mrf.mxu0 }
 0x2a3   : > { %v4744_v62 = vpop.f32.mrf.mxu1 }
 0x2a4   : > { %v4919_v0 = vadd.f32 %v4744_v62, %v4466_v63  ;;  %v4343_v22 = vpop.f32.mrf.mxu0 }
 0x2a5   : > { %v9083_v3 = vpop.f32.mrf.mxu1 }
 0x2a6   : > { %5554 = vst [vmem:[%s6908_s24 + $0x90] sm:$0xff] %v4919_v0  ;;  %v6688_v45 = vpop.f32.mrf.mxu0  ;;  %v9494_v0 = vld [vmem:[#allocation10_spill] sm:$0xff] }
 0x2a7   : > { %v4750_v8 = vpop.f32.mrf.mxu1  ;;  %v4470_v33 = vadd.f32 %v4343_v22, %v9494_v0  ;;  %v9496_v22 = vld [vmem:[#allocation11_spill] sm:$0xff] }
 0x2a8   : > { %v4921_v53 = vadd.f32 %v4750_v8, %v4467_v1  ;;  %v4353_v52 = vpop.f32.mrf.mxu0 }
 0x2a9   : > { %v9087_v35 = vpop.f32.mrf.mxu1 }
 0x2aa   : > { %5558 = vst [vmem:[%s6908_s24 + $0xb0] sm:$0xff] %v4921_v53  ;;  %v6691_v15 = vpop.f32.mrf.mxu0 }
 0x2ab   : > { %v4756_v23 = vpop.f32.mrf.mxu1 }
 0x2ac   : > { %v4923_v55 = vadd.f32 %v4756_v23, %v4468_v48  ;;  %v4363_v21 = vpop.f32.mrf.mxu0  ;;  %v9495_v48 = vld [vmem:[#allocation12_spill] sm:$0xff] }
 0x2ad   : > { %v9091_v31 = vpop.f32.mrf.mxu1  ;;  %v4471_v57 = vadd.f32 %v6685_v38, %v9495_v48 }
 0x2ae   : > { %5562 = vst [vmem:[%s6908_s24 + $0xd0] sm:$0xff] %v4923_v55  ;;  %v6694_v10 = vpop.f32.mrf.mxu0 }
 0x2af   : > { %v4762_v2 = vpop.f32.mrf.mxu1 }
 0x2b0   : > { %v4925_v34 = vadd.f32 %v4762_v2, %v4469_v6  ;;  %v4373_v63 = vpop.f32.mrf.mxu0 }
 0x2b1   : > { %v9095_v62 = vpop.f32.mrf.mxu1 }
 0x2b2   : > { %5566 = vst [vmem:[%s6908_s24 + $0xf0] sm:$0xff] %v4925_v34  ;;  %v9099_v4 = vpop.f32.mrf.mxu0  ;;  %v4472_v34 = vadd.f32 %v4353_v52, %v9496_v22 }
 0x2b3   : > { %v4768_v1 = vpop.f32.mrf.mxu1 }
 0x2b4   : > { %v4927_v8 = vadd.f32 %v4768_v1, %v4470_v33  ;;  %v4383_v53 = vpop.f32.mrf.mxu0 }
 0x2b5   : > { %v9101_v27 = vpop.f32.mrf.mxu1 }
 0x2b6   : > { %5570 = vst [vmem:[%s6908_s24 + $0x110] sm:$0xff] %v4927_v8  ;;  %v9105_v23 = vpop.f32.mrf.mxu0  ;;  %v9497_v8 = vld [vmem:[#allocation14_spill] sm:$0xff] }
 0x2b7   : > { %v4774_v55 = vpop.f32.mrf.mxu1  ;;  %v4473_v48 = vadd.f32 %v6688_v45, %v9497_v8 }
 0x2b8   : > { %v4929_v19 = vadd.f32 %v4774_v55, %v4471_v57  ;;  %v9107_v6 = vpop.f32.mrf.mxu0 }
 0x2b9   : > { %v9109_v2 = vpop.f32.mrf.mxu1 }
 0x2ba   : > { %5574 = vst [vmem:[%s6908_s24 + $0x130] sm:$0xff] %v4929_v19  ;;  %v9113_v0 = vpop.f32.mrf.mxu0  ;;  %v9498_v19 = vld [vmem:[#allocation35_spill] sm:$0xff] }
 0x2bb   : > { %v4780_v33 = vpop.f32.mrf.mxu1  ;;  %v4474_v22 = vadd.f32 %v4363_v21, %v9498_v19 }
 0x2bc   : > { %v4931_v1 = vadd.f32 %v4780_v33, %v4472_v34  ;;  %v9115_v5 = vpop.f32.mrf.mxu0 }
 0x2bd   : > { %v9117_v38 = vpop.f32.mrf.mxu1 }
 0x2be   : > { %5578 = vst [vmem:[%s6908_s24 + $0x150] sm:$0xff] %v4931_v1  ;;  %v9121_v57 = vpop.f32.mrf.mxu0  ;;  %v9499_v1 = vld [vmem:[#allocation13_spill] sm:$0xff] }
 0x2bf   : > { %v4786_v55 = vpop.f32.mrf.mxu1  ;;  %v4475_v8 = vadd.f32 %v6691_v15, %v9499_v1 }
 0x2c0   : > { %v4933_v30 = vadd.f32 %v4786_v55, %v4473_v48  ;;  %v9123_v36 = vpop.f32.mrf.mxu0 }
 0x2c1   : > { %v9125_v52 = vpop.f32.mrf.mxu1 }
 0x2c2   : > { %5582 = vst [vmem:[%s6908_s24 + $0x170] sm:$0xff] %v4933_v30  ;;  %v9129_v34 = vpop.f32.mrf.mxu0  ;;  %v9500_v30 = vld [vmem:[#allocation36_spill] sm:$0xff] }
 0x2c3   : > { %v4792_v33 = vpop.f32.mrf.mxu1  ;;  %v4476_v19 = vadd.f32 %v4373_v63, %v9500_v30  ;;  %v4914_v30 = vadd.f32 %v9070_v25, %v8879_v28 }
 0x2c4   : > { %v4935_v40 = vadd.f32 %v4792_v33, %v4474_v22  ;;  %v9131_v46 = vpop.f32.mrf.mxu0 }
 0x2c5   : > { %v9133_v45 = vpop.f32.mrf.mxu1 }
 0x2c6   : > { %5586 = vst [vmem:[%s6908_s24 + $0x190] sm:$0xff] %v4935_v40  ;;  %v9137_v48 = vpop.f32.mrf.mxu0  ;;  %v9503_v40 = vld [vmem:[#allocation37_spill] sm:$0xff] }
 0x2c7   : > { %v4798_v55 = vpop.f32.mrf.mxu1  ;;  %v4477_v1 = vadd.f32 %v6694_v10, %v9503_v40 }
 0x2c8   : > { %v4937_v44 = vadd.f32 %v4798_v55, %v4475_v8  ;;  %v9139_v42 = vpop.f32.mrf.mxu0 }
 0x2c9   : > { %v9141_v21 = vpop.f32.mrf.mxu1 }
 0x2ca   : > { %5590 = vst [vmem:[%s6908_s24 + $0x1b0] sm:$0xff] %v4937_v44  ;;  %v9145_v22 = vpop.f32.mrf.mxu0 }
 0x2cb   : > { %9501 = vst [vmem:[#allocation40_spill] sm:$0xff] %v9145_v22  ;;  %v4804_v33 = vpop.f32.mrf.mxu1 }
 0x2cc   : > { %v4939_v41 = vadd.f32 %v4804_v33, %v4476_v19  ;;  %v9147_v60 = vpop.f32.mrf.mxu0  ;;  %v9506_v19 = vld [vmem:[#allocation15_spill] sm:$0xff] }
 0x2cd   : > { %9502 = vst [vmem:[#allocation38_spill] sm:$0xff] %v9147_v60  ;;  %v9149_v15 = vpop.f32.mrf.mxu1  ;;  %v4478_v33 = vadd.f32 %v4383_v53, %v9506_v19  ;;  %v9507_v60 = vld [vmem:[#allocation18_spill] sm:$0xff] }
 0x2ce   : > { %5594 = vst [vmem:[%s6908_s24 + $0x1d0] sm:$0xff] %v4939_v41  ;;  %v9153_v8 = vpop.f32.mrf.mxu0  ;;  %v4912_v41 = vadd.f32 %v9066_v9, %v8885_v39  ;;  %v4479_v28 = vadd.f32 %v9099_v4, %v9507_v60  ;;  %v4916_v39 = vadd.f32 %v9075_v56, %v8897_v16  ;;  %v9508_v60 = vld [vmem:[#allocation39_spill] sm:$0xff]  ;;  %v4920_v56 = vadd.f32 %v9083_v3, %v8909_v43 }
 0x2cf   : > { %9504 = vst [vmem:[#allocation17_spill] sm:$0xff] %v9153_v8  ;;  %v4810_v55 = vpop.f32.mrf.mxu1  ;;  %v4924_v3 = vadd.f32 %v9091_v31, %v8921_v58  ;;  %v4928_v31 = vadd.f32 %v9101_v27, %v8933_v32  ;;  %v4932_v27 = vadd.f32 %v9117_v38, %v8945_v14  ;;  %v4936_v14 = vadd.f32 %v9133_v45, %v8957_v17 }
 0x2d0   : > { %v4941_v51 = vadd.f32 %v4810_v55, %v4477_v1  ;;  %v9155_v63 = vpop.f32.mrf.mxu0  ;;  %v4940_v17 = vadd.f32 %v9149_v15, %v8969_v18 }
 0x2d1   : > { %9505 = vst [vmem:[#allocation20_spill] sm:$0xff] %v9155_v63  ;;  %v9157_v44 = vpop.f32.mrf.mxu1  ;;  %v4918_v63 = vadd.f32 %v9079_v7, %v8891_v20  ;;  %v4922_v20 = vadd.f32 %v9087_v35, %v8903_v26  ;;  %v4480_v7 = vadd.f32 %v9107_v6, %v9508_v60  ;;  %v4926_v26 = vadd.f32 %v9095_v62, %v8915_v37  ;;  %v9509_v35 = vld [vmem:[#allocation41_spill] sm:$0xff]  ;;  %v9510_v62 = vld [vmem:[#allocation42_spill] sm:$0xff] }
 0x2d2   : > { %5598 = vst [vmem:[%s6908_s24 + $0x1f0] sm:$0xff] %v4941_v51  ;;  %v6753_v10 = vpop.f32.mrf.mxu0  ;;  %v4481_v6 = vadd.f32 %v9105_v23, %v9509_v35  ;;  %v4930_v37 = vadd.f32 %v9109_v2, %v8927_v24  ;;  %v4482_v23 = vadd.f32 %v9115_v5, %v9510_v62  ;;  %v9511_v24 = vld [vmem:[#allocation43_spill] sm:$0xff]  ;;  %v4934_v5 = vadd.f32 %v9125_v52, %v8939_v61 }
 0x2d3   : > { %v4816_v22 = vpop.f32.mrf.mxu1  ;;  %v5345_v8 = vadd.f32 %v6753_v10, %v4914_v30  ;;  %v4483_v2 = vadd.f32 %v9113_v0, %v9511_v24  ;;  %v4938_v61 = vadd.f32 %v9141_v21, %v8951_v47  ;;  %v4942_v47 = vadd.f32 %v9157_v44, %v8963_v12 }
 0x2d4   : > { %v4943_v40 = vadd.f32 %v4816_v22, %v4478_v33  ;;  %v5185_v55 = vpop.f32.mrf.mxu0 }
 0x2d5   : > { %v9165_v1 = vpop.f32.mrf.mxu1  ;;  %5543 = vst [vmem:[%s6908_s24 + $0x38] sm:$0xff] %v5345_v8  ;;  %v5344_v51 = vadd.f32 %v5185_v55, %v4912_v41 }
 0x2d6   : > { %5602 = vst [vmem:[%s6908_s24 + $0x210] sm:$0xff] %v4943_v40  ;;  %v6756_v53 = vpop.f32.mrf.mxu0  ;;  %v4944_v18 = vadd.f32 %v9165_v1, %v8981_v54 }
 0x2d7   : > { %v4822_v25 = vpop.f32.mrf.mxu1  ;;  %5539 = vst [vmem:[%s6908_s24 + $0x18] sm:$0xff] %v5344_v51  ;;  %v5347_v22 = vadd.f32 %v6756_v53, %v4918_v63 }
 0x2d8   : > { %v4945_v9 = vadd.f32 %v4822_v25, %v4479_v28  ;;  %v5195_v19 = vpop.f32.mrf.mxu0 }
 0x2d9   : > { %v9176_v30 = vpop.f32.mrf.mxu1  ;;  %5551 = vst [vmem:[%s6908_s24 + $0x78] sm:$0xff] %v5347_v22  ;;  %v5346_v4 = vadd.f32 %v5195_v19, %v4916_v39 }
 0x2da   : > { %5606 = vst [vmem:[%s6908_s24 + $0x230] sm:$0xff] %v4945_v9  ;;  %v6759_v16 = vpop.f32.mrf.mxu0  ;;  %v4946_v12 = vadd.f32 %v9176_v30, %v8975_v11 }
 0x2db   : > { %v4828_v8 = vpop.f32.mrf.mxu1  ;;  %5547 = vst [vmem:[%s6908_s24 + $0x58] sm:$0xff] %v5346_v4  ;;  %v5349_v33 = vadd.f32 %v6759_v16, %v4922_v20 }
 0x2dc   : > { %v4947_v63 = vadd.f32 %v4828_v8, %v4480_v7  ;;  %v5205_v41 = vpop.f32.mrf.mxu0 }
 0x2dd   : > { %v9187_v10 = vpop.f32.mrf.mxu1  ;;  %5559 = vst [vmem:[%s6908_s24 + $0xb8] sm:$0xff] %v5349_v33  ;;  %v5348_v40 = vadd.f32 %v5205_v41, %v4920_v56  ;;  %v9512_v33 = vld [vmem:[#allocation44_spill] sm:$0xff] }
 0x2de   : > { %5610 = vst [vmem:[%s6908_s24 + $0x250] sm:$0xff] %v4947_v63  ;;  %v6762_v43 = vpop.f32.mrf.mxu0  ;;  %v4484_v0 = vadd.f32 %v9123_v36, %v9512_v33  ;;  %v4948_v54 = vadd.f32 %v9187_v10, %v8993_v59 }
 0x2df   : > { %v4834_v55 = vpop.f32.mrf.mxu1  ;;  %5555 = vst [vmem:[%s6908_s24 + $0x98] sm:$0xff] %v5348_v40  ;;  %v5351_v51 = vadd.f32 %v6762_v43, %v4926_v26 }
 0x2e0   : > { %v4949_v28 = vadd.f32 %v4834_v55, %v4481_v6  ;;  %v5215_v53 = vpop.f32.mrf.mxu0  ;;  %v9513_v55 = vld [vmem:[#allocation45_spill] sm:$0xff] }
 0x2e1   : > { %v9198_v25 = vpop.f32.mrf.mxu1  ;;  %5567 = vst [vmem:[%s6908_s24 + $0xf8] sm:$0xff] %v5351_v51  ;;  %v5350_v39 = vadd.f32 %v5215_v53, %v4924_v3  ;;  %v4485_v36 = vadd.f32 %v9121_v57, %v9513_v55 }
 0x2e2   : > { %5614 = vst [vmem:[%s6908_s24 + $0x270] sm:$0xff] %v4949_v28  ;;  %v6765_v58 = vpop.f32.mrf.mxu0  ;;  %v4950_v11 = vadd.f32 %v9198_v25, %v8987_v49 }
 0x2e3   : > { %v4840_v9 = vpop.f32.mrf.mxu1  ;;  %5563 = vst [vmem:[%s6908_s24 + $0xd8] sm:$0xff] %v5350_v39  ;;  %v5353_v19 = vadd.f32 %v6765_v58, %v4930_v37  ;;  %v9514_v37 = vld [vmem:[#allocation46_spill] sm:$0xff] }
 0x2e4   : > { %v4951_v22 = vadd.f32 %v4840_v9, %v4482_v23  ;;  %v5225_v60 = vpop.f32.mrf.mxu0  ;;  %v4486_v57 = vadd.f32 %v9131_v46, %v9514_v37 }
 0x2e5   : > { %v9209_v20 = vpop.f32.mrf.mxu1  ;;  %5575 = vst [vmem:[%s6908_s24 + $0x138] sm:$0xff] %v5353_v19  ;;  %v5352_v7 = vadd.f32 %v5225_v60, %v4928_v31  ;;  %v9515_v31 = vld [vmem:[#allocation26_spill] sm:$0xff] }
 0x2e6   : > { %5618 = vst [vmem:[%s6908_s24 + $0x290] sm:$0xff] %v4951_v22  ;;  %v6768_v32 = vpop.f32.mrf.mxu0  ;;  %v4487_v46 = vadd.f32 %v9129_v34, %v9515_v31  ;;  %v4952_v59 = vadd.f32 %v9209_v20, %v9005_v29 }
 0x2e7   : > { %v4846_v4 = vpop.f32.mrf.mxu1  ;;  %5571 = vst [vmem:[%s6908_s24 + $0x118] sm:$0xff] %v5352_v7  ;;  %v5355_v16 = vadd.f32 %v6768_v32, %v4934_v5  ;;  %v9516_v5 = vld [vmem:[#allocation47_spill] sm:$0xff] }
 0x2e8   : > { %v4953_v8 = vadd.f32 %v4846_v4, %v4483_v2  ;;  %v5235_v63 = vpop.f32.mrf.mxu0  ;;  %v4488_v34 = vadd.f32 %v9139_v42, %v9516_v5 }
 0x2e9   : > { %v4848_v56 = vpop.f32.mrf.mxu1  ;;  %5583 = vst [vmem:[%s6908_s24 + $0x178] sm:$0xff] %v5355_v16  ;;  %v5354_v52 = vadd.f32 %v5235_v63, %v4932_v27  ;;  %v9517_v16 = vld [vmem:[#allocation28_spill] sm:$0xff] }
 0x2ea   : > { %5622 = vst [vmem:[%s6908_s24 + $0x2b0] sm:$0xff] %v4953_v8  ;;  %v6771_v26 = vpop.f32.mrf.mxu0  ;;  %v4954_v49 = vadd.f32 %v4848_v56, %v8999_v13  ;;  %v4489_v42 = vadd.f32 %v9137_v48, %v9517_v16 }
 0x2eb   : > { %v4852_v41 = vpop.f32.mrf.mxu1  ;;  %5579 = vst [vmem:[%s6908_s24 + $0x158] sm:$0xff] %v5354_v52  ;;  %v5357_v35 = vadd.f32 %v6771_v26, %v4938_v61  ;;  %v9519_v26 = vld [vmem:[#allocation50_spill] sm:$0xff] }
 0x2ec   : > { %v4955_v38 = vadd.f32 %v4852_v41, %v4484_v0  ;;  %v5245_v40 = vpop.f32.mrf.mxu0  ;;  %v9518_v0 = vld [vmem:[#allocation54_spill] sm:$0xff] }
 0x2ed   : > { %v4854_v6 = vpop.f32.mrf.mxu1  ;;  %5591 = vst [vmem:[%s6908_s24 + $0x1b8] sm:$0xff] %v5357_v35  ;;  %v5356_v21 = vadd.f32 %v5245_v40, %v4936_v14  ;;  %v9520_v14 = vld [vmem:[#allocation38_spill] sm:$0xff] }
 0x2ee   : > { %5626 = vst [vmem:[%s6908_s24 + $0x2d0] sm:$0xff] %v4955_v38  ;;  %v6774_v3 = vpop.f32.mrf.mxu0  ;;  %v4956_v29 = vadd.f32 %v4854_v6, %v9518_v0  ;;  %v4490_v48 = vadd.f32 %v9520_v14, %v9519_v26  ;;  %v9521_v38 = vld [vmem:[#allocation32_spill] sm:$0xff] }
 0x2ef   : > { %v4858_v43 = vpop.f32.mrf.mxu1  ;;  %5587 = vst [vmem:[%s6908_s24 + $0x198] sm:$0xff] %v5356_v21  ;;  %v5359_v28 = vadd.f32 %v6774_v3, %v4942_v47 }
 0x2f0   : > { %v4957_v45 = vadd.f32 %v4858_v43, %v4485_v36  ;;  %v5255_v53 = vpop.f32.mrf.mxu0  ;;  %v9522_v36 = vld [vmem:[#allocation52_spill] sm:$0xff] }
 0x2f1   : > { %v4860_v51 = vpop.f32.mrf.mxu1  ;;  %5599 = vst [vmem:[%s6908_s24 + $0x1f8] sm:$0xff] %v5359_v28  ;;  %v5358_v44 = vadd.f32 %v5255_v53, %v4940_v17  ;;  %v9523_v17 = vld [vmem:[#allocation30_spill] sm:$0xff] }
 0x2f2   : > { %5630 = vst [vmem:[%s6908_s24 + $0x2f0] sm:$0xff] %v4957_v45  ;;  %v6777_v23 = vpop.f32.mrf.mxu0  ;;  %v4958_v13 = vadd.f32 %v4860_v51, %v9011_v50  ;;  %v9524_v45 = vld [vmem:[#allocation40_spill] sm:$0xff]  ;;  %v9525_v51 = vld [vmem:[#allocation53_spill] sm:$0xff] }
 0x2f3   : > { %v4864_v62 = vpop.f32.mrf.mxu1  ;;  %5595 = vst [vmem:[%s6908_s24 + $0x1d8] sm:$0xff] %v5358_v44  ;;  %v5361_v39 = vadd.f32 %v6777_v23, %v4946_v12  ;;  %v4491_v28 = vadd.f32 %v9524_v45, %v9523_v17  ;;  %v9526_v44 = vld [vmem:[#allocation31_spill] sm:$0xff] }
 0x2f4   : > { %v4959_v15 = vadd.f32 %v4864_v62, %v4486_v57  ;;  %v5265_v58 = vpop.f32.mrf.mxu0 }
 0x2f5   : > { %v4866_v9 = vpop.f32.mrf.mxu1  ;;  %5607 = vst [vmem:[%s6908_s24 + $0x238] sm:$0xff] %v5361_v39  ;;  %v5360_v30 = vadd.f32 %v5265_v58, %v4944_v18  ;;  %v9528_v58 = vld [vmem:[#allocation20_spill] sm:$0xff] }
 0x2f6   : > { %5634 = vst [vmem:[%s6908_s24 + $0x310] sm:$0xff] %v4959_v15  ;;  %v6780_v19 = vpop.f32.mrf.mxu0  ;;  %v4960_v6 = vadd.f32 %v4866_v9, %v9522_v36  ;;  %v9527_v9 = vld [vmem:[#allocation51_spill] sm:$0xff] }
 0x2f7   : > { %v4870_v22 = vpop.f32.mrf.mxu1  ;;  %5603 = vst [vmem:[%s6908_s24 + $0x218] sm:$0xff] %v5360_v30  ;;  %v5363_v60 = vadd.f32 %v6780_v19, %v4950_v11  ;;  %v4492_v31 = vadd.f32 %v9528_v58, %v9527_v9 }
 0x2f8   : > { %v4961_v1 = vadd.f32 %v4870_v22, %v4487_v46  ;;  %v5275_v2 = vpop.f32.mrf.mxu0  ;;  %v9529_v46 = vld [vmem:[#allocation7_spill] sm:$0xff] }
 0x2f9   : > { %v4872_v24 = vpop.f32.mrf.mxu1  ;;  %5615 = vst [vmem:[%s6908_s24 + $0x278] sm:$0xff] %v5363_v60  ;;  %v5362_v25 = vadd.f32 %v5275_v2, %v4948_v54  ;;  %v9530_v54 = vld [vmem:[#allocation33_spill] sm:$0xff] }
 0x2fa   : > { %5638 = vst [vmem:[%s6908_s24 + $0x330] sm:$0xff] %v4961_v1  ;;  %v6783_v4 = vpop.f32.mrf.mxu0  ;;  %v4962_v50 = vadd.f32 %v4872_v24, %v9521_v38 }
 0x2fb   : > { %v4876_v7 = vpop.f32.mrf.mxu1  ;;  %5611 = vst [vmem:[%s6908_s24 + $0x258] sm:$0xff] %v5362_v25  ;;  %v5365_v32 = vadd.f32 %v6783_v4, %v4954_v49  ;;  %v9532_v49 = vld [vmem:[#allocation17_spill] sm:$0xff] }
 0x2fc   : > { %v4963_v10 = vadd.f32 %v4876_v7, %v4488_v34  ;;  %v5285_v8 = vpop.f32.mrf.mxu0  ;;  %v9531_v34 = vld [vmem:[#allocation29_spill] sm:$0xff] }
 0x2fd   : > { %v4878_v27 = vpop.f32.mrf.mxu1  ;;  %5623 = vst [vmem:[%s6908_s24 + $0x2b8] sm:$0xff] %v5365_v32  ;;  %v5364_v56 = vadd.f32 %v5285_v8, %v4952_v59  ;;  %v4493_v25 = vadd.f32 %v9532_v49, %v9531_v34 }
 0x2fe   : > { %5642 = vst [vmem:[%s6908_s24 + $0x350] sm:$0xff] %v4963_v10  ;;  %v6786_v33 = vpop.f32.mrf.mxu0  ;;  %v4964_v62 = vadd.f32 %v4878_v27, %v9526_v44  ;;  %v9533_v10 = vld [vmem:[#allocation16_spill] sm:$0xff] }
 0x2ff   : > { %v4882_v63 = vpop.f32.mrf.mxu1  ;;  %5619 = vst [vmem:[%s6908_s24 + $0x298] sm:$0xff] %v5364_v56  ;;  %v5367_v61 = vadd.f32 %v6786_v33, %v4958_v13 }
 0x300   : > { %v4965_v20 = vadd.f32 %v4882_v63, %v4489_v42  ;;  %v5295_v41 = vpop.f32.mrf.mxu0  ;;  %v9534_v42 = vld [vmem:[#allocation55_spill] sm:$0xff] }
 0x301   : > { %v4884_v52 = vpop.f32.mrf.mxu1  ;;  %5631 = vst [vmem:[%s6908_s24 + $0x2f8] sm:$0xff] %v5367_v61  ;;  %v5366_v35 = vadd.f32 %v5295_v41, %v4956_v29 }
 0x302   : > { %5646 = vst [vmem:[%s6908_s24 + $0x370] sm:$0xff] %v4965_v20  ;;  %v6789_v55 = vpop.f32.mrf.mxu0  ;;  %v4966_v53 = vadd.f32 %v4884_v52, %v9525_v51 }
 0x303   : > { %v4888_v40 = vpop.f32.mrf.mxu1  ;;  %5627 = vst [vmem:[%s6908_s24 + $0x2d8] sm:$0xff] %v5366_v35  ;;  %v5369_v21 = vadd.f32 %v6789_v55, %v4962_v50 }
 0x304   : > { %v4967_v47 = vadd.f32 %v4888_v40, %v4490_v48  ;;  %v5305_v3 = vpop.f32.mrf.mxu0 }
 0x305   : > { %v4890_v43 = vpop.f32.mrf.mxu1  ;;  %5639 = vst [vmem:[%s6908_s24 + $0x338] sm:$0xff] %v5369_v21  ;;  %v5368_v37 = vadd.f32 %v5305_v3, %v4960_v6 }
 0x306   : > { %5650 = vst [vmem:[%s6908_s24 + $0x390] sm:$0xff] %v4967_v47  ;;  %v6792_v12 = vpop.f32.mrf.mxu0  ;;  %v4968_v1 = vadd.f32 %v4890_v43, %v9530_v54 }
 0x307   : > { %v4894_v57 = vpop.f32.mrf.mxu1  ;;  %5635 = vst [vmem:[%s6908_s24 + $0x318] sm:$0xff] %v5368_v37  ;;  %v5371_v18 = vadd.f32 %v6792_v12, %v4966_v53 }
 0x308   : > { %v4969_v23 = vadd.f32 %v4894_v57, %v4491_v28  ;;  %v5315_v39 = vpop.f32.mrf.mxu0 }
 0x309   : > { %v4896_v15 = vpop.f32.mrf.mxu1  ;;  %5647 = vst [vmem:[%s6908_s24 + $0x378] sm:$0xff] %v5371_v18  ;;  %v5370_v30 = vadd.f32 %v5315_v39, %v4964_v62 }
 0x30a   : > { %5654 = vst [vmem:[%s6908_s24 + $0x3b0] sm:$0xff] %v4969_v23  ;;  %v4970_v11 = vadd.f32 %v4896_v15, %v9529_v46  ;;  %v6795_v19 = vpop.f32.mrf.mxu0 }
 0x30b   : > { %v4900_v22 = vpop.f32.mrf.mxu1  ;;  %5643 = vst [vmem:[%s6908_s24 + $0x358] sm:$0xff] %v5370_v30 }
 0x30c   : > { %v4971_v60 = vadd.f32 %v4900_v22, %v4492_v31  ;;  %v5373_v24 = vadd.f32 %v6795_v19, %v4970_v11  ;;  %v5325_v5 = vpop.f32.mrf.mxu0 }
 0x30d   : > { %v4902_v2 = vpop.f32.mrf.mxu1  ;;  %v5372_v7 = vadd.f32 %v5325_v5, %v4968_v1 }
 0x30e   : > { %5658 = vst [vmem:[%s6908_s24 + $0x3d0] sm:$0xff] %v4971_v60  ;;  %5655 = vst [vmem:[%s6908_s24 + $0x3b8] sm:$0xff] %v5373_v24  ;;  %v6798_v59 = vpop.f32.mrf.mxu0  ;;  %v4972_v32 = vadd.f32 %v4902_v2, %v9533_v10 }
 0x30f   : > { %v4906_v4 = vpop.f32.mrf.mxu1  ;;  %5651 = vst [vmem:[%s6908_s24 + $0x398] sm:$0xff] %v5372_v7 }
 0x310   : > { %v4973_v27 = vadd.f32 %v4906_v4, %v4493_v25  ;;  %v5335_v16 = vpop.f32.mrf.mxu0 }
 0x311   : > { %v4908_v8 = vpop.f32.mrf.mxu1  ;;  %v5374_v56 = vadd.f32 %v5335_v16, %v4972_v32 }
 0x312   : > { %5662 = vst [vmem:[%s6908_s24 + $0x3f0] sm:$0xff] %v4973_v27  ;;  %v4974_v13 = vadd.f32 %v4908_v8, %v9534_v42 }
 0x313   : > { %5659 = vst [vmem:[%s6908_s24 + $0x3d8] sm:$0xff] %v5374_v56 }
 0x314   : > { %v5375_v63 = vadd.f32 %v6798_v59, %v4974_v13 }
 0x316   : > { %5663 = vst [vmem:[%s6908_s24 + $0x3f8] sm:$0xff] %v5375_v63 }
 0x317 PF: > { %s13_s14 = sadd.s32 1, %s6850_s14   ;;  %s9535_s12 = smov %s6846_s13 }
 0x318   : > { %p10_p5 = scmp.ge.s32.totalorder %s13_s14, 4   ;;  %s9536_s13 = smov %s9538_s15 }
 0x31a   :  { %12 = sbr.rel (!%p10_p5) target bundleno = 2 (0x2), region = 109 }
 0x31f   :  { %5691 = vsyncmov [#allocation4] }
 0x322   :  { %s5692_s10 = vpop.sfrf %5691 }
 0x323   :  { %p5773_p6 = scmp.ne.s32.totalorder %s5692_s10, 0 }
 0x325   :  { %5696 = shalt.err (%p5773_p6)  }

</bundles_post_ra>
